<compile_context>
chip_gen: v7x
topology: tpu7x:2x2x1
jax: 0.10.0
libtpu: 0.0.40
codegen_flags: <defaults>
</compile_context>

<pallas_src>
import functools

import jax
import jax.numpy as jnp
from jax.experimental import pallas as pl
from jax.experimental.pallas import tpu as pltpu


def _round_up(x, m):
    return (x + m - 1) // m * m


def _tile_rows(m, max_tile=256):
    """Pick (padded_M, tile_m). tile_m is a multiple of 16 (bf16 sublanes)."""
    m16 = _round_up(m, 16)
    if m16 <= max_tile:
        return m16, m16
    return _round_up(m16, max_tile), max_tile


_COMPILER_PARAMS = pltpu.CompilerParams(
    dimension_semantics=("parallel",),        # M axis: independent row tiles
    vmem_limit_bytes=64 * 1024 * 1024,
)


# ------------------------------ Pallas kernels ------------------------------
def _gemm_bias_act_kernel(a_ref, b_ref, bias_ref, o_ref, *, apply_relu):
    acc = jnp.dot(a_ref[...], b_ref[...], preferred_element_type=jnp.float32)
    acc = acc + bias_ref[...]                 # (1, N) broadcast over rows
    if apply_relu:
        acc = jnp.maximum(acc, 0.0)
    o_ref[...] = acc.astype(o_ref.dtype)


def _fc_head_kernel(x_ref, w1_ref, b1_ref, w2_ref, b2_ref, o_ref):
    # fused fc1 (ReLU) + fc2; hidden activations stay on-chip.
    h = jnp.dot(x_ref[...], w1_ref[...], preferred_element_type=jnp.float32)
    h = jnp.maximum(h + b1_ref[...], 0.0)
    q = jnp.dot(h.astype(w2_ref.dtype), w2_ref[...],
                preferred_element_type=jnp.float32)
    o_ref[...] = (q + b2_ref[...]).astype(o_ref.dtype)


# ------------------------------ kernel wrappers -----------------------------
def _pad_activation(a, mp, kp):
    m, k = a.shape
    if (m, k) == (mp, kp):
        return a
    return jnp.zeros((mp, kp), a.dtype).at[:m, :k].set(a)


def gemm_bias_act(a, w_p, bias_p, *, apply_relu, out_dtype):
    """out = act(a @ w_p + bias_p). w_p pre-padded/packed to (Kp, Np) bf16."""
    m, _ = a.shape
    kp, np_ = w_p.shape
    mp, tile_m = _tile_rows(m)
    a_p = _pad_activation(a, mp, kp)
    cost = pl.CostEstimate(
        flops=2 * mp * kp * np_,
        transcendentals=0,
        bytes_accessed=(mp * kp * 2 + kp * np_ * 2 + np_ * 4
                        + mp * np_ * jnp.dtype(out_dtype).itemsize),
    )
    out = pl.pallas_call(
        functools.partial(_gemm_bias_act_kernel, apply_relu=apply_relu),
        out_shape=jax.ShapeDtypeStruct((mp, np_), out_dtype),
        grid=(mp // tile_m,),
        in_specs=[
            pl.BlockSpec((tile_m, kp), lambda i: (i, 0)),   # A: tiled over M
            pl.BlockSpec((kp, np_), lambda i: (0, 0)),      # W: resident
            pl.BlockSpec((1, np_), lambda i: (0, 0)),       # bias: resident
        ],
        out_specs=pl.BlockSpec((tile_m, np_), lambda i: (i, 0)),
        compiler_params=_COMPILER_PARAMS,
        cost_estimate=cost,
    )(a_p, w_p, bias_p)
    return out[:m]


def fc_head(x, w1_p, b1_p, w2_p, b2_p, num_actions):
    """q = (relu(x @ W1 + b1)) @ W2 + b2, fused in one pallas_call."""
    m, _ = x.shape
    k1, h = w1_p.shape
    h2, nq = w2_p.shape
    mp, tile_m = _tile_rows(m)
    x_p = _pad_activation(x, mp, k1)
    cost = pl.CostEstimate(
        flops=2 * mp * k1 * h + 2 * mp * h * nq,
        transcendentals=0,
        bytes_accessed=(mp * k1 * 2 + k1 * h * 2 + h2 * nq * 2
                        + (h + nq) * 4 + mp * nq * 4),
    )
    out = pl.pallas_call(
        _fc_head_kernel,
        out_shape=jax.ShapeDtypeStruct((mp, nq), jnp.float32),
        grid=(mp // tile_m,),
        in_specs=[
            pl.BlockSpec((tile_m, k1), lambda i: (i, 0)),
            pl.BlockSpec((k1, h), lambda i: (0, 0)),
            pl.BlockSpec((1, h), lambda i: (0, 0)),
            pl.BlockSpec((h2, nq), lambda i: (0, 0)),
            pl.BlockSpec((1, nq), lambda i: (0, 0)),
        ],
        out_specs=pl.BlockSpec((tile_m, nq), lambda i: (i, 0)),
        compiler_params=_COMPILER_PARAMS,
        cost_estimate=cost,
    )(x_p, w1_p, b1_p, w2_p, b2_p)
    return out[:m, :num_actions]


# --------------------------------- glue (JAX) -------------------------------
def _conv_layer(x_nhwc, w_p, b_p, *, k, stride, out_c):
    """Conv + bias + ReLU as (patch-extraction glue) + Pallas GEMM."""
    b, _, _, _ = x_nhwc.shape
    # Single fused XLA patch-extraction op; feature ordering is (c, kh, kw),
    # matching the row order of the pre-packed weights.
    patches = jax.lax.conv_general_dilated_patches(
        x_nhwc,
        filter_shape=(k, k),
        window_strides=(stride, stride),
        padding="VALID",
        dimension_numbers=("NHWC", "HWIO", "NHWC"),
    )
    _, ho, wo, f = patches.shape
    cols = patches.reshape(b * ho * wo, f)
    out = gemm_bias_act(cols, w_p, b_p, apply_relu=True, out_dtype=jnp.bfloat16)
    return out[:, :out_c].reshape(b, ho, wo, out_c)


@functools.partial(jax.jit, static_argnums=(2,))
def dqn_forward(x_nchw, prep, num_actions):
    x = jnp.transpose(x_nchw, (0, 2, 3, 1)).astype(jnp.bfloat16)   # NCHW->NHWC
    x = _conv_layer(x, prep["w1"], prep["b1"], k=8, stride=4, out_c=32)
    x = _conv_layer(x, prep["w2"], prep["b2"], k=4, stride=2, out_c=64)
    x = _conv_layer(x, prep["w3"], prep["b3"], k=3, stride=1, out_c=64)
    b = x.shape[0]
    # Flatten directly in NHWC order; fc1 columns were permuted at prep time
    # so the result matches PyTorch's view(B, -1) on NCHW exactly.
    x = x.reshape(b, 7 * 7 * 64)
    return fc_head(x, prep["wfc1"], prep["bfc1"], prep["wfc2"], prep["bfc2"],
                   num_actions)


# --------------------------- one-time weight repack --------------------------
def prepare_params(params, num_actions):
    """Hoist all weight transposes / reorders / padding out of the hot path."""
    def conv_weight(w):
        o, ci, kh, kw = w.shape
        k_real = ci * kh * kw
        kp = _round_up(k_real, 128)
        np_ = _round_up(o, 128)
        # rows ordered (c, kh, kw) to match conv_general_dilated_patches.
        w2d = jnp.transpose(w, (1, 2, 3, 0)).reshape(k_real, o)
        return (jnp.zeros((kp, np_), jnp.bfloat16)
                .at[:k_real, :o].set(w2d.astype(jnp.bfloat16)))

    def pad_bias(bias, np_):
        return (jnp.zeros((1, np_), jnp.float32)
                .at[0, :bias.shape[0]].set(bias.astype(jnp.float32)))

    # fc1: permute input columns from CHW flatten order to HWC flatten order.
    wfc1 = params["wfc1"].reshape(512, 64, 7, 7)
    wfc1 = jnp.transpose(wfc1, (0, 2, 3, 1)).reshape(512, 64 * 7 * 7)
    kfc1 = _round_up(64 * 7 * 7, 128)                       # 3200
    w1_p = (jnp.zeros((kfc1, 512), jnp.bfloat16)
            .at[:64 * 7 * 7, :].set(wfc1.T.astype(jnp.bfloat16)))

    nq = _round_up(num_actions, 128)
    w2_p = (jnp.zeros((512, nq), jnp.bfloat16)
            .at[:, :num_actions].set(params["wfc2"].T.astype(jnp.bfloat16)))

    return {
        "w1": conv_weight(params["w1"]), "b1": pad_bias(params["b1"], 128),
        "w2": conv_weight(params["w2"]), "b2": pad_bias(params["b2"], 128),
        "w3": conv_weight(params["w3"]), "b3": pad_bias(params["b3"], 128),
        "wfc1": w1_p, "bfc1": pad_bias(params["bfc1"], 512),
        "wfc2": w2_p, "bfc2": pad_bias(params["bfc2"], nq),
    }


# ------------------------------ deterministic init ---------------------------
def init_params(key, num_actions):
    ks = jax.random.split(key, 5)

    def kaiming_conv(k, o, c, kh, kw):      # fan_out, relu
        std = (2.0 / (o * kh * kw)) ** 0.5
        return jax.random.normal(k, (o, c, kh, kw), jnp.float32) * std

    def kaiming_fc(k, o, i):                # fan_out = out_features
        std = (2.0 / o) ** 0.5
        return jax.random.normal(k, (o, i), jnp.float32) * std

    return {
        "w1": kaiming_conv(ks[0], 32, 4, 8, 8),  "b1": jnp.zeros((32,), jnp.float32),
        "w2": kaiming_conv(ks[1], 64, 32, 4, 4), "b2": jnp.zeros((64,), jnp.float32),
        "w3": kaiming_conv(ks[2], 64, 64, 3, 3), "b3": jnp.zeros((64,), jnp.float32),
        "wfc1": kaiming_fc(ks[3], 512, 64 * 7 * 7),
        "bfc1": jnp.zeros((512,), jnp.float32),
        "wfc2": kaiming_fc(ks[4], num_actions, 512),
        "bfc2": jnp.zeros((num_actions,), jnp.float32),
    }


# ------------------------------ pure-JAX reference ---------------------------
def dqn_reference(x_nchw, params):
    def conv(x, w, b, s):
        y = jax.lax.conv_general_dilated(
            x, w, window_strides=(s, s), padding="VALID",
            dimension_numbers=("NCHW", "OIHW", "NCHW"))
        return jax.nn.relu(y + b[None, :, None, None])

    x = conv(x_nchw, params["w1"], params["b1"], 4)
    x = conv(x, params["w2"], params["b2"], 2)
    x = conv(x, params["w3"], params["b3"], 1)
    x = x.reshape(x.shape[0], -1)
    x = jax.nn.relu(x @ params["wfc1"].T + params["bfc1"])
    return x @ params["wfc2"].T + params["bfc2"]


if __name__ == "__main__":
    key = jax.random.PRNGKey(0)
    k_x, k_p = jax.random.split(key)
    num_actions = 6
    batch = 2
    # 84x84 is fixed by the module (fc1 expects 64*7*7 features).
    x = jax.random.uniform(k_x, (batch, 4, 84, 84), jnp.float32)
    params = init_params(k_p, num_actions)
    prep = prepare_params(params, num_actions)       # one-time repack

    q = jax.block_until_ready(dqn_forward(x, prep, num_actions))
    q_ref = jax.block_until_ready(dqn_reference(x, params))

    assert q.shape == (batch, num_actions)
    # bf16 MXU operands with f32 accumulation: compare at a bf16-appropriate
    # tolerance relative to the overall Q-value scale.
    scale = jnp.maximum(jnp.max(jnp.abs(q_ref)), 1.0)
    rel_err = jnp.max(jnp.abs(q - q_ref)) / scale
    assert rel_err < 5e-2, f"mismatch vs reference: rel err {rel_err}"
    print("KERNEL_OK")
</pallas_src>

<mosaic_0001>
module attributes {stable_mosaic.version = 11 : i64} {
  func.func @_gemm_bias_act_kernel(%arg0: i32, %arg1: memref<256x256xbf16, #tpu.memory_space<vmem>>, %arg2: memref<256x128xbf16, #tpu.memory_space<vmem>>, %arg3: memref<1x128xf32, #tpu.memory_space<vmem>>, %arg4: memref<256x128xbf16, #tpu.memory_space<vmem>>) attributes {dimension_semantics = [#tpu.dimension_semantics<parallel>], iteration_bounds = array<i64: 4>, scalar_prefetch = 0 : i64, scratch_operands = 0 : i64, tpu.core_type = #tpu.core_type<tc>, window_params = [{transform_indices = @transform_0, window_bounds = array<i64: 256, 256>}, {pipeline_mode = #tpu.pipeline_mode<synchronous>, transform_indices = @transform_1, window_bounds = array<i64: 256, 128>}, {pipeline_mode = #tpu.pipeline_mode<synchronous>, transform_indices = @transform_2, window_bounds = array<i64: 1, 128>}, {transform_indices = @transform_3, window_bounds = array<i64: 256, 128>}]} {
    %c0 = arith.constant 0 : index
    %c0_0 = arith.constant 0 : index
    %0 = vector.load %arg1[%c0, %c0_0] : memref<256x256xbf16, #tpu.memory_space<vmem>>, vector<256x256xbf16>
    %c0_1 = arith.constant 0 : index
    %c0_2 = arith.constant 0 : index
    %1 = vector.load %arg2[%c0_1, %c0_2] : memref<256x128xbf16, #tpu.memory_space<vmem>>, vector<256x128xbf16>
    %cst = arith.constant dense<0.000000e+00> : vector<256x128xf32>
    %2 = tpu.matmul %0, %1, %cst {dimension_numbers = #tpu.dot_dimension_numbers<[1], [0], [0], [1], [0, 0, 1, 1], [], []>} : vector<256x256xbf16>, vector<256x128xbf16>, vector<256x128xf32> -> vector<256x128xf32>
    %c0_3 = arith.constant 0 : index
    %c0_4 = arith.constant 0 : index
    %3 = vector.load %arg3[%c0_3, %c0_4] : memref<1x128xf32, #tpu.memory_space<vmem>>, vector<1x128xf32>
    %4 = vector.broadcast %3 : vector<1x128xf32> to vector<256x128xf32>
    %5 = arith.addf %2, %4 : vector<256x128xf32>
    %cst_5 = arith.constant 0.000000e+00 : f32
    %6 = vector.broadcast %cst_5 : f32 to vector<256x128xf32>
    %7 = arith.maximumf %5, %6 : vector<256x128xf32>
    %8 = arith.truncf %7 : vector<256x128xf32> to vector<256x128xbf16>
    %c0_6 = arith.constant 0 : index
    %c0_7 = arith.constant 0 : index
    %9 = vector.load %arg4[%c0_6, %c0_7] : memref<256x128xbf16, #tpu.memory_space<vmem>>, vector<256x128xbf16>
    tpu.vector_store %arg4[%c0_6, %c0_7], %8 {strides = array<i32>} : memref<256x128xbf16, #tpu.memory_space<vmem>>, vector<256x128xbf16>,
    return
  }
  func.func @transform_0(%arg0: i32) -> (i32, i32) {
    %c0_i32 = arith.constant 0 : i32
    %c0_i32_0 = arith.constant 0 : i32
    return %arg0, %c0_i32 : i32, i32
  }
  func.func @transform_1(%arg0: i32) -> (i32, i32) {
    %c0_i32 = arith.constant 0 : i32
    %c0_i32_0 = arith.constant 0 : i32
    %c0_i32_1 = arith.constant 0 : i32
    return %c0_i32, %c0_i32_0 : i32, i32
  }
  func.func @transform_2(%arg0: i32) -> (i32, i32) {
    %c0_i32 = arith.constant 0 : i32
    %c0_i32_0 = arith.constant 0 : i32
    %c0_i32_1 = arith.constant 0 : i32
    return %c0_i32, %c0_i32_0 : i32, i32
  }
  func.func @transform_3(%arg0: i32) -> (i32, i32) {
    %c0_i32 = arith.constant 0 : i32
    %c0_i32_0 = arith.constant 0 : i32
    return %arg0, %c0_i32 : i32, i32
  }
}

module attributes {stable_mosaic.version = 11 : i64} {
  func.func @_gemm_bias_act_kernel(%arg0: i32, %arg1: memref<176x512xbf16, #tpu.memory_space<vmem>>, %arg2: memref<512x128xbf16, #tpu.memory_space<vmem>>, %arg3: memref<1x128xf32, #tpu.memory_space<vmem>>, %arg4: memref<176x128xbf16, #tpu.memory_space<vmem>>) attributes {dimension_semantics = [#tpu.dimension_semantics<parallel>], iteration_bounds = array<i64: 1>, scalar_prefetch = 0 : i64, scratch_operands = 0 : i64, tpu.core_type = #tpu.core_type<tc>, window_params = [{transform_indices = @transform_0, window_bounds = array<i64: 176, 512>}, {pipeline_mode = #tpu.pipeline_mode<synchronous>, transform_indices = @transform_1, window_bounds = array<i64: 512, 128>}, {pipeline_mode = #tpu.pipeline_mode<synchronous>, transform_indices = @transform_2, window_bounds = array<i64: 1, 128>}, {transform_indices = @transform_3, window_bounds = array<i64: 176, 128>}]} {
    %c0 = arith.constant 0 : index
    %c0_0 = arith.constant 0 : index
    %0 = vector.load %arg1[%c0, %c0_0] : memref<176x512xbf16, #tpu.memory_space<vmem>>, vector<176x512xbf16>
    %c0_1 = arith.constant 0 : index
    %c0_2 = arith.constant 0 : index
    %1 = vector.load %arg2[%c0_1, %c0_2] : memref<512x128xbf16, #tpu.memory_space<vmem>>, vector<512x128xbf16>
    %cst = arith.constant dense<0.000000e+00> : vector<176x128xf32>
    %2 = tpu.matmul %0, %1, %cst {dimension_numbers = #tpu.dot_dimension_numbers<[1], [0], [0], [1], [0, 0, 1, 1], [], []>} : vector<176x512xbf16>, vector<512x128xbf16>, vector<176x128xf32> -> vector<176x128xf32>
    %c0_3 = arith.constant 0 : index
    %c0_4 = arith.constant 0 : index
    %3 = vector.load %arg3[%c0_3, %c0_4] : memref<1x128xf32, #tpu.memory_space<vmem>>, vector<1x128xf32>
    %4 = vector.broadcast %3 : vector<1x128xf32> to vector<176x128xf32>
    %5 = arith.addf %2, %4 : vector<176x128xf32>
    %cst_5 = arith.constant 0.000000e+00 : f32
    %6 = vector.broadcast %cst_5 : f32 to vector<176x128xf32>
    %7 = arith.maximumf %5, %6 : vector<176x128xf32>
    %8 = arith.truncf %7 : vector<176x128xf32> to vector<176x128xbf16>
    %c0_6 = arith.constant 0 : index
    %c0_7 = arith.constant 0 : index
    %9 = vector.load %arg4[%c0_6, %c0_7] : memref<176x128xbf16, #tpu.memory_space<vmem>>, vector<176x128xbf16>
    tpu.vector_store %arg4[%c0_6, %c0_7], %8 {strides = array<i32>} : memref<176x128xbf16, #tpu.memory_space<vmem>>, vector<176x128xbf16>,
    return
  }
  func.func @transform_0(%arg0: i32) -> (i32, i32) {
    %c0_i32 = arith.constant 0 : i32
    %c0_i32_0 = arith.constant 0 : i32
    return %arg0, %c0_i32 : i32, i32
  }
  func.func @transform_1(%arg0: i32) -> (i32, i32) {
    %c0_i32 = arith.constant 0 : i32
    %c0_i32_0 = arith.constant 0 : i32
    %c0_i32_1 = arith.constant 0 : i32
    return %c0_i32, %c0_i32_0 : i32, i32
  }
  func.func @transform_2(%arg0: i32) -> (i32, i32) {
    %c0_i32 = arith.constant 0 : i32
    %c0_i32_0 = arith.constant 0 : i32
    %c0_i32_1 = arith.constant 0 : i32
    return %c0_i32, %c0_i32_0 : i32, i32
  }
  func.func @transform_3(%arg0: i32) -> (i32, i32) {
    %c0_i32 = arith.constant 0 : i32
    %c0_i32_0 = arith.constant 0 : i32
    return %arg0, %c0_i32 : i32, i32
  }
}

module attributes {stable_mosaic.version = 11 : i64} {
  func.func @_gemm_bias_act_kernel(%arg0: i32, %arg1: memref<112x640xbf16, #tpu.memory_space<vmem>>, %arg2: memref<640x128xbf16, #tpu.memory_space<vmem>>, %arg3: memref<1x128xf32, #tpu.memory_space<vmem>>, %arg4: memref<112x128xbf16, #tpu.memory_space<vmem>>) attributes {dimension_semantics = [#tpu.dimension_semantics<parallel>], iteration_bounds = array<i64: 1>, scalar_prefetch = 0 : i64, scratch_operands = 0 : i64, tpu.core_type = #tpu.core_type<tc>, window_params = [{transform_indices = @transform_0, window_bounds = array<i64: 112, 640>}, {pipeline_mode = #tpu.pipeline_mode<synchronous>, transform_indices = @transform_1, window_bounds = array<i64: 640, 128>}, {pipeline_mode = #tpu.pipeline_mode<synchronous>, transform_indices = @transform_2, window_bounds = array<i64: 1, 128>}, {transform_indices = @transform_3, window_bounds = array<i64: 112, 128>}]} {
    %c0 = arith.constant 0 : index
    %c0_0 = arith.constant 0 : index
    %0 = vector.load %arg1[%c0, %c0_0] : memref<112x640xbf16, #tpu.memory_space<vmem>>, vector<112x640xbf16>
    %c0_1 = arith.constant 0 : index
    %c0_2 = arith.constant 0 : index
    %1 = vector.load %arg2[%c0_1, %c0_2] : memref<640x128xbf16, #tpu.memory_space<vmem>>, vector<640x128xbf16>
    %cst = arith.constant dense<0.000000e+00> : vector<112x128xf32>
    %2 = tpu.matmul %0, %1, %cst {dimension_numbers = #tpu.dot_dimension_numbers<[1], [0], [0], [1], [0, 0, 1, 1], [], []>} : vector<112x640xbf16>, vector<640x128xbf16>, vector<112x128xf32> -> vector<112x128xf32>
    %c0_3 = arith.constant 0 : index
    %c0_4 = arith.constant 0 : index
    %3 = vector.load %arg3[%c0_3, %c0_4] : memref<1x128xf32, #tpu.memory_space<vmem>>, vector<1x128xf32>
    %4 = vector.broadcast %3 : vector<1x128xf32> to vector<112x128xf32>
    %5 = arith.addf %2, %4 : vector<112x128xf32>
    %cst_5 = arith.constant 0.000000e+00 : f32
    %6 = vector.broadcast %cst_5 : f32 to vector<112x128xf32>
    %7 = arith.maximumf %5, %6 : vector<112x128xf32>
    %8 = arith.truncf %7 : vector<112x128xf32> to vector<112x128xbf16>
    %c0_6 = arith.constant 0 : index
    %c0_7 = arith.constant 0 : index
    %9 = vector.load %arg4[%c0_6, %c0_7] : memref<112x128xbf16, #tpu.memory_space<vmem>>, vector<112x128xbf16>
    tpu.vector_store %arg4[%c0_6, %c0_7], %8 {strides = array<i32>} : memref<112x128xbf16, #tpu.memory_space<vmem>>, vector<112x128xbf16>,
    return
  }
  func.func @transform_0(%arg0: i32) -> (i32, i32) {
    %c0_i32 = arith.constant 0 : i32
    %c0_i32_0 = arith.constant 0 : i32
    return %arg0, %c0_i32 : i32, i32
  }
  func.func @transform_1(%arg0: i32) -> (i32, i32) {
    %c0_i32 = arith.constant 0 : i32
    %c0_i32_0 = arith.constant 0 : i32
    %c0_i32_1 = arith.constant 0 : i32
    return %c0_i32, %c0_i32_0 : i32, i32
  }
  func.func @transform_2(%arg0: i32) -> (i32, i32) {
    %c0_i32 = arith.constant 0 : i32
    %c0_i32_0 = arith.constant 0 : i32
    %c0_i32_1 = arith.constant 0 : i32
    return %c0_i32, %c0_i32_0 : i32, i32
  }
  func.func @transform_3(%arg0: i32) -> (i32, i32) {
    %c0_i32 = arith.constant 0 : i32
    %c0_i32_0 = arith.constant 0 : i32
    return %arg0, %c0_i32 : i32, i32
  }
}

module attributes {stable_mosaic.version = 11 : i64} {
  func.func @_fc_head_kernel(%arg0: i32, %arg1: memref<16x3200xbf16, #tpu.memory_space<vmem>>, %arg2: memref<3200x512xbf16, #tpu.memory_space<vmem>>, %arg3: memref<1x512xf32, #tpu.memory_space<vmem>>, %arg4: memref<512x128xbf16, #tpu.memory_space<vmem>>, %arg5: memref<1x128xf32, #tpu.memory_space<vmem>>, %arg6: memref<16x128xf32, #tpu.memory_space<vmem>>) attributes {dimension_semantics = [#tpu.dimension_semantics<parallel>], iteration_bounds = array<i64: 1>, scalar_prefetch = 0 : i64, scratch_operands = 0 : i64, tpu.core_type = #tpu.core_type<tc>, window_params = [{transform_indices = @transform_0, window_bounds = array<i64: 16, 3200>}, {pipeline_mode = #tpu.pipeline_mode<synchronous>, transform_indices = @transform_1, window_bounds = array<i64: 3200, 512>}, {pipeline_mode = #tpu.pipeline_mode<synchronous>, transform_indices = @transform_2, window_bounds = array<i64: 1, 512>}, {pipeline_mode = #tpu.pipeline_mode<synchronous>, transform_indices = @transform_3, window_bounds = array<i64: 512, 128>}, {pipeline_mode = #tpu.pipeline_mode<synchronous>, transform_indices = @transform_4, window_bounds = array<i64: 1, 128>}, {transform_indices = @transform_5, window_bounds = array<i64: 16, 128>}]} {
    %c0 = arith.constant 0 : index
    %c0_0 = arith.constant 0 : index
    %0 = vector.load %arg1[%c0, %c0_0] : memref<16x3200xbf16, #tpu.memory_space<vmem>>, vector<16x3200xbf16>
    %c0_1 = arith.constant 0 : index
    %c0_2 = arith.constant 0 : index
    %1 = vector.load %arg2[%c0_1, %c0_2] : memref<3200x512xbf16, #tpu.memory_space<vmem>>, vector<3200x512xbf16>
    %cst = arith.constant dense<0.000000e+00> : vector<16x512xf32>
    %2 = tpu.matmul %0, %1, %cst {dimension_numbers = #tpu.dot_dimension_numbers<[1], [0], [0], [1], [0, 0, 1, 1], [], []>} : vector<16x3200xbf16>, vector<3200x512xbf16>, vector<16x512xf32> -> vector<16x512xf32>
    %c0_3 = arith.constant 0 : index
    %c0_4 = arith.constant 0 : index
    %3 = vector.load %arg3[%c0_3, %c0_4] : memref<1x512xf32, #tpu.memory_space<vmem>>, vector<1x512xf32>
    %4 = vector.broadcast %3 : vector<1x512xf32> to vector<16x512xf32>
    %5 = arith.addf %2, %4 : vector<16x512xf32>
    %cst_5 = arith.constant 0.000000e+00 : f32
    %6 = vector.broadcast %cst_5 : f32 to vector<16x512xf32>
    %7 = arith.maximumf %5, %6 : vector<16x512xf32>
    %8 = arith.truncf %7 : vector<16x512xf32> to vector<16x512xbf16>
    %c0_6 = arith.constant 0 : index
    %c0_7 = arith.constant 0 : index
    %9 = vector.load %arg4[%c0_6, %c0_7] : memref<512x128xbf16, #tpu.memory_space<vmem>>, vector<512x128xbf16>
    %cst_8 = arith.constant dense<0.000000e+00> : vector<16x128xf32>
    %10 = tpu.matmul %8, %9, %cst_8 {dimension_numbers = #tpu.dot_dimension_numbers<[1], [0], [0], [1], [0, 0, 1, 1], [], []>} : vector<16x512xbf16>, vector<512x128xbf16>, vector<16x128xf32> -> vector<16x128xf32>
    %c0_9 = arith.constant 0 : index
    %c0_10 = arith.constant 0 : index
    %11 = vector.load %arg5[%c0_9, %c0_10] : memref<1x128xf32, #tpu.memory_space<vmem>>, vector<1x128xf32>
    %12 = vector.broadcast %11 : vector<1x128xf32> to vector<16x128xf32>
    %13 = arith.addf %10, %12 : vector<16x128xf32>
    %c0_11 = arith.constant 0 : index
    %c0_12 = arith.constant 0 : index
    %14 = vector.load %arg6[%c0_11, %c0_12] : memref<16x128xf32, #tpu.memory_space<vmem>>, vector<16x128xf32>
    tpu.vector_store %arg6[%c0_11, %c0_12], %13 {strides = array<i32>} : memref<16x128xf32, #tpu.memory_space<vmem>>, vector<16x128xf32>,
    return
  }
  func.func @transform_0(%arg0: i32) -> (i32, i32) {
    %c0_i32 = arith.constant 0 : i32
    %c0_i32_0 = arith.constant 0 : i32
    return %arg0, %c0_i32 : i32, i32
  }
  func.func @transform_1(%arg0: i32) -> (i32, i32) {
    %c0_i32 = arith.constant 0 : i32
    %c0_i32_0 = arith.constant 0 : i32
    %c0_i32_1 = arith.constant 0 : i32
    return %c0_i32, %c0_i32_0 : i32, i32
  }
  func.func @transform_2(%arg0: i32) -> (i32, i32) {
    %c0_i32 = arith.constant 0 : i32
    %c0_i32_0 = arith.constant 0 : i32
    %c0_i32_1 = arith.constant 0 : i32
    return %c0_i32, %c0_i32_0 : i32, i32
  }
  func.func @transform_3(%arg0: i32) -> (i32, i32) {
    %c0_i32 = arith.constant 0 : i32
    %c0_i32_0 = arith.constant 0 : i32
    %c0_i32_1 = arith.constant 0 : i32
    return %c0_i32, %c0_i32_0 : i32, i32
  }
  func.func @transform_4(%arg0: i32) -> (i32, i32) {
    %c0_i32 = arith.constant 0 : i32
    %c0_i32_0 = arith.constant 0 : i32
    %c0_i32_1 = arith.constant 0 : i32
    return %c0_i32, %c0_i32_0 : i32, i32
  }
  func.func @transform_5(%arg0: i32) -> (i32, i32) {
    %c0_i32 = arith.constant 0 : i32
    %c0_i32_0 = arith.constant 0 : i32
    return %arg0, %c0_i32 : i32, i32
  }
}

</mosaic_0001>

<bundles_post_ra>
// kernel: dqn_forward.4
= control target key start
LH: loop header
LB: loop body
LE: loop exit
PB: predicated region body
PF: predicated region fallthrough
CT: control target
= control target key end

     0   :  { %8 = vsyncpa [#allocation3], 0  ;;  %s2003_s0 = inlined_call_operand.hbm [shape: bf16[1024,256], index: 0, kind: input, shape index: {}]   ;;  %s2004_s1 = inlined_call_operand.hbm [shape: bf16[256,128], index: 1, kind: input, shape index: {}]   ;;  %s2005_s2 = inlined_call_operand.hbm [shape: f32[1,128], index: 2, kind: input, shape index: {}]   ;;  %s2006_s3 = inlined_call_operand.hbm [shape: bf16[1024,128], index: 3, kind: output, shape index: {}]  }
   0x1   :  { %10 = vsyncpa [#allocation3 + $0x1], 0 }
   0x2   :  { %11 = vsyncpa [#allocation6], 0 }
   0x3   :  { %12 = vsyncpa [#allocation4], 0 }
   0x4   :  { %14 = vsyncpa [#allocation4 + $0x1], 0  ;;  %s1689_s12 = smov 0   ;;  %s1691_s13 = smov 0  }
   0x5   :  { %s1693_s14 = smov 0   ;;  %s1695_s15 = smov 0  }
   0x6 LB: > { %s1710_s16 = sadd.s32 4294967295, %s1657_s15   ;;  %s1006_s17 = sadd.s32 4294967294, %s1657_s15   ;;  %s1657_s15 = sphi %s1695_s15, %s2025_s15   ;;  %s1653_s14 = sphi %s1693_s14, %s2024_s14   ;;  %s1649_s13 = sphi %s1691_s13, %s2023_s13   ;;  %s1645_s12 = sphi %s1689_s12, %s2022_s12  }
   0x7   : > { %p40_p0 = scmp.ne.s32.totalorder %s1649_s13, %s1645_s12  ;;  %p2007_p1 = scmp.eq.s32.totalorder %s1710_s16, 0 }
   0x8   : > { %p112_p3 = scmp.eq.s32.totalorder %s1006_s17, 3  ;;  %p1007_p5 = scmp.ge.s32.totalorder %s1657_s15, 1 }
   0x9   : > { %p1719_p4 = por %p2007_p1, %p40_p0  ;;  %p119_p7 = scmp.lt.s32.totalorder %s1657_s15, 5 }
   0xa   : > { %p1724_p6 = por %p112_p3, %p40_p0  ;;  %s1659_s21 = smov [#allocation5]  }
   0xb   : > { %s2010_s18 = scalar_select %p1719_p4, 1, 0 }
   0xc   : > { %s2011_s19 = scalar_select %p1724_p6, 1, 0 }
   0xd   : > { %p1729_p8 = pnand %p1007_p5, %p119_p7  ;;  %s131_s22 = sshll.u32 %s1659_s21, 4  ;;  %s132_s22 = int_to_ptr.vmem [resolvable:$true] %s131_s22 }
   0xe   : > { %s1660_s24 = smov [#allocation7]   ;;  %s1501_s28 = scalar_lea.hbm %s2004_s1, 2048 }
   0xf   : > { %s2012_s20 = scalar_select %p1729_p8, 1, 0 }
  0x10   : > { %p1376_p9 = pneg %p1729_p8  ;;  %s145_s25 = sshll.u32 %s1660_s24, 4  ;;  %s1741_s25 = int_to_ptr.vmem [resolvable:$true] %s145_s25 }
  0x11   : > { %p1502_p11 = scmp.ne.s32.totalorder %s2004_s1, %s1501_s28  ;;  %p1508_p3 = scmp.lt.u32.totalorder %s1501_s28, %s2004_s1 }
  0x12   : > { %p1737_p10 = pnand %p1376_p9, %p2007_p1 }
  0x14   : > { %p1503_p12 = pneg %p1737_p10 }
  0x16   : > { %p1504_p13 = pnand %p1503_p12, %p1502_p11 }
  0x18   : > { %p1505_p0 = pneg %p1504_p13 }
  0x1a   : > { %p1510_p5 = pnand %p1508_p3, %p1505_p0 }
  0x1c   : > { %1513 = shalt.err (!%p1510_p5)
}
  0x1d   : > { %s1514_s6 = scalar_lea.vmem %s132_s22, 2048  ;;  %p1522_p2 = scmp.lt.s32.totalorder %s132_s22, %s132_s22 }
  0x1e   : > { %p1515_p7 = scmp.ne.s32.totalorder %s132_s22, %s1514_s6  ;;  %p1523_p6 = scmp.lt.s32.totalorder %s1514_s6, %s1514_s6 }
  0x20   : > { %p1517_p9 = pnand %p1515_p7, %p1503_p12  ;;  %p1524_p4 = por %p1523_p6, %p1522_p2 }
  0x22   : > { %p1518_p1 = pneg %p1517_p9 }
  0x24   : > { %p1525_p8 = pnand %p1524_p4, %p1518_p1 }
  0x26   : > { %1528 = shalt.err (!%p1525_p8)
}
  0x27   : > { %s1661_s7 = smov 64   ;;  %s1662_s8 = smov 4  }
  0x28   : > { %1379 = dma.hbm_to_vmem [thread:$0]  (!%p1737_p10), %s2004_s1, 2048, %s132_s22, [#allocation6], %s1661_s7, %s1661_s7, %s1662_s8  }
  0x29   : > { %s1529_s21 = scalar_lea.hbm %s2005_s2, 16 }
  0x2a   : > { %p1530_p11 = scmp.ne.s32.totalorder %s2005_s2, %s1529_s21  ;;  %p1536_p4 = scmp.lt.u32.totalorder %s1529_s21, %s2005_s2 }
  0x2c   : > { %p1532_p1 = pnand %p1530_p11, %p1503_p12 }
  0x2e   : > { %p1533_p2 = pneg %p1532_p1 }
  0x30   : > { %p1538_p6 = pnand %p1536_p4, %p1533_p2 }
  0x32   : > { %1541 = shalt.err (!%p1538_p6)
}
  0x33   : > { %s1542_s22 = scalar_lea.vmem %s1741_s25, 16  ;;  %s1549_s29 = scalar_lea.vmem %s1741_s25, 32 }
  0x34   : > { %p1543_p8 = scmp.ne.s32.totalorder %s1741_s25, %s1542_s22  ;;  %p1550_p3 = scmp.lt.s32.totalorder %s1741_s25, %s1741_s25 }
  0x35   : > { %p1551_p5 = scmp.lt.s32.totalorder %s1549_s29, %s1542_s22 }
  0x36   : > { %p1545_p13 = pnand %p1543_p8, %p1503_p12 }
  0x37   : > { %p1552_p7 = por %p1551_p5, %p1550_p3 }
  0x38   : > { %p1546_p0 = pneg %p1545_p13 }
  0x3a   : > { %p1553_p9 = pnand %p1552_p7, %p1546_p0 }
  0x3c   : > { %1556 = shalt.err (!%p1553_p9)
}
  0x3d   : > { %1382 = dma.hbm_to_vmem [thread:$0]  (!%p1737_p10), %s2005_s2, 16, %s1741_s25, [#allocation6]  }
  0x3e   : > { %s1792_s5 = sadd.s32 1, %s1657_s15   ;;  %s27_s23 = sadd.s32 1, %s1653_s14 }
  0x3f   : > { %s24_s6 = ssub.s32 %s1657_s15, %s1792_s5  ;;  %p34_p12 = scmp.ne.s32.totalorder %s1653_s14, %s1649_s13 }
  0x40   : > { %p25_p11 = scmp.eq.s32.totalorder %s24_s6, 0  ;;  %p35_p1 = scmp.eq.s32.totalorder %s1657_s15, 0 }
  0x41   : > { %p2014_p2 = scmp.eq.s32.totalorder %s1710_s16, 3  ;;  %p1393_p6 = scmp.lt.s32.totalorder %s1657_s15, 4 }
  0x42   : > { %s1808_s8 = scalar_select %p25_p11, %s1653_s14, %s27_s23  }
  0x43   : > { %p1802_p4 = por %p2014_p2, %p34_p12  ;;  %p36_p8 = por %p35_p1, %p34_p12 }
  0x44   : > { %s156_s9 = sand.u32 1, %s1653_s14   ;;  %s1107_s25 = sshll.u32 %s1657_s15, 12 }
  0x45   : > { %s1011_s10 = sshll.u32 %s156_s9, 8  ;;  %s1815_s21 = scalar_lea.hbm %s2003_s0, %s1107_s25 }
  0x46   : > { %s160_s24 = scalar_lea.vmem [#allocation2], %s1011_s10  ;;  %p1819_p10 = pnand %p1393_p6, %p36_p8 }
  0x47   : > { %s168_s26 = sshll.u32 %s160_s24, 4  ;;  %s1823_s28 = scalar_lea.sflag [#allocation3], %s156_s9  ;;  %s1817_s26 = int_to_ptr.vmem [resolvable:$true] %s168_s26 }
  0x48   : > { %s1557_s22 = scalar_lea.hbm %s1815_s21, 4096  ;;  %p1559_p0 = pneg %p1819_p10 }
  0x49   : > { %p1558_p13 = scmp.ne.s32.totalorder %s1815_s21, %s1557_s22  ;;  %s1562_s4 = scalar_lea.hbm %s2003_s0, 16384 }
  0x4a   : > { %p1563_p7 = scmp.lt.u32.totalorder %s1815_s21, %s2003_s0  ;;  %p1564_p9 = scmp.lt.u32.totalorder %s1562_s4, %s1557_s22 }
  0x4b   : > { %p1560_p3 = pnand %p1559_p0, %p1558_p13  ;;  %p1566_p11 = scmp.lt.u32.totalorder %s1557_s22, %s1815_s21 }
  0x4c   : > { %p1565_p12 = por %p1564_p9, %p1563_p7 }
  0x4d   : > { %p1561_p5 = pneg %p1560_p3 }
  0x4e   : > { %p1567_p1 = por %p1566_p11, %p1565_p12 }
  0x50   : > { %p1568_p2 = pnand %p1567_p1, %p1561_p5 }
  0x52   : > { %1571 = shalt.err (!%p1568_p2)
}
  0x53   : > { %s1572_s9 = scalar_lea.vmem %s1817_s26, 4096  ;;  %s1663_s10 = smov [#allocation2]  }
  0x54   : > { %p1573_p6 = scmp.ne.s32.totalorder %s1817_s26, %s1572_s9  ;;  %s1577_s25 = sshll.u32 %s1663_s10, 4  ;;  %s1578_s25 = int_to_ptr.vmem [resolvable:$false] %s1577_s25 }
  0x55   : > { %s1579_s11 = scalar_lea.vmem %s1578_s25, 8192  ;;  %p1580_p3 = scmp.lt.s32.totalorder %s1817_s26, %s1578_s25 }
  0x56   : > { %p1575_p8 = pnand %p1573_p6, %p1559_p0  ;;  %p1581_p7 = scmp.lt.s32.totalorder %s1579_s11, %s1572_s9 }
  0x58   : > { %p1576_p13 = pneg %p1575_p8  ;;  %p1582_p9 = por %p1581_p7, %p1580_p3 }
  0x5a   : > { %p1583_p12 = pnand %p1582_p9, %p1576_p13 }
  0x5c   : > { %1586 = shalt.err (!%p1583_p12)
}
  0x5d   : > { %s1664_s17 = smov 128   ;;  %s1665_s24 = smov 8  }
  0x5e   : > { %1386 = dma.hbm_to_vmem [thread:$0]  (!%p1819_p10), %s1815_s21, 4096, %s1817_s26, %s1823_s28, %s1664_s17, %s1664_s17, %s1665_s24  }
  0x5f   : > { %p2017_p0 = scmp.ne.s32.totalorder %s2012_s20, 0 }
  0x60   : > { %s1854_s22 = sand.u32 (!%p2017_p0), 1, %s1649_s13   ;;  %p2018_p5 = scmp.ne.s32.totalorder (!%p2017_p0), %s2010_s18, 0 }
  0x61   : > { %180 = sbr.rel (%p2017_p0) target bundleno = 436 (0x1b4), region = 32  ;;  %s1016_s29 = sshll.u32 (!%p2017_p0), %s1854_s22, 8 }
  0x62   : > { %s183_s30 = scalar_lea.sflag (!%p2017_p0), [#allocation3], %s1854_s22  ;;  %s1858_s4 = scalar_lea.vmem (!%p2017_p0), [#allocation2], %s1016_s29 }
  0x68   : > { %1632 = dma.done.wait (%p2018_p5), %s183_s30, 4096  }
  0x69   : > { %1634 = vsyncadd (%p2018_p5), %s183_s30, 4294963200  ;;  %p2019_p10 = scmp.eq.s32.totalorder %s1710_s16, 0 }
  0x6b   : > { %1636 = dma.done.wait (%p2019_p10), [#allocation6], 2064   ;;  %p2020_p11 = pmov %p2019_p10 }
  0x6c   : > { %v1437_v0 = vld [vmem:[#allocation5 + $0x40] sm:$0xff]   ;;  %v1439_v2 = vld [vmem:[#allocation5 + $0x48] sm:$0xff]   ;;  %v1441_v4 = vld [vmem:[#allocation5 + $0x50] sm:$0xff]   ;;  %s1019_s18 = sshll.u32 %s1854_s22, 7  ;;  %s1140_s21 = sshll.u32 %s1710_s16, 11 }
  0x6d   : > { %1638 = vsyncadd (%p2020_p11), [#allocation6], 4294965232  ;;  %v1438_v1 = vld [vmem:[#allocation5] sm:$0xff]   ;;  %1236 = vmatprep.subr.bf16.mxu0 %v1437_v0  ;;  %1348 = vmatprep.subr.bf16.mxu1 %v1437_v0  ;;  %v1440_v3 = vld [vmem:[#allocation5 + $0x8] sm:$0xff]   ;;  %s1907_s20 = scalar_lea.vmem [#allocation8], %s1019_s18  ;;  %s1956_s23 = scalar_lea.hbm %s2006_s3, %s1140_s21 }
  0x6e   : > { %1237 = vmatpush3.bf16.msra.mxu0 %v1438_v1  ;;  %1356 = vmatpush3.bf16.msra.mxu1 %v1438_v1  ;;  %v1442_v5 = vld [vmem:[#allocation5 + $0x10] sm:$0xff]   ;;  %v1443_v6 = vld [vmem:[#allocation5 + $0x58] sm:$0xff]   ;;  %v1445_v8 = vld [vmem:[#allocation5 + $0x60] sm:$0xff]   ;;  %s914_s26 = sshll.u32 %s1907_s20, 4  ;;  %s901_s16 = scalar_lea.sflag [#allocation4], %s1854_s22  ;;  %s1958_s26 = int_to_ptr.vmem [resolvable:$true] %s914_s26 }
  0x6f   : > { %1238 = vmatprep.subr.bf16.mxu0 %v1439_v2  ;;  %1349 = vmatprep.subr.bf16.mxu1 %v1439_v2  ;;  %v1444_v7 = vld [vmem:[#allocation5 + $0x18] sm:$0xff]   ;;  %v1446_v9 = vld [vmem:[#allocation5 + $0x20] sm:$0xff]   ;;  %v1447_v10 = vld [vmem:[#allocation5 + $0x68] sm:$0xff]   ;;  %s1587_s6 = scalar_lea.vmem %s1958_s26, 2048  ;;  %s1666_s9 = smov [#allocation8]  }
  0x70   : > { %v1455_v11 = vld [vmem:[%s1858_s4 + $0x4] ss:$8 sps:$4 sm:$0xff]   ;;  %v1449_v14 = vld [vmem:[#allocation5 + $0x70] sm:$0xff]   ;;  %v1451_v16 = vld [vmem:[#allocation5 + $0x78] sm:$0xff]   ;;  %p1588_p1 = scmp.ne.s32.totalorder %s1958_s26, %s1587_s6  ;;  %s1591_s10 = sshll.u32 %s1666_s9, 4  ;;  %s1592_s10 = int_to_ptr.vmem [resolvable:$false] %s1591_s10 }
  0x71   : > { %v1458_v12 = vld [vmem:[%s1858_s4 + $0x84] ss:$8 sps:$4 sm:$0xff]   ;;  %579 = vmatprep.mubr.bf16.mxu0 %v1455_v11  ;;  %v1450_v15 = vld [vmem:[#allocation5 + $0x30] sm:$0xff]   ;;  %v1452_v17 = vld [vmem:[#allocation5 + $0x38] sm:$0xff]   ;;  %s1593_s25 = scalar_lea.vmem %s1592_s10, 4096  ;;  %p1594_p8 = scmp.lt.s32.totalorder %s1958_s26, %s1592_s10 }
  0x72   : > { %1239 = vmatpush3.bf16.msra.mxu0 %v1440_v3  ;;  %1357 = vmatpush3.bf16.msra.mxu1 %v1440_v3  ;;  %v1448_v13 = vld [vmem:[#allocation5 + $0x28] sm:$0xff]   ;;  %v1459_v20 = vld [vmem:[%s1858_s4 + $0x14] ss:$8 sps:$4 sm:$0xff]   ;;  %v1463_v22 = vld [vmem:[%s1858_s4 + $0x10] ss:$8 sps:$4 sm:$0xff]   ;;  %p1589_p2 = pnand %p1588_p1, %p1802_p4  ;;  %p1595_p13 = scmp.lt.s32.totalorder %s1593_s25, %s1587_s6 }
  0x73   : > { %1240 = vmatprep.subr.bf16.mxu0 %v1441_v4  ;;  %1350 = vmatprep.subr.bf16.mxu1 %v1441_v4  ;;  %v1453_v18 = vld [vmem:[%s1858_s4] ss:$8 sps:$4 sm:$0xff]   ;;  %v1461_v21 = vld [vmem:[%s1858_s4 + $0x94] ss:$8 sps:$4 sm:$0xff]   ;;  %v1464_v23 = vld [vmem:[%s1858_s4 + $0x90] ss:$8 sps:$4 sm:$0xff]  }
  0x74   : > { %643 = vmatprep.mubr.bf16.mxu1 %v1458_v12  ;;  %v1456_v19 = vld [vmem:[%s1858_s4 + $0x80] ss:$8 sps:$4 sm:$0xff]   ;;  %v1465_v24 = vld [vmem:[%s1858_s4 + $0x24] ss:$8 sps:$4 sm:$0xff]   ;;  %v1471_v28 = vld [vmem:[%s1858_s4 + $0x34] ss:$8 sps:$4 sm:$0xff]   ;;  %p1590_p6 = pneg %p1589_p2  ;;  %p1596_p3 = por %p1595_p13, %p1594_p8 }
  0x75   : > { %v1467_v25 = vld [vmem:[%s1858_s4 + $0xa4] ss:$8 sps:$4 sm:$0xff]   ;;  %v1469_v26 = vld [vmem:[%s1858_s4 + $0x20] ss:$8 sps:$4 sm:$0xff]   ;;  %v1473_v29 = vld [vmem:[%s1858_s4 + $0xb4] ss:$8 sps:$4 sm:$0xff]  }
  0x76   : > { %1241 = vmatpush3.bf16.msra.mxu0 %v1442_v5  ;;  %1358 = vmatpush3.bf16.msra.mxu1 %v1442_v5  ;;  %v1470_v27 = vld [vmem:[%s1858_s4 + $0xa0] ss:$8 sps:$4 sm:$0xff]   ;;  %v1475_v30 = vld [vmem:[%s1858_s4 + $0x30] ss:$8 sps:$4 sm:$0xff]   ;;  %v1477_v32 = vld [vmem:[%s1858_s4 + $0x44] ss:$8 sps:$4 sm:$0xff]   ;;  %p1597_p7 = pnand %p1596_p3, %p1590_p6 }
  0x77   : > { %1242 = vmatprep.subr.bf16.mxu0 %v1443_v6  ;;  %1351 = vmatprep.subr.bf16.mxu1 %v1443_v6  ;;  %v1476_v31 = vld [vmem:[%s1858_s4 + $0xb0] ss:$8 sps:$4 sm:$0xff]   ;;  %v1479_v33 = vld [vmem:[%s1858_s4 + $0xc4] ss:$8 sps:$4 sm:$0xff]   ;;  %v1481_v34 = vld [vmem:[%s1858_s4 + $0x40] ss:$8 sps:$4 sm:$0xff]  }
  0x78   : > { %v1482_v35 = vld [vmem:[%s1858_s4 + $0xc0] ss:$8 sps:$4 sm:$0xff]   ;;  %v1483_v36 = vld [vmem:[%s1858_s4 + $0x54] ss:$8 sps:$4 sm:$0xff]   ;;  %v1487_v38 = vld [vmem:[%s1858_s4 + $0x50] ss:$8 sps:$4 sm:$0xff]  }
  0x79   : > { %v1485_v37 = vld [vmem:[%s1858_s4 + $0xd4] ss:$8 sps:$4 sm:$0xff]   ;;  %v1488_v39 = vld [vmem:[%s1858_s4 + $0xd0] ss:$8 sps:$4 sm:$0xff]   ;;  %v1489_v40 = vld [vmem:[%s1858_s4 + $0x64] ss:$8 sps:$4 sm:$0xff]  }
  0x7a   : > { %1243 = vmatpush3.bf16.msra.mxu0 %v1444_v7  ;;  %1359 = vmatpush3.bf16.msra.mxu1 %v1444_v7  ;;  %v1491_v41 = vld [vmem:[%s1858_s4 + $0xe4] ss:$8 sps:$4 sm:$0xff]   ;;  %v1493_v42 = vld [vmem:[%s1858_s4 + $0x60] ss:$8 sps:$4 sm:$0xff]   ;;  %v1495_v44 = vld [vmem:[%s1858_s4 + $0x74] ss:$8 sps:$4 sm:$0xff]  }
  0x7b   : > { %1244 = vmatprep.subr.bf16.mxu0 %v1445_v8  ;;  %1352 = vmatprep.subr.bf16.mxu1 %v1445_v8  ;;  %v1494_v43 = vld [vmem:[%s1858_s4 + $0xe0] ss:$8 sps:$4 sm:$0xff]   ;;  %v1497_v45 = vld [vmem:[%s1858_s4 + $0xf4] ss:$8 sps:$4 sm:$0xff]   ;;  %v1499_v46 = vld [vmem:[%s1858_s4 + $0x70] ss:$8 sps:$4 sm:$0xff]  }
  0x7c   : > { %v1500_v47 = vld [vmem:[%s1858_s4 + $0xf0] ss:$8 sps:$4 sm:$0xff]   ;;  %v1900_v50 = vld [vmem:[#allocation7] ss:$0 sm:$0xff] }
  0x7e   : > { %1245 = vmatpush3.bf16.msra.mxu0 %v1446_v9  ;;  %1360 = vmatpush3.bf16.msra.mxu1 %v1446_v9 }
  0x7f   : > { %1246 = vmatprep.subr.bf16.mxu0 %v1447_v10  ;;  %1353 = vmatprep.subr.bf16.mxu1 %v1447_v10 }
  0x82   : > { %1247 = vmatpush3.bf16.msra.mxu0 %v1448_v13  ;;  %1361 = vmatpush3.bf16.msra.mxu1 %v1448_v13 }
  0x83   : > { %1248 = vmatprep.subr.bf16.mxu0 %v1449_v14  ;;  %1354 = vmatprep.subr.bf16.mxu1 %v1449_v14 }
  0x86   : > { %1249 = vmatpush3.bf16.msra.mxu0 %v1450_v15  ;;  %1362 = vmatpush3.bf16.msra.mxu1 %v1450_v15 }
  0x87   : > { %1250 = vmatprep.subr.bf16.mxu0 %v1451_v16  ;;  %1355 = vmatprep.subr.bf16.mxu1 %v1451_v16 }
  0x8a   : > { %1251 = vmatpush3.bf16.msra.mxu0 %v1452_v17  ;;  %1363 = vmatpush3.bf16.msra.mxu1 %v1452_v17 }
  0x8d   : > { %580 = vmatmul.mubr.bf16.vlgmr.msra.gmra.mrb[0].mxu0 %v1453_v18  ;;  %644 = vmatmul.mubr.bf16.vlgmr.msra.gmra.mrb[0].mxu1 %v1456_v19 }
  0x8e   : > { %587 = vmatprep.mubr.bf16.mxu0 %v1459_v20  ;;  %651 = vmatprep.mubr.bf16.mxu1 %v1461_v21 }
  0x95   : > { %588 = vmatmul.mubr.bf16.gmra.mrb[4].mxu0 %v1463_v22  ;;  %652 = vmatmul.mubr.bf16.gmra.mrb[4].mxu1 %v1464_v23 }
  0x96   : > { %595 = vmatprep.mubr.bf16.mxu0 %v1465_v24  ;;  %659 = vmatprep.mubr.bf16.mxu1 %v1467_v25 }
  0x9d   : > { %596 = vmatmul.mubr.bf16.gmra.mrb[8].mxu0 %v1469_v26  ;;  %660 = vmatmul.mubr.bf16.gmra.mrb[8].mxu1 %v1470_v27 }
  0x9e   : > { %603 = vmatprep.mubr.bf16.mxu0 %v1471_v28  ;;  %667 = vmatprep.mubr.bf16.mxu1 %v1473_v29 }
  0xa5   : > { %604 = vmatmul.mubr.bf16.gmra.mrb[12].mxu0 %v1475_v30  ;;  %668 = vmatmul.mubr.bf16.gmra.mrb[12].mxu1 %v1476_v31 }
  0xa6   : > { %611 = vmatprep.mubr.bf16.mxu0 %v1477_v32  ;;  %675 = vmatprep.mubr.bf16.mxu1 %v1479_v33 }
  0xad   : > { %612 = vmatmul.mubr.bf16.gmra.mrb[16].mxu0 %v1481_v34  ;;  %676 = vmatmul.mubr.bf16.gmra.mrb[16].mxu1 %v1482_v35 }
  0xae   : > { %619 = vmatprep.mubr.bf16.mxu0 %v1483_v36  ;;  %683 = vmatprep.mubr.bf16.mxu1 %v1485_v37 }
  0xb5   : > { %620 = vmatmul.mubr.bf16.gmra.mrb[20].mxu0 %v1487_v38  ;;  %684 = vmatmul.mubr.bf16.gmra.mrb[20].mxu1 %v1488_v39 }
  0xb6   : > { %627 = vmatprep.mubr.bf16.mxu0 %v1489_v40  ;;  %691 = vmatprep.mubr.bf16.mxu1 %v1491_v41 }
  0xbd   : > { %628 = vmatmul.mubr.bf16.gmra.mrb[24].mxu0 %v1493_v42  ;;  %692 = vmatmul.mubr.bf16.gmra.mrb[24].mxu1 %v1494_v43 }
  0xbe   : > { %635 = vmatprep.mubr.bf16.mxu0 %v1495_v44  ;;  %699 = vmatprep.mubr.bf16.mxu1 %v1497_v45 }
  0xc5   : > { %636 = vmatmul.mubr.bf16.gmra.mrb[28].mxu0 %v1499_v46  ;;  %700 = vmatmul.mubr.bf16.gmra.mrb[28].mxu1 %v1500_v47 }
 0x160   : > { %v1252_v48 = vpop.f32.mrb[0].mxu0  ;;  %v1300_v49 = vpop.f32.mrb[0].mxu1 }
 0x161   : > { %v1253_v51 = vpop.f32.mrb[1].mxu0  ;;  %v1301_v52 = vpop.f32.mrb[1].mxu1 }
 0x162   : > { %v1254_v53 = vadd.f32 %v1253_v51, %v1252_v48  ;;  %v1302_v54 = vadd.f32 %v1301_v52, %v1300_v49  ;;  %v1255_v55 = vpop.f32.mrb[2].mxu0  ;;  %v1303_v56 = vpop.f32.mrb[2].mxu1 }
 0x163   : > { %v1256_v57 = vpop.f32.mrb[3].mxu0  ;;  %v1304_v58 = vpop.f32.mrb[3].mxu1 }
 0x164   : > { %v582_v59 = vadd.f32 %v1254_v53, %v1900_v50  ;;  %v646_v60 = vadd.f32 %v1302_v54, %v1900_v50  ;;  %v1257_v61 = vadd.f32 %v1256_v57, %v1255_v55  ;;  %v1305_v62 = vadd.f32 %v1304_v58, %v1303_v56 }
 0x166   : > { %v585_v63 = vadd.f32 %v1257_v61, %v1900_v50  ;;  %v649_v0 = vadd.f32 %v1305_v62, %v1900_v50  ;;  %v708_v1 = vmax.f32 %v582_v59, 0.0  ;;  %v724_v2 = vmax.f32 %v646_v60, 0.0 }
 0x168   : > { %v709_v3 = vmax.f32 %v585_v63, 0.0  ;;  %v725_v4 = vmax.f32 %v649_v0, 0.0  ;;  %v1258_v5 = vpop.f32.mrb[4].mxu0  ;;  %v1306_v6 = vpop.f32.mrb[4].mxu1 }
 0x169   : > { %v1259_v7 = vpop.f32.mrb[5].mxu0  ;;  %v1307_v8 = vpop.f32.mrb[5].mxu1 }
 0x16a   : > { %v1144_v9 = vpack.c.bf16 %v709_v3, %v708_v1  ;;  %v1184_v10 = vpack.c.bf16 %v725_v4, %v724_v2  ;;  %v1260_v11 = vadd.f32 %v1259_v7, %v1258_v5  ;;  %v1308_v12 = vadd.f32 %v1307_v8, %v1306_v6  ;;  %v1261_v13 = vpop.f32.mrb[6].mxu0  ;;  %v1309_v14 = vpop.f32.mrb[6].mxu1 }
 0x16b   : > { %v1262_v15 = vpop.f32.mrb[7].mxu0  ;;  %v1310_v16 = vpop.f32.mrb[7].mxu1 }
 0x16c   : > { %1145 = vst [vmem:[%s1907_s20] sm:$0xff] %v1144_v9   ;;  %1228 = vst [vmem:[%s1907_s20 + $0x40] sm:$0xff] %v1184_v10   ;;  %v590_v17 = vadd.f32 %v1260_v11, %v1900_v50  ;;  %v654_v18 = vadd.f32 %v1308_v12, %v1900_v50  ;;  %v1263_v19 = vadd.f32 %v1262_v15, %v1261_v13 }
 0x16d   : > { %v1311_v20 = vadd.f32 %v1310_v16, %v1309_v14 }
 0x16e   : > { %v593_v21 = vadd.f32 %v1263_v19, %v1900_v50  ;;  %v710_v23 = vmax.f32 %v590_v17, 0.0  ;;  %v726_v24 = vmax.f32 %v654_v18, 0.0 }
 0x16f   : > { %v657_v22 = vadd.f32 %v1311_v20, %v1900_v50 }
 0x170   : > { %v711_v25 = vmax.f32 %v593_v21, 0.0  ;;  %v1264_v27 = vpop.f32.mrb[8].mxu0  ;;  %v1312_v28 = vpop.f32.mrb[8].mxu1 }
 0x171   : > { %v727_v26 = vmax.f32 %v657_v22, 0.0  ;;  %v1265_v29 = vpop.f32.mrb[9].mxu0  ;;  %v1313_v30 = vpop.f32.mrb[9].mxu1 }
 0x172   : > { %v1149_v31 = vpack.c.bf16 %v711_v25, %v710_v23  ;;  %v1266_v33 = vadd.f32 %v1265_v29, %v1264_v27  ;;  %v1314_v34 = vadd.f32 %v1313_v30, %v1312_v28  ;;  %v1267_v35 = vpop.f32.mrb[10].mxu0  ;;  %v1315_v36 = vpop.f32.mrb[10].mxu1 }
 0x173   : > { %v1189_v32 = vpack.c.bf16 %v727_v26, %v726_v24  ;;  %v1268_v37 = vpop.f32.mrb[11].mxu0  ;;  %v1316_v38 = vpop.f32.mrb[11].mxu1 }
 0x174   : > { %1221 = vst [vmem:[%s1907_s20 + $0x8] sm:$0xff] %v1149_v31   ;;  %v598_v39 = vadd.f32 %v1266_v33, %v1900_v50  ;;  %v662_v40 = vadd.f32 %v1314_v34, %v1900_v50  ;;  %v1269_v41 = vadd.f32 %v1268_v37, %v1267_v35  ;;  %v1317_v42 = vadd.f32 %v1316_v38, %v1315_v36 }
 0x175   : > { %1229 = vst [vmem:[%s1907_s20 + $0x48] sm:$0xff] %v1189_v32  }
 0x176   : > { %v601_v43 = vadd.f32 %v1269_v41, %v1900_v50  ;;  %v665_v44 = vadd.f32 %v1317_v42, %v1900_v50  ;;  %v712_v45 = vmax.f32 %v598_v39, 0.0  ;;  %v728_v46 = vmax.f32 %v662_v40, 0.0 }
 0x178   : > { %v713_v47 = vmax.f32 %v601_v43, 0.0  ;;  %v729_v48 = vmax.f32 %v665_v44, 0.0  ;;  %v1270_v49 = vpop.f32.mrb[12].mxu0  ;;  %v1318_v51 = vpop.f32.mrb[12].mxu1 }
 0x179   : > { %v1271_v52 = vpop.f32.mrb[13].mxu0  ;;  %v1319_v53 = vpop.f32.mrb[13].mxu1 }
 0x17a   : > { %v1154_v54 = vpack.c.bf16 %v713_v47, %v712_v45  ;;  %v1194_v55 = vpack.c.bf16 %v729_v48, %v728_v46  ;;  %v1272_v56 = vadd.f32 %v1271_v52, %v1270_v49  ;;  %v1320_v57 = vadd.f32 %v1319_v53, %v1318_v51  ;;  %v1273_v58 = vpop.f32.mrb[14].mxu0  ;;  %v1321_v59 = vpop.f32.mrb[14].mxu1 }
 0x17b   : > { %v1274_v60 = vpop.f32.mrb[15].mxu0  ;;  %v1322_v61 = vpop.f32.mrb[15].mxu1 }
 0x17c   : > { %1222 = vst [vmem:[%s1907_s20 + $0x10] sm:$0xff] %v1154_v54   ;;  %1230 = vst [vmem:[%s1907_s20 + $0x50] sm:$0xff] %v1194_v55   ;;  %v606_v62 = vadd.f32 %v1272_v56, %v1900_v50  ;;  %v670_v63 = vadd.f32 %v1320_v57, %v1900_v50  ;;  %v1275_v0 = vadd.f32 %v1274_v60, %v1273_v58 }
 0x17d   : > { %v1323_v1 = vadd.f32 %v1322_v61, %v1321_v59 }
 0x17e   : > { %v609_v2 = vadd.f32 %v1275_v0, %v1900_v50  ;;  %v714_v4 = vmax.f32 %v606_v62, 0.0  ;;  %v730_v5 = vmax.f32 %v670_v63, 0.0 }
 0x17f   : > { %v673_v3 = vadd.f32 %v1323_v1, %v1900_v50 }
 0x180   : > { %v715_v6 = vmax.f32 %v609_v2, 0.0  ;;  %v1276_v8 = vpop.f32.mrb[16].mxu0  ;;  %v1324_v9 = vpop.f32.mrb[16].mxu1 }
 0x181   : > { %v731_v7 = vmax.f32 %v673_v3, 0.0  ;;  %v1277_v10 = vpop.f32.mrb[17].mxu0  ;;  %v1325_v11 = vpop.f32.mrb[17].mxu1 }
 0x182   : > { %v1159_v12 = vpack.c.bf16 %v715_v6, %v714_v4  ;;  %v1278_v14 = vadd.f32 %v1277_v10, %v1276_v8  ;;  %v1326_v15 = vadd.f32 %v1325_v11, %v1324_v9  ;;  %v1279_v16 = vpop.f32.mrb[18].mxu0  ;;  %v1327_v17 = vpop.f32.mrb[18].mxu1 }
 0x183   : > { %v1199_v13 = vpack.c.bf16 %v731_v7, %v730_v5  ;;  %v1280_v18 = vpop.f32.mrb[19].mxu0  ;;  %v1328_v19 = vpop.f32.mrb[19].mxu1 }
 0x184   : > { %1223 = vst [vmem:[%s1907_s20 + $0x18] sm:$0xff] %v1159_v12   ;;  %v614_v20 = vadd.f32 %v1278_v14, %v1900_v50  ;;  %v678_v21 = vadd.f32 %v1326_v15, %v1900_v50  ;;  %v1281_v22 = vadd.f32 %v1280_v18, %v1279_v16  ;;  %v1329_v23 = vadd.f32 %v1328_v19, %v1327_v17 }
 0x185   : > { %1231 = vst [vmem:[%s1907_s20 + $0x58] sm:$0xff] %v1199_v13  }
 0x186   : > { %v617_v24 = vadd.f32 %v1281_v22, %v1900_v50  ;;  %v681_v25 = vadd.f32 %v1329_v23, %v1900_v50  ;;  %v716_v26 = vmax.f32 %v614_v20, 0.0  ;;  %v732_v27 = vmax.f32 %v678_v21, 0.0 }
 0x188   : > { %v717_v28 = vmax.f32 %v617_v24, 0.0  ;;  %v733_v29 = vmax.f32 %v681_v25, 0.0  ;;  %v1282_v30 = vpop.f32.mrb[20].mxu0  ;;  %v1330_v31 = vpop.f32.mrb[20].mxu1 }
 0x189   : > { %v1283_v32 = vpop.f32.mrb[21].mxu0  ;;  %v1331_v33 = vpop.f32.mrb[21].mxu1 }
 0x18a   : > { %v1164_v34 = vpack.c.bf16 %v717_v28, %v716_v26  ;;  %v1204_v35 = vpack.c.bf16 %v733_v29, %v732_v27  ;;  %v1284_v36 = vadd.f32 %v1283_v32, %v1282_v30  ;;  %v1332_v37 = vadd.f32 %v1331_v33, %v1330_v31  ;;  %v1285_v38 = vpop.f32.mrb[22].mxu0  ;;  %v1333_v39 = vpop.f32.mrb[22].mxu1 }
 0x18b   : > { %v1286_v40 = vpop.f32.mrb[23].mxu0  ;;  %v1334_v41 = vpop.f32.mrb[23].mxu1 }
 0x18c   : > { %1224 = vst [vmem:[%s1907_s20 + $0x20] sm:$0xff] %v1164_v34   ;;  %1232 = vst [vmem:[%s1907_s20 + $0x60] sm:$0xff] %v1204_v35   ;;  %v622_v42 = vadd.f32 %v1284_v36, %v1900_v50  ;;  %v686_v43 = vadd.f32 %v1332_v37, %v1900_v50  ;;  %v1287_v44 = vadd.f32 %v1286_v40, %v1285_v38 }
 0x18d   : > { %v1335_v45 = vadd.f32 %v1334_v41, %v1333_v39 }
 0x18e   : > { %v625_v46 = vadd.f32 %v1287_v44, %v1900_v50  ;;  %v718_v48 = vmax.f32 %v622_v42, 0.0  ;;  %v734_v49 = vmax.f32 %v686_v43, 0.0 }
 0x18f   : > { %v689_v47 = vadd.f32 %v1335_v45, %v1900_v50 }
 0x190   : > { %v719_v51 = vmax.f32 %v625_v46, 0.0  ;;  %v1288_v53 = vpop.f32.mrb[24].mxu0  ;;  %v1336_v54 = vpop.f32.mrb[24].mxu1 }
 0x191   : > { %v735_v52 = vmax.f32 %v689_v47, 0.0  ;;  %v1289_v55 = vpop.f32.mrb[25].mxu0  ;;  %v1337_v56 = vpop.f32.mrb[25].mxu1 }
 0x192   : > { %v1169_v57 = vpack.c.bf16 %v719_v51, %v718_v48  ;;  %v1290_v59 = vadd.f32 %v1289_v55, %v1288_v53  ;;  %v1338_v60 = vadd.f32 %v1337_v56, %v1336_v54  ;;  %v1291_v61 = vpop.f32.mrb[26].mxu0  ;;  %v1339_v62 = vpop.f32.mrb[26].mxu1 }
 0x193   : > { %v1209_v58 = vpack.c.bf16 %v735_v52, %v734_v49  ;;  %v1292_v63 = vpop.f32.mrb[27].mxu0  ;;  %v1340_v0 = vpop.f32.mrb[27].mxu1 }
 0x194   : > { %1225 = vst [vmem:[%s1907_s20 + $0x28] sm:$0xff] %v1169_v57   ;;  %v630_v1 = vadd.f32 %v1290_v59, %v1900_v50  ;;  %v694_v2 = vadd.f32 %v1338_v60, %v1900_v50  ;;  %v1293_v3 = vadd.f32 %v1292_v63, %v1291_v61  ;;  %v1341_v4 = vadd.f32 %v1340_v0, %v1339_v62 }
 0x195   : > { %1233 = vst [vmem:[%s1907_s20 + $0x68] sm:$0xff] %v1209_v58  }
 0x196   : > { %v633_v5 = vadd.f32 %v1293_v3, %v1900_v50  ;;  %v697_v6 = vadd.f32 %v1341_v4, %v1900_v50  ;;  %v720_v7 = vmax.f32 %v630_v1, 0.0  ;;  %v736_v8 = vmax.f32 %v694_v2, 0.0 }
 0x198   : > { %v721_v9 = vmax.f32 %v633_v5, 0.0  ;;  %v737_v10 = vmax.f32 %v697_v6, 0.0  ;;  %v1294_v11 = vpop.f32.mrb[28].mxu0  ;;  %v1342_v12 = vpop.f32.mrb[28].mxu1 }
 0x199   : > { %v1295_v13 = vpop.f32.mrb[29].mxu0  ;;  %v1343_v14 = vpop.f32.mrb[29].mxu1 }
 0x19a   : > { %v1174_v15 = vpack.c.bf16 %v721_v9, %v720_v7  ;;  %v1214_v16 = vpack.c.bf16 %v737_v10, %v736_v8  ;;  %v1296_v17 = vadd.f32 %v1295_v13, %v1294_v11  ;;  %v1344_v18 = vadd.f32 %v1343_v14, %v1342_v12  ;;  %v1297_v19 = vpop.f32.mrb[30].mxu0  ;;  %v1345_v20 = vpop.f32.mrb[30].mxu1 }
 0x19b   : > { %v1298_v21 = vpop.f32.mrb[31].mxu0  ;;  %v1346_v22 = vpop.f32.mrb[31].mxu1 }
 0x19c   : > { %1226 = vst [vmem:[%s1907_s20 + $0x30] sm:$0xff] %v1174_v15   ;;  %1234 = vst [vmem:[%s1907_s20 + $0x70] sm:$0xff] %v1214_v16   ;;  %v638_v23 = vadd.f32 %v1296_v17, %v1900_v50  ;;  %v702_v24 = vadd.f32 %v1344_v18, %v1900_v50  ;;  %v1299_v25 = vadd.f32 %v1298_v21, %v1297_v19 }
 0x19d   : > { %v1347_v26 = vadd.f32 %v1346_v22, %v1345_v20 }
 0x19e   : > { %v641_v27 = vadd.f32 %v1299_v25, %v1900_v50  ;;  %v722_v29 = vmax.f32 %v638_v23, 0.0  ;;  %v738_v30 = vmax.f32 %v702_v24, 0.0 }
 0x19f   : > { %v705_v28 = vadd.f32 %v1347_v26, %v1900_v50 }
 0x1a0   : > { %v723_v31 = vmax.f32 %v641_v27, 0.0 }
 0x1a1   : > { %v739_v32 = vmax.f32 %v705_v28, 0.0 }
 0x1a2   : > { %v1179_v33 = vpack.c.bf16 %v723_v31, %v722_v29 }
 0x1a3   : > { %v1219_v34 = vpack.c.bf16 %v739_v32, %v738_v30 }
 0x1a4   : > { %1227 = vst [vmem:[%s1907_s20 + $0x38] sm:$0xff] %v1179_v33  }
 0x1a5   : > { %1235 = vst [vmem:[%s1907_s20 + $0x78] sm:$0xff] %v1219_v34  }
 0x1a6   : > { %1600 = shalt.err (!%p1597_p7)
}
 0x1a7   : > { %s1601_s11 = scalar_lea.hbm %s1956_s23, 2048  ;;  %s1605_s29 = scalar_lea.hbm %s2006_s3, 8192 }
 0x1a8   : > { %p1602_p9 = scmp.ne.s32.totalorder %s1956_s23, %s1601_s11  ;;  %p1606_p5 = scmp.lt.u32.totalorder %s1956_s23, %s2006_s3 }
 0x1a9   : > { %p1607_p10 = scmp.lt.u32.totalorder %s1605_s29, %s1601_s11  ;;  %p1609_p1 = scmp.lt.u32.totalorder %s1601_s11, %s1956_s23 }
 0x1aa   : > { %p1603_p12 = pnand %p1602_p9, %p1802_p4 }
 0x1ab   : > { %p1608_p11 = por %p1607_p10, %p1606_p5 }
 0x1ac   : > { %p1604_p0 = pneg %p1603_p12 }
 0x1ad   : > { %p1610_p2 = por %p1609_p1, %p1608_p11 }
 0x1af   : > { %p1611_p6 = pnand %p1610_p2, %p1604_p0 }
 0x1b1   : > { %1614 = shalt.err (!%p1611_p6)
}
 0x1b2   : > { %s1667_s18 = smov 64   ;;  %s1668_s20 = smov 4  }
 0x1b3   : > { %1374 = dma.vmem_to_hbm [thread:$0]  (%p1802_p4), %s1958_s26, 2048, %s1956_s23, %s901_s16, %s1667_s18, %s1667_s18, %s1668_s20  }
 0x1b4 PF: > { %p1396_p8 = scmp.ge.s32.totalorder %s1657_s15, 2  ;;  %s929_s21 = sand.u32 1, %s1645_s12  }
 0x1b5   : > { %p2021_p13 = scmp.ne.s32.totalorder %s2011_s19, 0  ;;  %s930_s27 = scalar_lea.sflag [#allocation4], %s929_s21 }
 0x1b7   : > { %p1388_p3 = pnand %p1396_p8, %p2021_p13 }
 0x1b9   : > { %1640 = dma.done.wait (!%p1388_p3), %s930_s27, 2048  }
 0x1ba   : > { %1642 = vsyncadd (!%p1388_p3), %s930_s27, 4294965248  ;;  %p17_p7 = scmp.ge.s32.totalorder %s1792_s5, 6   ;;  %s2022_s12 = smov %s1649_s13 }
 0x1bb   : > { %s2023_s13 = smov %s1653_s14  ;;  %s2024_s14 = smov %s1808_s8 }
 0x1bc   : > { %s2025_s15 = smov %s1792_s5  ;;  %19 = sbr.rel (!%p17_p7) target bundleno = 6 (0x6), region = 85 }
 0x1c3   :  { %935 = vsyncpa [#allocation3], 1 }
 0x1c4   :  { %937 = vsyncpa [#allocation3 + $0x1], 1 }
 0x1c5   :  { %938 = vsyncpa [#allocation6], 1 }
 0x1c6   :  { %939 = vsyncpa [#allocation4], 1 }
 0x1c7   :  { %941 = vsyncpa [#allocation4 + $0x1], 1 }

// kernel: dqn_forward.5
= control target key start
LH: loop header
LB: loop body
LE: loop exit
PB: predicated region body
PF: predicated region fallthrough
CT: control target
= control target key end

     0   :  { %8 = vsyncpa [#allocation3], 0  ;;  %s1630_s0 = inlined_call_operand.hbm [shape: bf16[176,512], index: 0, kind: input, shape index: {}]   ;;  %s1631_s1 = inlined_call_operand.hbm [shape: bf16[512,128], index: 1, kind: input, shape index: {}]   ;;  %s1632_s2 = inlined_call_operand.hbm [shape: f32[1,128], index: 2, kind: input, shape index: {}]   ;;  %s1633_s3 = inlined_call_operand.hbm [shape: bf16[176,128], index: 3, kind: output, shape index: {}]  }
   0x1   :  { %9 = vsyncpa [#allocation6], 0 }
   0x2   :  { %10 = vsyncpa [#allocation4], 0  ;;  %s1524_s12 = smov [#allocation5]   ;;  %s1430_s16 = scalar_lea.hbm %s1631_s1, 4096 }
   0x3   :  { %s28_s13 = sshll.u32 %s1524_s12, 4  ;;  %p1431_p0 = scmp.ne.s32.totalorder %s1631_s1, %s1430_s16  ;;  %s29_s13 = int_to_ptr.vmem [resolvable:$true] %s28_s13 }
   0x4   :  { %p1434_p1 = scmp.lt.u32.totalorder %s1430_s16, %s1631_s1 }
   0x6   :  { %p1436_p2 = pnand %p1434_p1, %p1431_p0 }
   0x8   :  { %1439 = shalt.err (!%p1436_p2)
}
   0x9   :  { %s1440_s21 = scalar_lea.vmem %s29_s13, 4096  ;;  %p1445_p4 = scmp.lt.s32.totalorder %s29_s13, %s29_s13 }
   0xa   :  { %p1441_p3 = scmp.ne.s32.totalorder %s29_s13, %s1440_s21  ;;  %p1446_p5 = scmp.lt.s32.totalorder %s1440_s21, %s1440_s21 }
   0xc   :  { %p1447_p6 = por %p1446_p5, %p1445_p4 }
   0xe   :  { %p1448_p7 = pnand %p1447_p6, %p1441_p3 }
  0x10   :  { %1451 = shalt.err (!%p1448_p7)
}
  0x11   :  { %s1525_s22 = smov 64   ;;  %s1526_s23 = smov 4  }
  0x12   :  { %34 = dma.hbm_to_vmem [thread:$0]  %s1631_s1, 4096, %s29_s13, [#allocation6], %s1525_s22, %s1525_s22, %s1526_s23  }
  0x13   :  { %s1527_s26 = smov [#allocation2]   ;;  %s1452_s30 = scalar_lea.hbm %s1630_s0, 5632 }
  0x14   :  { %s16_s27 = sshll.u32 %s1527_s26, 4  ;;  %p1453_p8 = scmp.ne.s32.totalorder %s1630_s0, %s1452_s30  ;;  %s17_s27 = int_to_ptr.vmem [resolvable:$true] %s16_s27 }
  0x15   :  { %p1456_p9 = scmp.lt.u32.totalorder %s1452_s30, %s1630_s0 }
  0x17   :  { %p1458_p10 = pnand %p1456_p9, %p1453_p8 }
  0x19   :  { %1461 = shalt.err (!%p1458_p10)
}
  0x1a   :  { %s1462_s8 = scalar_lea.vmem %s17_s27, 5632  ;;  %p1467_p12 = scmp.lt.s32.totalorder %s17_s27, %s17_s27 }
  0x1b   :  { %p1463_p11 = scmp.ne.s32.totalorder %s17_s27, %s1462_s8  ;;  %p1468_p13 = scmp.lt.s32.totalorder %s1462_s8, %s1462_s8 }
  0x1d   :  { %p1469_p0 = por %p1468_p13, %p1467_p12 }
  0x1f   :  { %p1470_p1 = pnand %p1469_p0, %p1463_p11 }
  0x21   :  { %1473 = shalt.err (!%p1470_p1)
}
  0x22   :  { %s1528_s1 = smov 256   ;;  %s1529_s9 = smov 16  }
  0x23   :  { %22 = dma.hbm_to_vmem [thread:$0]  %s1630_s0, 5632, %s17_s27, [#allocation3], %s1528_s1, %s1528_s1, %s1529_s9  }
  0x24   :  { %s1530_s12 = smov [#allocation7]   ;;  %s1474_s16 = scalar_lea.hbm %s1632_s2, 16 }
  0x25   :  { %s41_s13 = sshll.u32 %s1530_s12, 4  ;;  %p1475_p2 = scmp.ne.s32.totalorder %s1632_s2, %s1474_s16  ;;  %s42_s13 = int_to_ptr.vmem [resolvable:$true] %s41_s13 }
  0x26   :  { %p1478_p3 = scmp.lt.u32.totalorder %s1474_s16, %s1632_s2 }
  0x28   :  { %p1480_p4 = pnand %p1478_p3, %p1475_p2 }
  0x2a   :  { %1483 = shalt.err (!%p1480_p4)
}
  0x2b   :  { %s1484_s21 = scalar_lea.vmem %s42_s13, 16  ;;  %s1488_s0 = scalar_lea.vmem %s42_s13, 32 }
  0x2c   :  { %p1485_p5 = scmp.ne.s32.totalorder %s42_s13, %s1484_s21  ;;  %p1489_p6 = scmp.lt.s32.totalorder %s42_s13, %s42_s13 }
  0x2d   :  { %p1490_p7 = scmp.lt.s32.totalorder %s1488_s0, %s1484_s21 }
  0x2f   :  { %p1491_p8 = por %p1490_p7, %p1489_p6 }
  0x31   :  { %p1492_p9 = pnand %p1491_p8, %p1485_p5 }
  0x33   :  { %1495 = shalt.err (!%p1492_p9)
}
  0x34   :  { %44 = dma.hbm_to_vmem [thread:$0]  %s1632_s2, 16, %s42_s13, [#allocation6]  }
  0x35   :  { %1518 = dma.done.wait [#allocation3], 5632  }
  0x36   :  { %1519 = vsyncadd [#allocation3], 4294961664 }
  0x37   :  { %1520 = dma.done.wait [#allocation6], 4112  }
  0x38   :  { %1521 = vsyncadd [#allocation6], 4294963184  ;;  %v1332_v0 = vld [vmem:[#allocation5 + $0x40] sm:$0xff]   ;;  %v1336_v4 = vld [vmem:[#allocation5 + $0x48] sm:$0xff]   ;;  %s1531_s2 = smov [#allocation8]  }
  0x39   :  { %v1333_v1 = vld [vmem:[#allocation5 + $0xc0] sm:$0xff]   ;;  %1160 = vmatprep.subr.bf16.mxu0 %v1332_v0  ;;  %v1337_v5 = vld [vmem:[#allocation5 + $0xc8] sm:$0xff]   ;;  %v1340_v8 = vld [vmem:[#allocation5 + $0x50] sm:$0xff]   ;;  %s961_s26 = sshll.u32 %s1531_s2, 4  ;;  %s962_s26 = int_to_ptr.vmem [resolvable:$true] %s961_s26 }
  0x3a   :  { %v1334_v2 = vld [vmem:[#allocation5] sm:$0xff]   ;;  %1242 = vmatprep.subr.bf16.mxu1 %v1333_v1  ;;  %v1338_v6 = vld [vmem:[#allocation5 + $0x8] sm:$0xff]   ;;  %v1341_v9 = vld [vmem:[#allocation5 + $0xd0] sm:$0xff]   ;;  %s1496_s27 = scalar_lea.vmem %s962_s26, 1408  ;;  %p1501_p11 = scmp.lt.s32.totalorder %s962_s26, %s962_s26 }
  0x3b   :  { %v1335_v3 = vld [vmem:[#allocation5 + $0x80] sm:$0xff]   ;;  %1161 = vmatpush3.bf16.msra.mxu0 %v1334_v2  ;;  %v1339_v7 = vld [vmem:[#allocation5 + $0x88] sm:$0xff]   ;;  %v1342_v10 = vld [vmem:[#allocation5 + $0x10] sm:$0xff]   ;;  %p1497_p10 = scmp.ne.s32.totalorder %s962_s26, %s1496_s27  ;;  %p1502_p12 = scmp.lt.s32.totalorder %s1496_s27, %s1496_s27 }
  0x3c   :  { %1243 = vmatpush3.bf16.msra.mxu1 %v1335_v3  ;;  %1162 = vmatprep.subr.bf16.mxu0 %v1336_v4  ;;  %v1343_v11 = vld [vmem:[#allocation5 + $0x90] sm:$0xff]   ;;  %v1344_v12 = vld [vmem:[#allocation5 + $0x58] sm:$0xff]   ;;  %v1348_v16 = vld [vmem:[#allocation5 + $0x60] sm:$0xff]  }
  0x3d   :  { %1244 = vmatprep.subr.bf16.mxu1 %v1337_v5  ;;  %v1345_v13 = vld [vmem:[#allocation5 + $0xd8] sm:$0xff]   ;;  %v1349_v17 = vld [vmem:[#allocation5 + $0xe0] sm:$0xff]   ;;  %v1352_v20 = vld [vmem:[#allocation5 + $0x68] sm:$0xff]   ;;  %p1503_p13 = por %p1502_p12, %p1501_p11 }
  0x3e   :  { %v1346_v14 = vld [vmem:[#allocation5 + $0x18] sm:$0xff]   ;;  %v1350_v18 = vld [vmem:[#allocation5 + $0x20] sm:$0xff]   ;;  %v1353_v21 = vld [vmem:[#allocation5 + $0xe8] sm:$0xff]  }
  0x3f   :  { %1163 = vmatpush3.bf16.msra.mxu0 %v1338_v6  ;;  %v1347_v15 = vld [vmem:[#allocation5 + $0x98] sm:$0xff]   ;;  %v1351_v19 = vld [vmem:[#allocation5 + $0xa0] sm:$0xff]   ;;  %v1354_v22 = vld [vmem:[#allocation5 + $0x28] sm:$0xff]   ;;  %p1504_p0 = pnand %p1503_p13, %p1497_p10 }
  0x40   :  { %1245 = vmatpush3.bf16.msra.mxu1 %v1339_v7  ;;  %1164 = vmatprep.subr.bf16.mxu0 %v1340_v8  ;;  %v1355_v23 = vld [vmem:[#allocation5 + $0xa8] sm:$0xff]   ;;  %v1356_v24 = vld [vmem:[#allocation5 + $0x70] sm:$0xff]   ;;  %v1360_v28 = vld [vmem:[#allocation5 + $0x78] sm:$0xff]  }
  0x41   :  { %1246 = vmatprep.subr.bf16.mxu1 %v1341_v9  ;;  %v1357_v25 = vld [vmem:[#allocation5 + $0xf0] sm:$0xff]   ;;  %v1361_v29 = vld [vmem:[#allocation5 + $0xf8] sm:$0xff]  }
  0x42   :  { %v1358_v26 = vld [vmem:[#allocation5 + $0x30] sm:$0xff]   ;;  %v1362_v30 = vld [vmem:[#allocation5 + $0x38] sm:$0xff]  }
  0x43   :  { %1165 = vmatpush3.bf16.msra.mxu0 %v1342_v10  ;;  %v1359_v27 = vld [vmem:[#allocation5 + $0xb0] sm:$0xff]   ;;  %v1363_v31 = vld [vmem:[#allocation5 + $0xb8] sm:$0xff]  }
  0x44   :  { %1247 = vmatpush3.bf16.msra.mxu1 %v1343_v11  ;;  %1166 = vmatprep.subr.bf16.mxu0 %v1344_v12  ;;  %v1364_v32 = vld [vmem:[#allocation2] ss:$16 sps:$4 sm:$0xff]   ;;  %v1366_v33 = vld [vmem:[#allocation2 + $0x4] ss:$16 sps:$4 sm:$0xff]   ;;  %v1367_v34 = vld [vmem:[#allocation2 + $0x8] ss:$16 sps:$4 sm:$0xff]  }
  0x45   :  { %1248 = vmatprep.subr.bf16.mxu1 %v1345_v13  ;;  %v1369_v35 = vld [vmem:[#allocation2 + $0xc] ss:$16 sps:$4 sm:$0xff]   ;;  %614 = vmatprep.mubr.bf16.mxu0 %v1366_v33  ;;  %v1370_v36 = vld [vmem:[#allocation2 + $0x24] ss:$16 sps:$4 sm:$0xff]   ;;  %v1374_v38 = vld [vmem:[#allocation2 + $0x20] ss:$16 sps:$4 sm:$0xff]  }
  0x46   :  { %735 = vmatprep.mubr.bf16.mxu1 %v1369_v35  ;;  %v1372_v37 = vld [vmem:[#allocation2 + $0x2c] ss:$16 sps:$4 sm:$0xff]   ;;  %v1375_v39 = vld [vmem:[#allocation2 + $0x28] ss:$16 sps:$4 sm:$0xff]   ;;  %v1376_v40 = vld [vmem:[#allocation2 + $0x44] ss:$16 sps:$4 sm:$0xff]  }
  0x47   :  { %1167 = vmatpush3.bf16.msra.mxu0 %v1346_v14  ;;  %v1378_v41 = vld [vmem:[#allocation2 + $0x4c] ss:$16 sps:$4 sm:$0xff]   ;;  %v1380_v42 = vld [vmem:[#allocation2 + $0x40] ss:$16 sps:$4 sm:$0xff]   ;;  %v1381_v43 = vld [vmem:[#allocation2 + $0x48] ss:$16 sps:$4 sm:$0xff]  }
  0x48   :  { %1249 = vmatpush3.bf16.msra.mxu1 %v1347_v15  ;;  %1168 = vmatprep.subr.bf16.mxu0 %v1348_v16  ;;  %v1382_v44 = vld [vmem:[#allocation2 + $0x64] ss:$16 sps:$4 sm:$0xff]   ;;  %v1384_v45 = vld [vmem:[#allocation2 + $0x6c] ss:$16 sps:$4 sm:$0xff]   ;;  %v1386_v46 = vld [vmem:[#allocation2 + $0x60] ss:$16 sps:$4 sm:$0xff]  }
  0x49   :  { %1250 = vmatprep.subr.bf16.mxu1 %v1349_v17  ;;  %v1387_v47 = vld [vmem:[#allocation2 + $0x68] ss:$16 sps:$4 sm:$0xff]   ;;  %v1388_v48 = vld [vmem:[#allocation2 + $0x84] ss:$16 sps:$4 sm:$0xff]   ;;  %v1390_v49 = vld [vmem:[#allocation2 + $0x8c] ss:$16 sps:$4 sm:$0xff]  }
  0x4a   :  { %v1392_v50 = vld [vmem:[#allocation2 + $0x80] ss:$16 sps:$4 sm:$0xff]   ;;  %v1393_v51 = vld [vmem:[#allocation2 + $0x88] ss:$16 sps:$4 sm:$0xff]   ;;  %v1394_v52 = vld [vmem:[#allocation2 + $0xa4] ss:$16 sps:$4 sm:$0xff]  }
  0x4b   :  { %1169 = vmatpush3.bf16.msra.mxu0 %v1350_v18  ;;  %v1396_v53 = vld [vmem:[#allocation2 + $0xac] ss:$16 sps:$4 sm:$0xff]   ;;  %v1398_v54 = vld [vmem:[#allocation2 + $0xa0] ss:$16 sps:$4 sm:$0xff]   ;;  %v1399_v55 = vld [vmem:[#allocation2 + $0xa8] ss:$16 sps:$4 sm:$0xff]  }
  0x4c   :  { %1251 = vmatpush3.bf16.msra.mxu1 %v1351_v19  ;;  %1170 = vmatprep.subr.bf16.mxu0 %v1352_v20  ;;  %v1400_v56 = vld [vmem:[#allocation2 + $0xc4] ss:$16 sps:$4 sm:$0xff]   ;;  %v1402_v57 = vld [vmem:[#allocation2 + $0xcc] ss:$16 sps:$4 sm:$0xff]   ;;  %v1404_v58 = vld [vmem:[#allocation2 + $0xc0] ss:$16 sps:$4 sm:$0xff]  }
  0x4d   :  { %1252 = vmatprep.subr.bf16.mxu1 %v1353_v21  ;;  %v1405_v59 = vld [vmem:[#allocation2 + $0xc8] ss:$16 sps:$4 sm:$0xff]   ;;  %v1406_v60 = vld [vmem:[#allocation2 + $0xe4] ss:$16 sps:$4 sm:$0xff]   ;;  %v1408_v61 = vld [vmem:[#allocation2 + $0xec] ss:$16 sps:$4 sm:$0xff]  }
  0x4e   :  { %v1410_v62 = vld [vmem:[#allocation2 + $0xe0] ss:$16 sps:$4 sm:$0xff]   ;;  %v1411_v63 = vld [vmem:[#allocation2 + $0xe8] ss:$16 sps:$4 sm:$0xff]   ;;  %v1412_v0 = vld [vmem:[#allocation2 + $0x104] ss:$16 sps:$4 sm:$0xff]  }
  0x4f   :  { %1171 = vmatpush3.bf16.msra.mxu0 %v1354_v22  ;;  %v1414_v1 = vld [vmem:[#allocation2 + $0x10c] ss:$16 sps:$4 sm:$0xff]   ;;  %v1416_v2 = vld [vmem:[#allocation2 + $0x100] ss:$16 sps:$4 sm:$0xff]   ;;  %v1417_v3 = vld [vmem:[#allocation2 + $0x108] ss:$16 sps:$4 sm:$0xff]  }
  0x50   :  { %1253 = vmatpush3.bf16.msra.mxu1 %v1355_v23  ;;  %1172 = vmatprep.subr.bf16.mxu0 %v1356_v24  ;;  %v1418_v4 = vld [vmem:[#allocation2 + $0x124] ss:$16 sps:$4 sm:$0xff]   ;;  %v1420_v5 = vld [vmem:[#allocation2 + $0x12c] ss:$16 sps:$4 sm:$0xff]   ;;  %v1422_v6 = vld [vmem:[#allocation2 + $0x120] ss:$16 sps:$4 sm:$0xff]  }
  0x51   :  { %1254 = vmatprep.subr.bf16.mxu1 %v1357_v25  ;;  %v1423_v7 = vld [vmem:[#allocation2 + $0x128] ss:$16 sps:$4 sm:$0xff]   ;;  %v1424_v8 = vld [vmem:[#allocation2 + $0x144] ss:$16 sps:$4 sm:$0xff]   ;;  %v1426_v9 = vld [vmem:[#allocation2 + $0x14c] ss:$16 sps:$4 sm:$0xff]  }
  0x52   :  { %v1428_v10 = vld [vmem:[#allocation2 + $0x140] ss:$16 sps:$4 sm:$0xff]   ;;  %v1429_v11 = vld [vmem:[#allocation2 + $0x148] ss:$16 sps:$4 sm:$0xff]  }
  0x53   :  { %1173 = vmatpush3.bf16.msra.mxu0 %v1358_v26  ;;  %v1591_v14 = vld [vmem:[#allocation7] ss:$0 sm:$0xff] }
  0x54   :  { %1255 = vmatpush3.bf16.msra.mxu1 %v1359_v27  ;;  %1174 = vmatprep.subr.bf16.mxu0 %v1360_v28 }
  0x55   :  { %1256 = vmatprep.subr.bf16.mxu1 %v1361_v29 }
  0x57   :  { %1175 = vmatpush3.bf16.msra.mxu0 %v1362_v30 }
  0x58   :  { %1257 = vmatpush3.bf16.msra.mxu1 %v1363_v31 }
  0x5a   :  { %615 = vmatmul.mubr.bf16.vlgmr.msra.gmra.mrb[0].mxu0 %v1364_v32 }
  0x5b   :  { %736 = vmatmul.mubr.bf16.vlgmr.msra.gmra.mrb[0].mxu1 %v1367_v34  ;;  %622 = vmatprep.mubr.bf16.mxu0 %v1370_v36 }
  0x5c   :  { %743 = vmatprep.mubr.bf16.mxu1 %v1372_v37 }
  0x62   :  { %623 = vmatmul.mubr.bf16.gmra.mrb[4].mxu0 %v1374_v38 }
  0x63   :  { %744 = vmatmul.mubr.bf16.gmra.mrb[4].mxu1 %v1375_v39  ;;  %630 = vmatprep.mubr.bf16.mxu0 %v1376_v40 }
  0x64   :  { %751 = vmatprep.mubr.bf16.mxu1 %v1378_v41 }
  0x6a   :  { %631 = vmatmul.mubr.bf16.gmra.mrb[8].mxu0 %v1380_v42 }
  0x6b   :  { %752 = vmatmul.mubr.bf16.gmra.mrb[8].mxu1 %v1381_v43  ;;  %638 = vmatprep.mubr.bf16.mxu0 %v1382_v44 }
  0x6c   :  { %759 = vmatprep.mubr.bf16.mxu1 %v1384_v45 }
  0x72   :  { %639 = vmatmul.mubr.bf16.gmra.mrb[12].mxu0 %v1386_v46 }
  0x73   :  { %760 = vmatmul.mubr.bf16.gmra.mrb[12].mxu1 %v1387_v47  ;;  %646 = vmatprep.mubr.bf16.mxu0 %v1388_v48 }
  0x74   :  { %767 = vmatprep.mubr.bf16.mxu1 %v1390_v49 }
  0x7a   :  { %647 = vmatmul.mubr.bf16.gmra.mrb[16].mxu0 %v1392_v50 }
  0x7b   :  { %768 = vmatmul.mubr.bf16.gmra.mrb[16].mxu1 %v1393_v51  ;;  %654 = vmatprep.mubr.bf16.mxu0 %v1394_v52 }
  0x7c   :  { %775 = vmatprep.mubr.bf16.mxu1 %v1396_v53 }
  0x82   :  { %655 = vmatmul.mubr.bf16.gmra.mrb[20].mxu0 %v1398_v54 }
  0x83   :  { %776 = vmatmul.mubr.bf16.gmra.mrb[20].mxu1 %v1399_v55  ;;  %662 = vmatprep.mubr.bf16.mxu0 %v1400_v56 }
  0x84   :  { %783 = vmatprep.mubr.bf16.mxu1 %v1402_v57 }
  0x8a   :  { %663 = vmatmul.mubr.bf16.gmra.mrb[24].mxu0 %v1404_v58 }
  0x8b   :  { %784 = vmatmul.mubr.bf16.gmra.mrb[24].mxu1 %v1405_v59  ;;  %670 = vmatprep.mubr.bf16.mxu0 %v1406_v60 }
  0x8c   :  { %791 = vmatprep.mubr.bf16.mxu1 %v1408_v61 }
  0x92   :  { %671 = vmatmul.mubr.bf16.gmra.mrb[28].mxu0 %v1410_v62 }
  0x93   :  { %792 = vmatmul.mubr.bf16.gmra.mrb[28].mxu1 %v1411_v63  ;;  %678 = vmatprep.mubr.bf16.mxu0 %v1412_v0 }
  0x94   :  { %799 = vmatprep.mubr.bf16.mxu1 %v1414_v1 }
  0x9a   :  { %679 = vmatmul.mubr.bf16.gmra.mrb[32].mxu0 %v1416_v2 }
  0x9b   :  { %800 = vmatmul.mubr.bf16.gmra.mrb[32].mxu1 %v1417_v3  ;;  %686 = vmatprep.mubr.bf16.mxu0 %v1418_v4 }
  0x9c   :  { %807 = vmatprep.mubr.bf16.mxu1 %v1420_v5 }
  0xa2   :  { %687 = vmatmul.mubr.bf16.gmra.mrb[36].mxu0 %v1422_v6 }
  0xa3   :  { %808 = vmatmul.mubr.bf16.gmra.mrb[36].mxu1 %v1423_v7  ;;  %694 = vmatprep.mubr.bf16.mxu0 %v1424_v8 }
  0xa4   :  { %815 = vmatprep.mubr.bf16.mxu1 %v1426_v9 }
  0xaa   :  { %695 = vmatmul.mubr.bf16.gmra.mrb[40].mxu0 %v1428_v10 }
  0xab   :  { %816 = vmatmul.mubr.bf16.gmra.mrb[40].mxu1 %v1429_v11 }
 0x12d   :  { %v1176_v12 = vpop.f32.mrb[0].mxu0 }
 0x12e   :  { %v1258_v13 = vpop.f32.mrb[0].mxu1  ;;  %v1177_v15 = vpop.f32.mrb[1].mxu0 }
 0x12f   :  { %v1178_v16 = vadd.f32 %v1177_v15, %v1176_v12  ;;  %v1259_v17 = vpop.f32.mrb[1].mxu1  ;;  %v1179_v18 = vpop.f32.mrb[2].mxu0 }
 0x130   :  { %v1260_v19 = vadd.f32 %v1259_v17, %v1258_v13  ;;  %v1261_v20 = vpop.f32.mrb[2].mxu1  ;;  %v1180_v21 = vpop.f32.mrb[3].mxu0 }
 0x131   :  { %v617_v22 = vadd.f32 %v1178_v16, %v1591_v14  ;;  %v1181_v23 = vadd.f32 %v1180_v21, %v1179_v18  ;;  %v1262_v24 = vpop.f32.mrb[3].mxu1 }
 0x132   :  { %v1263_v25 = vadd.f32 %v1262_v24, %v1261_v20 }
 0x133   :  { %v738_v26 = vadd.f32 %v1260_v19, %v617_v22  ;;  %v620_v27 = vadd.f32 %v1181_v23, %v1591_v14 }
 0x135   :  { %v741_v28 = vadd.f32 %v1263_v25, %v620_v27  ;;  %v1182_v29 = vpop.f32.mrb[4].mxu0  ;;  %v824_v32 = vmax.f32 %v738_v26, 0.0 }
 0x136   :  { %v1264_v30 = vpop.f32.mrb[4].mxu1  ;;  %v1183_v31 = vpop.f32.mrb[5].mxu0 }
 0x137   :  { %v825_v33 = vmax.f32 %v741_v28, 0.0  ;;  %v1184_v34 = vadd.f32 %v1183_v31, %v1182_v29  ;;  %v1265_v35 = vpop.f32.mrb[5].mxu1  ;;  %v1185_v36 = vpop.f32.mrb[6].mxu0 }
 0x138   :  { %v1266_v37 = vadd.f32 %v1265_v35, %v1264_v30  ;;  %v1267_v38 = vpop.f32.mrb[6].mxu1  ;;  %v1186_v39 = vpop.f32.mrb[7].mxu0 }
 0x139   :  { %v1098_v40 = vpack.c.bf16 %v825_v33, %v824_v32  ;;  %v625_v41 = vadd.f32 %v1184_v34, %v1591_v14  ;;  %v1187_v42 = vadd.f32 %v1186_v39, %v1185_v36  ;;  %v1268_v43 = vpop.f32.mrb[7].mxu1 }
 0x13a   :  { %v1269_v44 = vadd.f32 %v1268_v43, %v1267_v38 }
 0x13b   :  { %1099 = vst [vmem:[#allocation8] sm:$0xff] %v1098_v40   ;;  %v746_v45 = vadd.f32 %v1266_v37, %v625_v41  ;;  %v628_v46 = vadd.f32 %v1187_v42, %v1591_v14 }
 0x13d   :  { %v749_v47 = vadd.f32 %v1269_v44, %v628_v46  ;;  %v1188_v48 = vpop.f32.mrb[8].mxu0  ;;  %v826_v51 = vmax.f32 %v746_v45, 0.0 }
 0x13e   :  { %v1270_v49 = vpop.f32.mrb[8].mxu1  ;;  %v1189_v50 = vpop.f32.mrb[9].mxu0 }
 0x13f   :  { %v827_v52 = vmax.f32 %v749_v47, 0.0  ;;  %v1190_v53 = vadd.f32 %v1189_v50, %v1188_v48  ;;  %v1271_v54 = vpop.f32.mrb[9].mxu1  ;;  %v1191_v55 = vpop.f32.mrb[10].mxu0 }
 0x140   :  { %v1272_v56 = vadd.f32 %v1271_v54, %v1270_v49  ;;  %v1273_v57 = vpop.f32.mrb[10].mxu1  ;;  %v1192_v58 = vpop.f32.mrb[11].mxu0 }
 0x141   :  { %v1103_v59 = vpack.c.bf16 %v827_v52, %v826_v51  ;;  %v633_v60 = vadd.f32 %v1190_v53, %v1591_v14  ;;  %v1193_v61 = vadd.f32 %v1192_v58, %v1191_v55  ;;  %v1274_v62 = vpop.f32.mrb[11].mxu1 }
 0x142   :  { %v1275_v63 = vadd.f32 %v1274_v62, %v1273_v57 }
 0x143   :  { %1150 = vst [vmem:[#allocation8 + $0x8] sm:$0xff] %v1103_v59   ;;  %v754_v0 = vadd.f32 %v1272_v56, %v633_v60  ;;  %v636_v1 = vadd.f32 %v1193_v61, %v1591_v14 }
 0x145   :  { %v757_v2 = vadd.f32 %v1275_v63, %v636_v1  ;;  %v1194_v3 = vpop.f32.mrb[12].mxu0  ;;  %v828_v6 = vmax.f32 %v754_v0, 0.0 }
 0x146   :  { %v1276_v4 = vpop.f32.mrb[12].mxu1  ;;  %v1195_v5 = vpop.f32.mrb[13].mxu0 }
 0x147   :  { %v829_v7 = vmax.f32 %v757_v2, 0.0  ;;  %v1196_v8 = vadd.f32 %v1195_v5, %v1194_v3  ;;  %v1277_v9 = vpop.f32.mrb[13].mxu1  ;;  %v1197_v10 = vpop.f32.mrb[14].mxu0 }
 0x148   :  { %v1278_v11 = vadd.f32 %v1277_v9, %v1276_v4  ;;  %v1279_v12 = vpop.f32.mrb[14].mxu1  ;;  %v1198_v13 = vpop.f32.mrb[15].mxu0 }
 0x149   :  { %v1108_v15 = vpack.c.bf16 %v829_v7, %v828_v6  ;;  %v641_v16 = vadd.f32 %v1196_v8, %v1591_v14  ;;  %v1199_v17 = vadd.f32 %v1198_v13, %v1197_v10  ;;  %v1280_v18 = vpop.f32.mrb[15].mxu1 }
 0x14a   :  { %v1281_v19 = vadd.f32 %v1280_v18, %v1279_v12 }
 0x14b   :  { %1151 = vst [vmem:[#allocation8 + $0x10] sm:$0xff] %v1108_v15   ;;  %v762_v20 = vadd.f32 %v1278_v11, %v641_v16  ;;  %v644_v21 = vadd.f32 %v1199_v17, %v1591_v14 }
 0x14d   :  { %v765_v22 = vadd.f32 %v1281_v19, %v644_v21  ;;  %v1200_v23 = vpop.f32.mrb[16].mxu0  ;;  %v830_v26 = vmax.f32 %v762_v20, 0.0 }
 0x14e   :  { %v1282_v24 = vpop.f32.mrb[16].mxu1  ;;  %v1201_v25 = vpop.f32.mrb[17].mxu0 }
 0x14f   :  { %v831_v27 = vmax.f32 %v765_v22, 0.0  ;;  %v1202_v28 = vadd.f32 %v1201_v25, %v1200_v23  ;;  %v1283_v29 = vpop.f32.mrb[17].mxu1  ;;  %v1203_v30 = vpop.f32.mrb[18].mxu0 }
 0x150   :  { %v1284_v31 = vadd.f32 %v1283_v29, %v1282_v24  ;;  %v1285_v32 = vpop.f32.mrb[18].mxu1  ;;  %v1204_v33 = vpop.f32.mrb[19].mxu0 }
 0x151   :  { %v1113_v34 = vpack.c.bf16 %v831_v27, %v830_v26  ;;  %v649_v35 = vadd.f32 %v1202_v28, %v1591_v14  ;;  %v1205_v36 = vadd.f32 %v1204_v33, %v1203_v30  ;;  %v1286_v37 = vpop.f32.mrb[19].mxu1 }
 0x152   :  { %v1287_v38 = vadd.f32 %v1286_v37, %v1285_v32 }
 0x153   :  { %1152 = vst [vmem:[#allocation8 + $0x18] sm:$0xff] %v1113_v34   ;;  %v770_v39 = vadd.f32 %v1284_v31, %v649_v35  ;;  %v652_v40 = vadd.f32 %v1205_v36, %v1591_v14 }
 0x155   :  { %v773_v41 = vadd.f32 %v1287_v38, %v652_v40  ;;  %v1206_v42 = vpop.f32.mrb[20].mxu0  ;;  %v832_v45 = vmax.f32 %v770_v39, 0.0 }
 0x156   :  { %v1288_v43 = vpop.f32.mrb[20].mxu1  ;;  %v1207_v44 = vpop.f32.mrb[21].mxu0 }
 0x157   :  { %v833_v46 = vmax.f32 %v773_v41, 0.0  ;;  %v1208_v47 = vadd.f32 %v1207_v44, %v1206_v42  ;;  %v1289_v48 = vpop.f32.mrb[21].mxu1  ;;  %v1209_v49 = vpop.f32.mrb[22].mxu0 }
 0x158   :  { %v1290_v50 = vadd.f32 %v1289_v48, %v1288_v43  ;;  %v1291_v51 = vpop.f32.mrb[22].mxu1  ;;  %v1210_v52 = vpop.f32.mrb[23].mxu0 }
 0x159   :  { %v1118_v53 = vpack.c.bf16 %v833_v46, %v832_v45  ;;  %v657_v54 = vadd.f32 %v1208_v47, %v1591_v14  ;;  %v1211_v55 = vadd.f32 %v1210_v52, %v1209_v49  ;;  %v1292_v56 = vpop.f32.mrb[23].mxu1 }
 0x15a   :  { %v1293_v57 = vadd.f32 %v1292_v56, %v1291_v51 }
 0x15b   :  { %1153 = vst [vmem:[#allocation8 + $0x20] sm:$0xff] %v1118_v53   ;;  %v778_v58 = vadd.f32 %v1290_v50, %v657_v54  ;;  %v660_v59 = vadd.f32 %v1211_v55, %v1591_v14 }
 0x15d   :  { %v781_v60 = vadd.f32 %v1293_v57, %v660_v59  ;;  %v1212_v61 = vpop.f32.mrb[24].mxu0  ;;  %v834_v0 = vmax.f32 %v778_v58, 0.0 }
 0x15e   :  { %v1294_v62 = vpop.f32.mrb[24].mxu1  ;;  %v1213_v63 = vpop.f32.mrb[25].mxu0 }
 0x15f   :  { %v835_v1 = vmax.f32 %v781_v60, 0.0  ;;  %v1214_v2 = vadd.f32 %v1213_v63, %v1212_v61  ;;  %v1295_v3 = vpop.f32.mrb[25].mxu1  ;;  %v1215_v4 = vpop.f32.mrb[26].mxu0 }
 0x160   :  { %v1296_v5 = vadd.f32 %v1295_v3, %v1294_v62  ;;  %v1297_v6 = vpop.f32.mrb[26].mxu1  ;;  %v1216_v7 = vpop.f32.mrb[27].mxu0 }
 0x161   :  { %v1123_v8 = vpack.c.bf16 %v835_v1, %v834_v0  ;;  %v665_v9 = vadd.f32 %v1214_v2, %v1591_v14  ;;  %v1217_v10 = vadd.f32 %v1216_v7, %v1215_v4  ;;  %v1298_v11 = vpop.f32.mrb[27].mxu1 }
 0x162   :  { %v1299_v12 = vadd.f32 %v1298_v11, %v1297_v6 }
 0x163   :  { %1154 = vst [vmem:[#allocation8 + $0x28] sm:$0xff] %v1123_v8   ;;  %v786_v13 = vadd.f32 %v1296_v5, %v665_v9  ;;  %v668_v15 = vadd.f32 %v1217_v10, %v1591_v14 }
 0x165   :  { %v789_v16 = vadd.f32 %v1299_v12, %v668_v15  ;;  %v1218_v17 = vpop.f32.mrb[28].mxu0  ;;  %v836_v20 = vmax.f32 %v786_v13, 0.0 }
 0x166   :  { %v1300_v18 = vpop.f32.mrb[28].mxu1  ;;  %v1219_v19 = vpop.f32.mrb[29].mxu0 }
 0x167   :  { %v837_v21 = vmax.f32 %v789_v16, 0.0  ;;  %v1220_v22 = vadd.f32 %v1219_v19, %v1218_v17  ;;  %v1301_v23 = vpop.f32.mrb[29].mxu1  ;;  %v1221_v24 = vpop.f32.mrb[30].mxu0 }
 0x168   :  { %v1302_v25 = vadd.f32 %v1301_v23, %v1300_v18  ;;  %v1303_v26 = vpop.f32.mrb[30].mxu1  ;;  %v1222_v27 = vpop.f32.mrb[31].mxu0 }
 0x169   :  { %v1128_v28 = vpack.c.bf16 %v837_v21, %v836_v20  ;;  %v673_v29 = vadd.f32 %v1220_v22, %v1591_v14  ;;  %v1223_v30 = vadd.f32 %v1222_v27, %v1221_v24  ;;  %v1304_v31 = vpop.f32.mrb[31].mxu1 }
 0x16a   :  { %v1305_v32 = vadd.f32 %v1304_v31, %v1303_v26 }
 0x16b   :  { %1155 = vst [vmem:[#allocation8 + $0x30] sm:$0xff] %v1128_v28   ;;  %v794_v33 = vadd.f32 %v1302_v25, %v673_v29  ;;  %v676_v34 = vadd.f32 %v1223_v30, %v1591_v14 }
 0x16d   :  { %v797_v35 = vadd.f32 %v1305_v32, %v676_v34  ;;  %v1224_v36 = vpop.f32.mrb[32].mxu0  ;;  %v838_v39 = vmax.f32 %v794_v33, 0.0 }
 0x16e   :  { %v1306_v37 = vpop.f32.mrb[32].mxu1  ;;  %v1225_v38 = vpop.f32.mrb[33].mxu0 }
 0x16f   :  { %v839_v40 = vmax.f32 %v797_v35, 0.0  ;;  %v1226_v41 = vadd.f32 %v1225_v38, %v1224_v36  ;;  %v1307_v42 = vpop.f32.mrb[33].mxu1  ;;  %v1227_v43 = vpop.f32.mrb[34].mxu0 }
 0x170   :  { %v1308_v44 = vadd.f32 %v1307_v42, %v1306_v37  ;;  %v1309_v45 = vpop.f32.mrb[34].mxu1  ;;  %v1228_v46 = vpop.f32.mrb[35].mxu0 }
 0x171   :  { %v1133_v47 = vpack.c.bf16 %v839_v40, %v838_v39  ;;  %v681_v48 = vadd.f32 %v1226_v41, %v1591_v14  ;;  %v1229_v49 = vadd.f32 %v1228_v46, %v1227_v43  ;;  %v1310_v50 = vpop.f32.mrb[35].mxu1 }
 0x172   :  { %v1311_v51 = vadd.f32 %v1310_v50, %v1309_v45 }
 0x173   :  { %1156 = vst [vmem:[#allocation8 + $0x38] sm:$0xff] %v1133_v47   ;;  %v802_v52 = vadd.f32 %v1308_v44, %v681_v48  ;;  %v684_v53 = vadd.f32 %v1229_v49, %v1591_v14 }
 0x175   :  { %v805_v54 = vadd.f32 %v1311_v51, %v684_v53  ;;  %v1230_v55 = vpop.f32.mrb[36].mxu0  ;;  %v840_v58 = vmax.f32 %v802_v52, 0.0 }
 0x176   :  { %v1312_v56 = vpop.f32.mrb[36].mxu1  ;;  %v1231_v57 = vpop.f32.mrb[37].mxu0 }
 0x177   :  { %v841_v59 = vmax.f32 %v805_v54, 0.0  ;;  %v1232_v60 = vadd.f32 %v1231_v57, %v1230_v55  ;;  %v1313_v61 = vpop.f32.mrb[37].mxu1  ;;  %v1233_v62 = vpop.f32.mrb[38].mxu0 }
 0x178   :  { %v1314_v63 = vadd.f32 %v1313_v61, %v1312_v56  ;;  %v1315_v0 = vpop.f32.mrb[38].mxu1  ;;  %v1234_v1 = vpop.f32.mrb[39].mxu0 }
 0x179   :  { %v1138_v2 = vpack.c.bf16 %v841_v59, %v840_v58  ;;  %v689_v3 = vadd.f32 %v1232_v60, %v1591_v14  ;;  %v1235_v4 = vadd.f32 %v1234_v1, %v1233_v62  ;;  %v1316_v5 = vpop.f32.mrb[39].mxu1 }
 0x17a   :  { %v1317_v6 = vadd.f32 %v1316_v5, %v1315_v0 }
 0x17b   :  { %1157 = vst [vmem:[#allocation8 + $0x40] sm:$0xff] %v1138_v2   ;;  %v810_v7 = vadd.f32 %v1314_v63, %v689_v3  ;;  %v692_v8 = vadd.f32 %v1235_v4, %v1591_v14 }
 0x17d   :  { %v813_v9 = vadd.f32 %v1317_v6, %v692_v8  ;;  %v1236_v10 = vpop.f32.mrb[40].mxu0  ;;  %v842_v13 = vmax.f32 %v810_v7, 0.0 }
 0x17e   :  { %v1318_v11 = vpop.f32.mrb[40].mxu1  ;;  %v1237_v12 = vpop.f32.mrb[41].mxu0 }
 0x17f   :  { %v843_v15 = vmax.f32 %v813_v9, 0.0  ;;  %v1238_v16 = vadd.f32 %v1237_v12, %v1236_v10  ;;  %v1319_v17 = vpop.f32.mrb[41].mxu1  ;;  %v1239_v18 = vpop.f32.mrb[42].mxu0 }
 0x180   :  { %v1320_v19 = vadd.f32 %v1319_v17, %v1318_v11  ;;  %v1321_v20 = vpop.f32.mrb[42].mxu1  ;;  %v1240_v21 = vpop.f32.mrb[43].mxu0 }
 0x181   :  { %v1143_v22 = vpack.c.bf16 %v843_v15, %v842_v13  ;;  %v697_v23 = vadd.f32 %v1238_v16, %v1591_v14  ;;  %v1241_v24 = vadd.f32 %v1240_v21, %v1239_v18  ;;  %v1322_v25 = vpop.f32.mrb[43].mxu1 }
 0x182   :  { %v1323_v26 = vadd.f32 %v1322_v25, %v1321_v20 }
 0x183   :  { %1158 = vst [vmem:[#allocation8 + $0x48] sm:$0xff] %v1143_v22   ;;  %v818_v27 = vadd.f32 %v1320_v19, %v697_v23  ;;  %v700_v28 = vadd.f32 %v1241_v24, %v1591_v14 }
 0x185   :  { %v821_v29 = vadd.f32 %v1323_v26, %v700_v28  ;;  %v844_v30 = vmax.f32 %v818_v27, 0.0 }
 0x187   :  { %v845_v31 = vmax.f32 %v821_v29, 0.0 }
 0x189   :  { %v1148_v32 = vpack.c.bf16 %v845_v31, %v844_v30 }
 0x18b   :  { %1159 = vst [vmem:[#allocation8 + $0x50] sm:$0xff] %v1148_v32  }
 0x18c   :  { %1507 = shalt.err (!%p1504_p0)
}
 0x18d   :  { %s1508_s30 = scalar_lea.hbm %s1633_s3, 1408 }
 0x18e   :  { %p1509_p1 = scmp.ne.s32.totalorder %s1633_s3, %s1508_s30  ;;  %p1512_p2 = scmp.lt.u32.totalorder %s1508_s30, %s1633_s3 }
 0x190   :  { %p1514_p3 = pnand %p1512_p2, %p1509_p1 }
 0x192   :  { %1517 = shalt.err (!%p1514_p3)
}
 0x193   :  { %967 = dma.vmem_to_hbm [thread:$0]  %s962_s26, 1408, %s1633_s3, [#allocation4], %s1525_s22, %s1525_s22, %s1526_s23  }
 0x194   :  { %1522 = dma.done.wait [#allocation4], 1408  }
 0x195   :  { %1523 = vsyncadd [#allocation4], 4294965888 }
 0x196   :  { %971 = vsyncpa [#allocation3], 1 }
 0x197   :  { %972 = vsyncpa [#allocation6], 1 }
 0x198   :  { %973 = vsyncpa [#allocation4], 1 }

// kernel: dqn_forward.6
= control target key start
LH: loop header
LB: loop body
LE: loop exit
PB: predicated region body
PF: predicated region fallthrough
CT: control target
= control target key end

     0   :  { %8 = vsyncpa [#allocation3], 0  ;;  %s1650_s0 = inlined_call_operand.hbm [shape: bf16[112,640], index: 0, kind: input, shape index: {}]   ;;  %s1651_s1 = inlined_call_operand.hbm [shape: bf16[640,128], index: 1, kind: input, shape index: {}]   ;;  %s1652_s2 = inlined_call_operand.hbm [shape: f32[1,128], index: 2, kind: input, shape index: {}]   ;;  %s1653_s3 = inlined_call_operand.hbm [shape: bf16[112,128], index: 3, kind: output, shape index: {}]  }
   0x1   :  { %9 = vsyncpa [#allocation6], 0 }
   0x2   :  { %10 = vsyncpa [#allocation4], 0  ;;  %s1504_s12 = smov [#allocation5]   ;;  %s1410_s16 = scalar_lea.hbm %s1651_s1, 5120 }
   0x3   :  { %s28_s13 = sshll.u32 %s1504_s12, 4  ;;  %p1411_p0 = scmp.ne.s32.totalorder %s1651_s1, %s1410_s16  ;;  %s29_s13 = int_to_ptr.vmem [resolvable:$true] %s28_s13 }
   0x4   :  { %p1414_p1 = scmp.lt.u32.totalorder %s1410_s16, %s1651_s1 }
   0x6   :  { %p1416_p2 = pnand %p1414_p1, %p1411_p0 }
   0x8   :  { %1419 = shalt.err (!%p1416_p2)
}
   0x9   :  { %s1420_s21 = scalar_lea.vmem %s29_s13, 5120  ;;  %p1425_p4 = scmp.lt.s32.totalorder %s29_s13, %s29_s13 }
   0xa   :  { %p1421_p3 = scmp.ne.s32.totalorder %s29_s13, %s1420_s21  ;;  %p1426_p5 = scmp.lt.s32.totalorder %s1420_s21, %s1420_s21 }
   0xc   :  { %p1427_p6 = por %p1426_p5, %p1425_p4 }
   0xe   :  { %p1428_p7 = pnand %p1427_p6, %p1421_p3 }
  0x10   :  { %1431 = shalt.err (!%p1428_p7)
}
  0x11   :  { %s1505_s22 = smov 64   ;;  %s1506_s23 = smov 4  }
  0x12   :  { %34 = dma.hbm_to_vmem [thread:$0]  %s1651_s1, 5120, %s29_s13, [#allocation6], %s1505_s22, %s1505_s22, %s1506_s23  }
  0x13   :  { %s1507_s26 = smov [#allocation2]   ;;  %s1432_s30 = scalar_lea.hbm %s1650_s0, 4480 }
  0x14   :  { %s16_s27 = sshll.u32 %s1507_s26, 4  ;;  %p1433_p8 = scmp.ne.s32.totalorder %s1650_s0, %s1432_s30  ;;  %s17_s27 = int_to_ptr.vmem [resolvable:$true] %s16_s27 }
  0x15   :  { %p1436_p9 = scmp.lt.u32.totalorder %s1432_s30, %s1650_s0 }
  0x17   :  { %p1438_p10 = pnand %p1436_p9, %p1433_p8 }
  0x19   :  { %1441 = shalt.err (!%p1438_p10)
}
  0x1a   :  { %s1442_s8 = scalar_lea.vmem %s17_s27, 4480  ;;  %p1447_p12 = scmp.lt.s32.totalorder %s17_s27, %s17_s27 }
  0x1b   :  { %p1443_p11 = scmp.ne.s32.totalorder %s17_s27, %s1442_s8  ;;  %p1448_p13 = scmp.lt.s32.totalorder %s1442_s8, %s1442_s8 }
  0x1d   :  { %p1449_p0 = por %p1448_p13, %p1447_p12 }
  0x1f   :  { %p1450_p1 = pnand %p1449_p0, %p1443_p11 }
  0x21   :  { %1453 = shalt.err (!%p1450_p1)
}
  0x22   :  { %s1508_s1 = smov 320   ;;  %s1509_s9 = smov 20  }
  0x23   :  { %22 = dma.hbm_to_vmem [thread:$0]  %s1650_s0, 4480, %s17_s27, [#allocation3], %s1508_s1, %s1508_s1, %s1509_s9  }
  0x24   :  { %s1510_s12 = smov [#allocation7]   ;;  %s1454_s16 = scalar_lea.hbm %s1652_s2, 16 }
  0x25   :  { %s41_s13 = sshll.u32 %s1510_s12, 4  ;;  %p1455_p2 = scmp.ne.s32.totalorder %s1652_s2, %s1454_s16  ;;  %s42_s13 = int_to_ptr.vmem [resolvable:$true] %s41_s13 }
  0x26   :  { %p1458_p3 = scmp.lt.u32.totalorder %s1454_s16, %s1652_s2 }
  0x28   :  { %p1460_p4 = pnand %p1458_p3, %p1455_p2 }
  0x2a   :  { %1463 = shalt.err (!%p1460_p4)
}
  0x2b   :  { %s1464_s21 = scalar_lea.vmem %s42_s13, 16  ;;  %s1468_s0 = scalar_lea.vmem %s42_s13, 32 }
  0x2c   :  { %p1465_p5 = scmp.ne.s32.totalorder %s42_s13, %s1464_s21  ;;  %p1469_p6 = scmp.lt.s32.totalorder %s42_s13, %s42_s13 }
  0x2d   :  { %p1470_p7 = scmp.lt.s32.totalorder %s1468_s0, %s1464_s21 }
  0x2f   :  { %p1471_p8 = por %p1470_p7, %p1469_p6 }
  0x31   :  { %p1472_p9 = pnand %p1471_p8, %p1465_p5 }
  0x33   :  { %1475 = shalt.err (!%p1472_p9)
}
  0x34   :  { %44 = dma.hbm_to_vmem [thread:$0]  %s1652_s2, 16, %s42_s13, [#allocation6]  }
  0x35   :  { %1498 = dma.done.wait [#allocation3], 4480  }
  0x36   :  { %1499 = vsyncadd [#allocation3], 4294962816 }
  0x37   :  { %1500 = dma.done.wait [#allocation6], 5136  }
  0x38   :  { %1501 = vsyncadd [#allocation6], 4294962160  ;;  %v1321_v0 = vld [vmem:[#allocation5 + $0x40] sm:$0xff]   ;;  %v1323_v2 = vld [vmem:[#allocation5 + $0x48] sm:$0xff]   ;;  %v1511_v24 = vmov 0.0   ;;  %vm1512_vm0 = vmmov 0  }
  0x39   :  { %v1322_v1 = vld [vmem:[#allocation5] sm:$0xff]   ;;  %1295 = vmatprep.subr.bf16.mxu1 %v1321_v0  ;;  %1120 = vmatprep.subr.bf16.mxu0 %v1321_v0  ;;  %v1324_v3 = vld [vmem:[#allocation5 + $0x8] sm:$0xff]   ;;  %v1325_v4 = vld [vmem:[#allocation5 + $0x50] sm:$0xff]   ;;  %s1513_s2 = smov [#allocation8]  }
  0x3a   :  { %1303 = vmatpush3.bf16.msra.mxu1 %v1322_v1  ;;  %1121 = vmatpush3.bf16.msra.mxu0 %v1322_v1  ;;  %v1326_v5 = vld [vmem:[#allocation5 + $0x10] sm:$0xff]   ;;  %v1327_v6 = vld [vmem:[#allocation5 + $0x58] sm:$0xff]   ;;  %v1329_v8 = vld [vmem:[#allocation5 + $0x60] sm:$0xff]   ;;  %s962_s26 = sshll.u32 %s1513_s2, 4  ;;  %s963_s26 = int_to_ptr.vmem [resolvable:$true] %s962_s26 }
  0x3b   :  { %1296 = vmatprep.subr.bf16.mxu1 %v1323_v2  ;;  %1122 = vmatprep.subr.bf16.mxu0 %v1323_v2  ;;  %v1328_v7 = vld [vmem:[#allocation5 + $0x18] sm:$0xff]   ;;  %v1330_v9 = vld [vmem:[#allocation5 + $0x20] sm:$0xff]   ;;  %v1331_v10 = vld [vmem:[#allocation5 + $0x68] sm:$0xff]   ;;  %s1476_s27 = scalar_lea.vmem %s963_s26, 896  ;;  %p1481_p11 = scmp.lt.s32.totalorder %s963_s26, %s963_s26 }
  0x3c   :  { %v1339_v11 = vld [vmem:[#allocation2 + $0xa4] ss:$20 sps:$4 sm:$0xff]   ;;  %v1333_v14 = vld [vmem:[#allocation5 + $0x70] sm:$0xff]   ;;  %v1335_v16 = vld [vmem:[#allocation5 + $0x78] sm:$0xff]   ;;  %p1477_p10 = scmp.ne.s32.totalorder %s963_s26, %s1476_s27  ;;  %p1482_p12 = scmp.lt.s32.totalorder %s1476_s27, %s1476_s27 }
  0x3d   :  { %v1332_v12 = vld [vmem:[#allocation5 + $0x28] sm:$0xff]   ;;  %670 = vmatprep.mubr.bf16.mxu1 %v1339_v11  ;;  %v1334_v15 = vld [vmem:[#allocation5 + $0x30] sm:$0xff]   ;;  %v1336_v17 = vld [vmem:[#allocation5 + $0x38] sm:$0xff]  }
  0x3e   :  { %1304 = vmatpush3.bf16.msra.mxu1 %v1324_v3  ;;  %1123 = vmatpush3.bf16.msra.mxu0 %v1324_v3  ;;  %v1343_v13 = vld [vmem:[#allocation2 + $0x4] ss:$20 sps:$4 sm:$0xff]   ;;  %v1337_v19 = vld [vmem:[#allocation2 + $0xa0] ss:$20 sps:$4 sm:$0xff]   ;;  %v1349_v29 = vld [vmem:[#allocation5 + $0xd0] sm:$0xff]   ;;  %p1483_p13 = por %p1482_p12, %p1481_p11 }
  0x3f   :  { %1297 = vmatprep.subr.bf16.mxu1 %v1325_v4  ;;  %1124 = vmatprep.subr.bf16.mxu0 %v1325_v4  ;;  %v1340_v18 = vld [vmem:[#allocation5 + $0xc0] sm:$0xff]   ;;  %v1341_v20 = vld [vmem:[#allocation2] ss:$20 sps:$4 sm:$0xff]   ;;  %v1352_v30 = vld [vmem:[#allocation5 + $0x90] sm:$0xff]  }
  0x40   :  { %638 = vmatprep.mubr.bf16.mxu0 %v1343_v13  ;;  %v1344_v21 = vld [vmem:[#allocation5 + $0x80] sm:$0xff]   ;;  %v1346_v23 = vld [vmem:[#allocation5 + $0xc8] sm:$0xff]   ;;  %v1354_v33 = vld [vmem:[#allocation5 + $0x110] sm:$0xff]   ;;  %p1484_p0 = pnand %p1483_p13, %p1477_p10 }
  0x41   :  { %v1345_v22 = vld [vmem:[#allocation5 + $0x100] sm:$0xff]   ;;  %v1350_v25 = vld [vmem:[#allocation2 + $0x2c] ss:$20 sps:$4 sm:$0xff]   ;;  %v1357_v34 = vld [vmem:[#allocation5 + $0xd8] sm:$0xff]  }
  0x42   :  { %1305 = vmatpush3.bf16.msra.mxu1 %v1326_v5  ;;  %1125 = vmatpush3.bf16.msra.mxu0 %v1326_v5  ;;  %v1355_v26 = vld [vmem:[#allocation2 + $0xcc] ss:$20 sps:$4 sm:$0xff]   ;;  %v1353_v31 = vld [vmem:[#allocation2 + $0x28] ss:$20 sps:$4 sm:$0xff]   ;;  %v1359_v37 = vld [vmem:[#allocation5 + $0x98] sm:$0xff]  }
  0x43   :  { %1298 = vmatprep.subr.bf16.mxu1 %v1327_v6  ;;  %1126 = vmatprep.subr.bf16.mxu0 %v1327_v6  ;;  %v1347_v27 = vld [vmem:[#allocation5 + $0x88] sm:$0xff]   ;;  %v1358_v32 = vld [vmem:[#allocation2 + $0xc8] ss:$20 sps:$4 sm:$0xff]   ;;  %v1360_v38 = vld [vmem:[#allocation5 + $0x118] sm:$0xff]  }
  0x44   :  { %v1348_v28 = vld [vmem:[#allocation5 + $0x108] sm:$0xff]   ;;  %v1362_v35 = vld [vmem:[#allocation2 + $0x54] ss:$20 sps:$4 sm:$0xff]   ;;  %v1361_v39 = vld [vmem:[#allocation5 + $0xe0] sm:$0xff]  }
  0x45   :  { %v1367_v36 = vld [vmem:[#allocation2 + $0xf4] ss:$20 sps:$4 sm:$0xff]   ;;  %v1364_v40 = vld [vmem:[#allocation5 + $0xa0] sm:$0xff]   ;;  %v1365_v41 = vld [vmem:[#allocation2 + $0x50] ss:$20 sps:$4 sm:$0xff]  }
  0x46   :  { %1306 = vmatpush3.bf16.msra.mxu1 %v1328_v7  ;;  %1127 = vmatpush3.bf16.msra.mxu0 %v1328_v7  ;;  %v1370_v42 = vld [vmem:[#allocation2 + $0xf0] ss:$20 sps:$4 sm:$0xff]   ;;  %v1366_v43 = vld [vmem:[#allocation5 + $0x120] sm:$0xff]   ;;  %v1383_v46 = vld [vmem:[#allocation2 + $0xc] ss:$20 sps:$4 sm:$0xff]  }
  0x47   :  { %1299 = vmatprep.subr.bf16.mxu1 %v1329_v8  ;;  %1128 = vmatprep.subr.bf16.mxu0 %v1329_v8  ;;  %v1369_v44 = vld [vmem:[#allocation5 + $0xe8] sm:$0xff]   ;;  %v1374_v45 = vld [vmem:[#allocation2 + $0x7c] ss:$20 sps:$4 sm:$0xff]   ;;  %v1373_v49 = vld [vmem:[#allocation5 + $0xf0] sm:$0xff]  }
  0x48   :  { %v1371_v47 = vld [vmem:[#allocation5 + $0xa8] sm:$0xff]   ;;  %v1376_v50 = vld [vmem:[#allocation5 + $0xb0] sm:$0xff]   ;;  %v1379_v53 = vld [vmem:[#allocation5 + $0xf8] sm:$0xff]  }
  0x49   :  { %v1372_v48 = vld [vmem:[#allocation5 + $0x128] sm:$0xff]   ;;  %v1377_v51 = vld [vmem:[#allocation2 + $0x78] ss:$20 sps:$4 sm:$0xff]   ;;  %v1380_v54 = vld [vmem:[#allocation5 + $0xb8] sm:$0xff]  }
  0x4a   :  { %1307 = vmatpush3.bf16.msra.mxu1 %v1330_v9  ;;  %1129 = vmatpush3.bf16.msra.mxu0 %v1330_v9  ;;  %v1378_v52 = vld [vmem:[#allocation5 + $0x130] sm:$0xff]   ;;  %v1384_v55 = vld [vmem:[#allocation5 + $0x138] sm:$0xff]   ;;  %v1394_v0 = vld [vmem:[#allocation2 + $0x84] ss:$20 sps:$4 sm:$0xff]  }
  0x4b   :  { %1300 = vmatprep.subr.bf16.mxu1 %v1331_v10  ;;  %1130 = vmatprep.subr.bf16.mxu0 %v1331_v10  ;;  %v1381_v56 = vld [vmem:[#allocation2 + $0x8] ss:$20 sps:$4 sm:$0xff]   ;;  %v1385_v57 = vld [vmem:[#allocation2 + $0x10] ss:$20 sps:$4 sm:$0xff]   ;;  %v1389_v60 = vld [vmem:[#allocation2 + $0x38] ss:$20 sps:$4 sm:$0xff]  }
  0x4c   :  { %v1386_v58 = vld [vmem:[#allocation2 + $0x34] ss:$20 sps:$4 sm:$0xff]   ;;  %v1388_v59 = vld [vmem:[#allocation2 + $0x30] ss:$20 sps:$4 sm:$0xff]   ;;  %v1392_v62 = vld [vmem:[#allocation2 + $0x58] ss:$20 sps:$4 sm:$0xff]  }
  0x4d   :  { %v1390_v61 = vld [vmem:[#allocation2 + $0x5c] ss:$20 sps:$4 sm:$0xff]   ;;  %v1393_v63 = vld [vmem:[#allocation2 + $0x60] ss:$20 sps:$4 sm:$0xff]   ;;  %v1405_v8 = vld [vmem:[#allocation2 + $0xd8] ss:$20 sps:$4 sm:$0xff]  }
  0x4e   :  { %1308 = vmatpush3.bf16.msra.mxu1 %v1332_v12  ;;  %1131 = vmatpush3.bf16.msra.mxu0 %v1332_v12  ;;  %v1396_v1 = vld [vmem:[#allocation2 + $0x80] ss:$20 sps:$4 sm:$0xff]   ;;  %v1397_v2 = vld [vmem:[#allocation2 + $0x88] ss:$20 sps:$4 sm:$0xff]   ;;  %v1401_v5 = vld [vmem:[#allocation2 + $0xb0] ss:$20 sps:$4 sm:$0xff]  }
  0x4f   :  { %1301 = vmatprep.subr.bf16.mxu1 %v1333_v14  ;;  %1132 = vmatprep.subr.bf16.mxu0 %v1333_v14  ;;  %v1398_v3 = vld [vmem:[#allocation2 + $0xac] ss:$20 sps:$4 sm:$0xff]   ;;  %v1400_v4 = vld [vmem:[#allocation2 + $0xa8] ss:$20 sps:$4 sm:$0xff]   ;;  %v1404_v7 = vld [vmem:[#allocation2 + $0xd0] ss:$20 sps:$4 sm:$0xff]  }
  0x50   :  { %v1402_v6 = vld [vmem:[#allocation2 + $0xd4] ss:$20 sps:$4 sm:$0xff]   ;;  %v1406_v9 = vld [vmem:[#allocation2 + $0xfc] ss:$20 sps:$4 sm:$0xff]   ;;  %v1408_v10 = vld [vmem:[#allocation2 + $0xf8] ss:$20 sps:$4 sm:$0xff]  }
  0x51   :  { %v1409_v11 = vld [vmem:[#allocation2 + $0x100] ss:$20 sps:$4 sm:$0xff]  }
  0x52   :  { %1309 = vmatpush3.bf16.msra.mxu1 %v1334_v15  ;;  %1133 = vmatpush3.bf16.msra.mxu0 %v1334_v15 }
  0x53   :  { %1302 = vmatprep.subr.bf16.mxu1 %v1335_v16  ;;  %1134 = vmatprep.subr.bf16.mxu0 %v1335_v16 }
  0x56   :  { %1310 = vmatpush3.bf16.msra.mxu1 %v1336_v17  ;;  %1135 = vmatpush3.bf16.msra.mxu0 %v1336_v17 }
  0x57   :  { %1178 = vmatprep.subr.bf16.mxu1 %v1340_v18  ;;  %1251 = vmatprep.subr.bf16.mxu0 %v1511_v24 }
  0x59   :  { %671 = vmatmul.mubr.bf16.vlgmr.msra.gmra.mrb[0].mxu1 %v1337_v19  ;;  %639 = vmatmul.mubr.bf16.vlgmr.msra.gmra.mrb[0].mxu0 %v1341_v20 }
  0x5a   :  { %1179 = vmatpush3.bf16.msra.mxu1 %v1344_v21  ;;  %1252 = vmatpush3.bf16.msra.mxu0 %v1345_v22 }
  0x5b   :  { %1180 = vmatprep.subr.bf16.mxu1 %v1346_v23  ;;  %1253 = vmatprep.subr.bf16.mxu0 %v1511_v24 }
  0x5c   :  { %646 = vmatprep.mubr.bf16.mxu0 %v1350_v25  ;;  %678 = vmatprep.mubr.bf16.mxu1 %v1355_v26 }
  0x5e   :  { %1181 = vmatpush3.bf16.msra.mxu1 %v1347_v27  ;;  %1254 = vmatpush3.bf16.msra.mxu0 %v1348_v28 }
  0x5f   :  { %1182 = vmatprep.subr.bf16.mxu1 %v1349_v29  ;;  %1255 = vmatprep.subr.bf16.mxu0 %v1511_v24 }
  0x61   :  { %647 = vmatmul.mubr.bf16.gmra.mrb[4].mxu0 %v1353_v31  ;;  %679 = vmatmul.mubr.bf16.gmra.mrb[4].mxu1 %v1358_v32 }
  0x62   :  { %1183 = vmatpush3.bf16.msra.mxu1 %v1352_v30  ;;  %1256 = vmatpush3.bf16.msra.mxu0 %v1354_v33 }
  0x63   :  { %1184 = vmatprep.subr.bf16.mxu1 %v1357_v34  ;;  %1257 = vmatprep.subr.bf16.mxu0 %v1511_v24 }
  0x64   :  { %654 = vmatprep.mubr.bf16.mxu0 %v1362_v35  ;;  %686 = vmatprep.mubr.bf16.mxu1 %v1367_v36 }
  0x66   :  { %1185 = vmatpush3.bf16.msra.mxu1 %v1359_v37  ;;  %1258 = vmatpush3.bf16.msra.mxu0 %v1360_v38 }
  0x67   :  { %1186 = vmatprep.subr.bf16.mxu1 %v1361_v39  ;;  %1259 = vmatprep.subr.bf16.mxu0 %v1511_v24 }
  0x69   :  { %655 = vmatmul.mubr.bf16.gmra.mrb[8].mxu0 %v1365_v41  ;;  %687 = vmatmul.mubr.bf16.gmra.mrb[8].mxu1 %v1370_v42 }
  0x6a   :  { %1187 = vmatpush3.bf16.msra.mxu1 %v1364_v40  ;;  %1260 = vmatpush3.bf16.msra.mxu0 %v1366_v43 }
  0x6b   :  { %1188 = vmatprep.subr.bf16.mxu1 %v1369_v44  ;;  %1261 = vmatprep.subr.bf16.mxu0 %v1511_v24 }
  0x6c   :  { %662 = vmatprep.mubr.bf16.mxu0 %v1374_v45  ;;  %727 = vmatprep.mubr.bf16.mxu1 %v1383_v46 }
  0x6e   :  { %1189 = vmatpush3.bf16.msra.mxu1 %v1371_v47  ;;  %1262 = vmatpush3.bf16.msra.mxu0 %v1372_v48 }
  0x6f   :  { %1190 = vmatprep.subr.bf16.mxu1 %v1373_v49  ;;  %1263 = vmatprep.subr.bf16.mxu0 %v1511_v24 }
  0x71   :  { %663 = vmatmul.mubr.bf16.gmra.mrb[12].mxu0 %v1377_v51 }
  0x72   :  { %1191 = vmatpush3.bf16.msra.mxu1 %v1376_v50  ;;  %1264 = vmatpush3.bf16.msra.mxu0 %v1378_v52 }
  0x73   :  { %1192 = vmatprep.subr.bf16.mxu1 %v1379_v53  ;;  %1265 = vmatprep.subr.bf16.mxu0 %v1511_v24 }
  0x74   :  { %1267 = vmatprep.mubr.msk.bf16.mxu0 %vm1512_vm0, %v1511_v24 }
  0x76   :  { %1193 = vmatpush3.bf16.msra.mxu1 %v1380_v54  ;;  %1266 = vmatpush3.bf16.msra.mxu0 %v1384_v55 }
  0x79   :  { %728 = vmatmul.mubr.bf16.vlgmr.msra.gmra.mrb[12].mxu1 %v1381_v56  ;;  %1268 = vmatmul.mubr.bf16.vlgmr.msra.gmra.mrb[16].mxu0 %v1385_v57  ;;  %v1611_v56 = vld [vmem:[#allocation7] ss:$0 sm:$0xff] }
  0x7a   :  { %735 = vmatprep.mubr.bf16.mxu1 %v1386_v58  ;;  %1271 = vmatprep.mubr.msk.bf16.mxu0 %vm1512_vm0, %v1511_v24 }
  0x81   :  { %736 = vmatmul.mubr.bf16.gmra.mrb[16].mxu1 %v1388_v59  ;;  %1272 = vmatmul.mubr.bf16.gmra.mrb[20].mxu0 %v1389_v60 }
  0x82   :  { %743 = vmatprep.mubr.bf16.mxu1 %v1390_v61  ;;  %1275 = vmatprep.mubr.msk.bf16.mxu0 %vm1512_vm0, %v1511_v24 }
  0x89   :  { %744 = vmatmul.mubr.bf16.gmra.mrb[20].mxu1 %v1392_v62  ;;  %1276 = vmatmul.mubr.bf16.gmra.mrb[24].mxu0 %v1393_v63 }
  0x8a   :  { %751 = vmatprep.mubr.bf16.mxu1 %v1394_v0  ;;  %1279 = vmatprep.mubr.msk.bf16.mxu0 %vm1512_vm0, %v1511_v24 }
  0x91   :  { %752 = vmatmul.mubr.bf16.gmra.mrb[24].mxu1 %v1396_v1  ;;  %1280 = vmatmul.mubr.bf16.gmra.mrb[28].mxu0 %v1397_v2 }
  0x92   :  { %759 = vmatprep.mubr.bf16.mxu1 %v1398_v3  ;;  %1283 = vmatprep.mubr.msk.bf16.mxu0 %vm1512_vm0, %v1511_v24 }
  0x99   :  { %760 = vmatmul.mubr.bf16.gmra.mrb[28].mxu1 %v1400_v4  ;;  %1284 = vmatmul.mubr.bf16.gmra.mrb[32].mxu0 %v1401_v5 }
  0x9a   :  { %767 = vmatprep.mubr.bf16.mxu1 %v1402_v6  ;;  %1287 = vmatprep.mubr.msk.bf16.mxu0 %vm1512_vm0, %v1511_v24 }
  0xa1   :  { %768 = vmatmul.mubr.bf16.gmra.mrb[32].mxu1 %v1404_v7  ;;  %1288 = vmatmul.mubr.bf16.gmra.mrb[36].mxu0 %v1405_v8 }
  0xa2   :  { %775 = vmatprep.mubr.bf16.mxu1 %v1406_v9  ;;  %1291 = vmatprep.mubr.msk.bf16.mxu0 %vm1512_vm0, %v1511_v24 }
  0xa9   :  { %776 = vmatmul.mubr.bf16.gmra.mrb[36].mxu1 %v1408_v10  ;;  %1292 = vmatmul.mubr.bf16.gmra.mrb[40].mxu0 %v1409_v11 }
 0x12c   :  { %v1160_v12 = vpop.f32.mrb[0].mxu1  ;;  %v1136_v13 = vpop.f32.mrb[0].mxu0 }
 0x12d   :  { %v1161_v14 = vpop.f32.mrb[1].mxu1  ;;  %v1137_v15 = vpop.f32.mrb[1].mxu0 }
 0x12e   :  { %v1595_v16 = vadd.f32 %v1161_v14, %v1160_v12  ;;  %v1163_v17 = vpop.f32.mrb[2].mxu1  ;;  %v1138_v18 = vadd.f32 %v1137_v15, %v1136_v13  ;;  %v1139_v19 = vpop.f32.mrb[2].mxu0 }
 0x12f   :  { %v1164_v20 = vpop.f32.mrb[3].mxu1  ;;  %v1140_v21 = vpop.f32.mrb[3].mxu0 }
 0x130   :  { %v1597_v22 = vadd.f32 %v1164_v20, %v1163_v17  ;;  %v1141_v23 = vadd.f32 %v1140_v21, %v1139_v19  ;;  %v641_v59 = vadd.f32 %v1138_v18, %v1611_v56 }
 0x132   :  { %v644_v1 = vadd.f32 %v1141_v23, %v1611_v56 }
 0x134   :  { %v1142_v25 = vpop.f32.mrb[4].mxu0  ;;  %v1166_v24 = vpop.f32.mrb[4].mxu1 }
 0x135   :  { %v1143_v26 = vpop.f32.mrb[5].mxu0  ;;  %v1167_v27 = vpop.f32.mrb[5].mxu1 }
 0x136   :  { %v1144_v28 = vadd.f32 %v1143_v26, %v1142_v25  ;;  %v1145_v29 = vpop.f32.mrb[6].mxu0  ;;  %v1599_v30 = vadd.f32 %v1167_v27, %v1166_v24  ;;  %v1169_v31 = vpop.f32.mrb[6].mxu1 }
 0x137   :  { %v1146_v32 = vpop.f32.mrb[7].mxu0  ;;  %v1170_v33 = vpop.f32.mrb[7].mxu1 }
 0x138   :  { %v1147_v34 = vadd.f32 %v1146_v32, %v1145_v29  ;;  %v1601_v35 = vadd.f32 %v1170_v33, %v1169_v31  ;;  %v649_v11 = vadd.f32 %v1144_v28, %v1611_v56 }
 0x13a   :  { %v652_v20 = vadd.f32 %v1147_v34, %v1611_v56 }
 0x13c   :  { %v1148_v36 = vpop.f32.mrb[8].mxu0  ;;  %v1172_v37 = vpop.f32.mrb[8].mxu1 }
 0x13d   :  { %v1149_v38 = vpop.f32.mrb[9].mxu0  ;;  %v1173_v39 = vpop.f32.mrb[9].mxu1 }
 0x13e   :  { %v1150_v40 = vadd.f32 %v1149_v38, %v1148_v36  ;;  %v1151_v41 = vpop.f32.mrb[10].mxu0  ;;  %v1603_v42 = vadd.f32 %v1173_v39, %v1172_v37  ;;  %v1175_v43 = vpop.f32.mrb[10].mxu1 }
 0x13f   :  { %v1152_v44 = vpop.f32.mrb[11].mxu0  ;;  %v1176_v45 = vpop.f32.mrb[11].mxu1 }
 0x140   :  { %v1153_v46 = vadd.f32 %v1152_v44, %v1151_v41  ;;  %v1605_v47 = vadd.f32 %v1176_v45, %v1175_v43  ;;  %v657_v33 = vadd.f32 %v1150_v40, %v1611_v56 }
 0x142   :  { %v660_v44 = vadd.f32 %v1153_v46, %v1611_v56 }
 0x144   :  { %v1154_v48 = vpop.f32.mrb[12].mxu0 }
 0x145   :  { %v1155_v49 = vpop.f32.mrb[13].mxu0 }
 0x146   :  { %v1607_v50 = vadd.f32 %v1155_v49, %v1154_v48  ;;  %v1157_v51 = vpop.f32.mrb[14].mxu0 }
 0x147   :  { %v1158_v52 = vpop.f32.mrb[15].mxu0 }
 0x148   :  { %v1609_v53 = vadd.f32 %v1158_v52, %v1157_v51 }
 0x14c   :  { %v1194_v54 = vpop.f32.mrb[12].mxu1  ;;  %v818_v55 = vpop.f32.mrb[16].mxu0 }
 0x14d   :  { %v1195_v57 = vpop.f32.mrb[13].mxu1  ;;  %v1269_v58 = vpop.f32.mrb[17].mxu0 }
 0x14e   :  { %v1196_v60 = vadd.f32 %v1195_v57, %v1194_v54  ;;  %v1197_v61 = vpop.f32.mrb[14].mxu1  ;;  %v821_v62 = vpop.f32.mrb[18].mxu0 }
 0x14f   :  { %v1198_v63 = vpop.f32.mrb[15].mxu1  ;;  %v1270_v0 = vpop.f32.mrb[19].mxu0 }
 0x150   :  { %v730_v2 = vadd.f32 %v1196_v60, %v641_v59  ;;  %v1199_v3 = vadd.f32 %v1198_v63, %v1197_v61  ;;  %v665_v59 = vadd.f32 %v1607_v50, %v1611_v56 }
 0x152   :  { %v819_v4 = vadd.f32 %v818_v55, %v730_v2  ;;  %v733_v5 = vadd.f32 %v1199_v3, %v644_v1  ;;  %v668_v2 = vadd.f32 %v1609_v53, %v1611_v56 }
 0x154   :  { %v822_v6 = vadd.f32 %v821_v62, %v733_v5  ;;  %v1200_v7 = vpop.f32.mrb[16].mxu1  ;;  %v826_v8 = vpop.f32.mrb[20].mxu0  ;;  %v873_v12 = vmax.f32 %v819_v4, 0.0 }
 0x155   :  { %v1201_v9 = vpop.f32.mrb[17].mxu1  ;;  %v1273_v10 = vpop.f32.mrb[21].mxu0 }
 0x156   :  { %v874_v13 = vmax.f32 %v822_v6, 0.0  ;;  %v1202_v14 = vadd.f32 %v1201_v9, %v1200_v7  ;;  %v1203_v15 = vpop.f32.mrb[18].mxu1  ;;  %v829_v17 = vpop.f32.mrb[22].mxu0 }
 0x157   :  { %v1204_v18 = vpop.f32.mrb[19].mxu1  ;;  %v1274_v19 = vpop.f32.mrb[23].mxu0 }
 0x158   :  { %v1082_v21 = vpack.c.bf16 %v874_v13, %v873_v12  ;;  %v738_v23 = vadd.f32 %v1202_v14, %v649_v11  ;;  %v1205_v25 = vadd.f32 %v1204_v18, %v1203_v15  ;;  %v673_v12 = vadd.f32 %v1595_v16, %v1611_v56 }
 0x15a   :  { %1083 = vst [vmem:[#allocation8] sm:$0xff] %v1082_v21   ;;  %v827_v24 = vadd.f32 %v826_v8, %v738_v23  ;;  %v741_v26 = vadd.f32 %v1205_v25, %v652_v20  ;;  %v676_v20 = vadd.f32 %v1597_v22, %v1611_v56 }
 0x15c   :  { %v830_v27 = vadd.f32 %v829_v17, %v741_v26  ;;  %v1206_v29 = vpop.f32.mrb[20].mxu1  ;;  %v834_v31 = vpop.f32.mrb[24].mxu0  ;;  %v875_v36 = vmax.f32 %v827_v24, 0.0 }
 0x15d   :  { %v1207_v32 = vpop.f32.mrb[21].mxu1  ;;  %v1277_v28 = vpop.f32.mrb[25].mxu0 }
 0x15e   :  { %v876_v37 = vmax.f32 %v830_v27, 0.0  ;;  %v1208_v38 = vadd.f32 %v1207_v32, %v1206_v29  ;;  %v1209_v39 = vpop.f32.mrb[22].mxu1  ;;  %v837_v41 = vpop.f32.mrb[26].mxu0  ;;  %v681_v28 = vadd.f32 %v1599_v30, %v1611_v56 }
 0x15f   :  { %v1210_v43 = vpop.f32.mrb[23].mxu1  ;;  %v1278_v34 = vpop.f32.mrb[27].mxu0 }
 0x160   :  { %v1087_v45 = vpack.c.bf16 %v876_v37, %v875_v36  ;;  %v746_v48 = vadd.f32 %v1208_v38, %v657_v33  ;;  %v1211_v49 = vadd.f32 %v1210_v43, %v1209_v39  ;;  %v684_v43 = vadd.f32 %v1601_v35, %v1611_v56 }
 0x162   :  { %1114 = vst [vmem:[#allocation8 + $0x8] sm:$0xff] %v1087_v45   ;;  %v835_v51 = vadd.f32 %v834_v31, %v746_v48  ;;  %v749_v52 = vadd.f32 %v1211_v49, %v660_v44 }
 0x164   :  { %v838_v54 = vadd.f32 %v837_v41, %v749_v52  ;;  %v1212_v55 = vpop.f32.mrb[24].mxu1  ;;  %v842_v57 = vpop.f32.mrb[28].mxu0  ;;  %v877_v60 = vmax.f32 %v835_v51, 0.0 }
 0x165   :  { %v1213_v58 = vpop.f32.mrb[25].mxu1  ;;  %v1281_v40 = vpop.f32.mrb[29].mxu0 }
 0x166   :  { %v878_v61 = vmax.f32 %v838_v54, 0.0  ;;  %v1214_v62 = vadd.f32 %v1213_v58, %v1212_v55  ;;  %v1215_v63 = vpop.f32.mrb[26].mxu1  ;;  %v845_v0 = vpop.f32.mrb[30].mxu0 }
 0x167   :  { %v1216_v46 = vpop.f32.mrb[27].mxu1  ;;  %v1282_v1 = vpop.f32.mrb[31].mxu0 }
 0x168   :  { %v1092_v3 = vpack.c.bf16 %v878_v61, %v877_v60  ;;  %v754_v4 = vadd.f32 %v1214_v62, %v665_v59  ;;  %v1217_v5 = vadd.f32 %v1216_v46, %v1215_v63  ;;  %v692_v63 = vadd.f32 %v1605_v47, %v1611_v56 }
 0x16a   :  { %1115 = vst [vmem:[#allocation8 + $0x10] sm:$0xff] %v1092_v3   ;;  %v843_v6 = vadd.f32 %v842_v57, %v754_v4  ;;  %v757_v7 = vadd.f32 %v1217_v5, %v668_v2  ;;  %v689_v57 = vadd.f32 %v1603_v42, %v1611_v56 }
 0x16c   :  { %v846_v8 = vadd.f32 %v845_v0, %v757_v7  ;;  %v1218_v9 = vpop.f32.mrb[28].mxu1  ;;  %v850_v10 = vpop.f32.mrb[32].mxu0  ;;  %v879_v13 = vmax.f32 %v843_v6, 0.0 }
 0x16d   :  { %v1219_v50 = vpop.f32.mrb[29].mxu1  ;;  %v1285_v11 = vpop.f32.mrb[33].mxu0 }
 0x16e   :  { %v880_v14 = vmax.f32 %v846_v8, 0.0  ;;  %v1220_v15 = vadd.f32 %v1219_v50, %v1218_v9  ;;  %v1221_v17 = vpop.f32.mrb[30].mxu1  ;;  %v853_v18 = vpop.f32.mrb[34].mxu0 }
 0x16f   :  { %v1222_v53 = vpop.f32.mrb[31].mxu1  ;;  %v1286_v19 = vpop.f32.mrb[35].mxu0 }
 0x170   :  { %v1097_v21 = vpack.c.bf16 %v880_v14, %v879_v13  ;;  %v762_v23 = vadd.f32 %v1220_v15, %v673_v12  ;;  %v1223_v25 = vadd.f32 %v1222_v53, %v1221_v17 }
 0x172   :  { %1116 = vst [vmem:[#allocation8 + $0x18] sm:$0xff] %v1097_v21   ;;  %v851_v24 = vadd.f32 %v850_v10, %v762_v23  ;;  %v765_v26 = vadd.f32 %v1223_v25, %v676_v20 }
 0x174   :  { %v854_v27 = vadd.f32 %v853_v18, %v765_v26  ;;  %v1224_v29 = vpop.f32.mrb[32].mxu1  ;;  %v858_v31 = vpop.f32.mrb[36].mxu0  ;;  %v881_v33 = vmax.f32 %v851_v24, 0.0 }
 0x175   :  { %v1225_v16 = vpop.f32.mrb[33].mxu1  ;;  %v1289_v32 = vpop.f32.mrb[37].mxu0 }
 0x176   :  { %v882_v36 = vmax.f32 %v854_v27, 0.0  ;;  %v1226_v37 = vadd.f32 %v1225_v16, %v1224_v29  ;;  %v1227_v38 = vpop.f32.mrb[34].mxu1  ;;  %v861_v39 = vpop.f32.mrb[38].mxu0 }
 0x177   :  { %v1228_v22 = vpop.f32.mrb[35].mxu1  ;;  %v1290_v41 = vpop.f32.mrb[39].mxu0 }
 0x178   :  { %v1102_v34 = vpack.c.bf16 %v882_v36, %v881_v33  ;;  %v770_v44 = vadd.f32 %v1226_v37, %v681_v28  ;;  %v1229_v45 = vadd.f32 %v1228_v22, %v1227_v38 }
 0x17a   :  { %1117 = vst [vmem:[#allocation8 + $0x20] sm:$0xff] %v1102_v34   ;;  %v859_v48 = vadd.f32 %v858_v31, %v770_v44  ;;  %v773_v49 = vadd.f32 %v1229_v45, %v684_v43 }
 0x17c   :  { %v862_v51 = vadd.f32 %v861_v39, %v773_v49  ;;  %v1230_v52 = vpop.f32.mrb[36].mxu1  ;;  %v866_v54 = vpop.f32.mrb[40].mxu0  ;;  %v883_v58 = vmax.f32 %v859_v48, 0.0 }
 0x17d   :  { %v1231_v30 = vpop.f32.mrb[37].mxu1  ;;  %v1293_v55 = vpop.f32.mrb[41].mxu0 }
 0x17e   :  { %v884_v40 = vmax.f32 %v862_v51, 0.0  ;;  %v1232_v59 = vadd.f32 %v1231_v30, %v1230_v52  ;;  %v1233_v60 = vpop.f32.mrb[38].mxu1  ;;  %v869_v61 = vpop.f32.mrb[42].mxu0 }
 0x17f   :  { %v1234_v35 = vpop.f32.mrb[39].mxu1  ;;  %v1294_v62 = vpop.f32.mrb[43].mxu0 }
 0x180   :  { %v1107_v0 = vpack.c.bf16 %v884_v40, %v883_v58  ;;  %v778_v46 = vadd.f32 %v1232_v59, %v689_v57  ;;  %v1235_v1 = vadd.f32 %v1234_v35, %v1233_v60 }
 0x182   :  { %1118 = vst [vmem:[#allocation8 + $0x28] sm:$0xff] %v1107_v0   ;;  %v867_v2 = vadd.f32 %v866_v54, %v778_v46  ;;  %v781_v3 = vadd.f32 %v1235_v1, %v692_v63 }
 0x184   :  { %v870_v4 = vadd.f32 %v869_v61, %v781_v3  ;;  %v885_v42 = vmax.f32 %v867_v2, 0.0 }
 0x186   :  { %v886_v5 = vmax.f32 %v870_v4, 0.0 }
 0x188   :  { %v1112_v6 = vpack.c.bf16 %v886_v5, %v885_v42 }
 0x18a   :  { %1119 = vst [vmem:[#allocation8 + $0x30] sm:$0xff] %v1112_v6  }
 0x18b   :  { %1487 = shalt.err (!%p1484_p0)
}
 0x18c   :  { %s1488_s30 = scalar_lea.hbm %s1653_s3, 896 }
 0x18d   :  { %p1489_p1 = scmp.ne.s32.totalorder %s1653_s3, %s1488_s30  ;;  %p1492_p2 = scmp.lt.u32.totalorder %s1488_s30, %s1653_s3 }
 0x18f   :  { %p1494_p3 = pnand %p1492_p2, %p1489_p1 }
 0x191   :  { %1497 = shalt.err (!%p1494_p3)
}
 0x192   :  { %968 = dma.vmem_to_hbm [thread:$0]  %s963_s26, 896, %s1653_s3, [#allocation4], %s1505_s22, %s1505_s22, %s1506_s23  }
 0x193   :  { %1502 = dma.done.wait [#allocation4], 896  }
 0x194   :  { %1503 = vsyncadd [#allocation4], 4294966400 }
 0x195   :  { %972 = vsyncpa [#allocation3], 1 }
 0x196   :  { %973 = vsyncpa [#allocation6], 1 }
 0x197   :  { %974 = vsyncpa [#allocation4], 1 }

// kernel: dqn_forward.7
= control target key start
LH: loop header
LB: loop body
LE: loop exit
PB: predicated region body
PF: predicated region fallthrough
CT: control target
= control target key end

     0   :  { %10 = vsyncpa [#allocation3], 0  ;;  %s9103_s0 = inlined_call_operand.hbm [shape: bf16[16,3200], index: 0, kind: input, shape index: {}]   ;;  %s9104_s1 = inlined_call_operand.hbm [shape: bf16[3200,512], index: 1, kind: input, shape index: {}]   ;;  %s9105_s2 = inlined_call_operand.hbm [shape: f32[1,512], index: 2, kind: input, shape index: {}]   ;;  %s9106_s3 = inlined_call_operand.hbm [shape: bf16[512,128], index: 3, kind: input, shape index: {}]   ;;  %s9107_s4 = inlined_call_operand.hbm [shape: f32[1,128], index: 4, kind: input, shape index: {}]   ;;  %s9108_s5 = inlined_call_operand.hbm [shape: f32[16,128], index: 5, kind: output, shape index: {}]  }
   0x1   :  { %11 = vsyncpa [#allocation6], 0 }
   0x2   :  { %12 = vsyncpa [#allocation9], 0 }
   0x3   :  { %13 = vsyncpa [#allocation4], 0  ;;  %s8986_s18 = smov [#allocation5]   ;;  %s8846_s22 = scalar_lea.hbm %s9104_s1, 102400 }
   0x4   :  { %s31_s19 = sshll.u32 %s8986_s18, 4  ;;  %p8847_p0 = scmp.ne.s32.totalorder %s9104_s1, %s8846_s22  ;;  %s32_s19 = int_to_ptr.vmem [resolvable:$true] %s31_s19 }
   0x5   :  { %p8850_p1 = scmp.lt.u32.totalorder %s8846_s22, %s9104_s1 }
   0x7   :  { %p8852_p2 = pnand %p8850_p1, %p8847_p0 }
   0x9   :  { %8855 = shalt.err (!%p8852_p2)
}
   0xa   :  { %s8856_s27 = scalar_lea.vmem %s32_s19, 102400  ;;  %p8861_p4 = scmp.lt.s32.totalorder %s32_s19, %s32_s19 }
   0xb   :  { %p8857_p3 = scmp.ne.s32.totalorder %s32_s19, %s8856_s27  ;;  %p8862_p5 = scmp.lt.s32.totalorder %s8856_s27, %s8856_s27 }
   0xd   :  { %p8863_p6 = por %p8862_p5, %p8861_p4 }
   0xf   :  { %p8864_p7 = pnand %p8863_p6, %p8857_p3 }
  0x11   :  { %8867 = shalt.err (!%p8864_p7)
}
  0x12   :  { %s8987_s28 = smov 256   ;;  %s8988_s29 = smov 16  }
  0x13   :  { %37 = dma.hbm_to_vmem [thread:$0]  %s9104_s1, 102400, %s32_s19, [#allocation6], %s8987_s28, %s8987_s28, %s8988_s29  }
  0x14   :  { %s8989_s7 = smov [#allocation8]   ;;  %s8868_s11 = scalar_lea.hbm %s9106_s3, 4096 }
  0x15   :  { %s53_s8 = sshll.u32 %s8989_s7, 4  ;;  %p8869_p8 = scmp.ne.s32.totalorder %s9106_s3, %s8868_s11  ;;  %s54_s8 = int_to_ptr.vmem [resolvable:$true] %s53_s8 }
  0x16   :  { %p8872_p9 = scmp.lt.u32.totalorder %s8868_s11, %s9106_s3 }
  0x18   :  { %p8874_p10 = pnand %p8872_p9, %p8869_p8 }
  0x1a   :  { %8877 = shalt.err (!%p8874_p10)
}
  0x1b   :  { %s8878_s16 = scalar_lea.vmem %s54_s8, 4096  ;;  %p8883_p12 = scmp.lt.s32.totalorder %s54_s8, %s54_s8 }
  0x1c   :  { %p8879_p11 = scmp.ne.s32.totalorder %s54_s8, %s8878_s16  ;;  %p8884_p13 = scmp.lt.s32.totalorder %s8878_s16, %s8878_s16 }
  0x1e   :  { %p8885_p0 = por %p8884_p13, %p8883_p12 }
  0x20   :  { %p8886_p1 = pnand %p8885_p0, %p8879_p11 }
  0x22   :  { %8889 = shalt.err (!%p8886_p1)
}
  0x23   :  { %s8990_s1 = smov 64   ;;  %s8991_s17 = smov 4  }
  0x24   :  { %59 = dma.hbm_to_vmem [thread:$0]  %s9106_s3, 4096, %s54_s8, [#allocation9], %s8990_s1, %s8990_s1, %s8991_s17  }
  0x25   :  { %s8992_s20 = smov [#allocation2]   ;;  %s8890_s24 = scalar_lea.hbm %s9103_s0, 3200 }
  0x26   :  { %s19_s21 = sshll.u32 %s8992_s20, 4  ;;  %p8891_p2 = scmp.ne.s32.totalorder %s9103_s0, %s8890_s24  ;;  %s20_s21 = int_to_ptr.vmem [resolvable:$true] %s19_s21 }
  0x27   :  { %p8894_p3 = scmp.lt.u32.totalorder %s8890_s24, %s9103_s0 }
  0x29   :  { %p8896_p4 = pnand %p8894_p3, %p8891_p2 }
  0x2b   :  { %8899 = shalt.err (!%p8896_p4)
}
  0x2c   :  { %s8900_s29 = scalar_lea.vmem %s20_s21, 3200  ;;  %p8905_p6 = scmp.lt.s32.totalorder %s20_s21, %s20_s21 }
  0x2d   :  { %p8901_p5 = scmp.ne.s32.totalorder %s20_s21, %s8900_s29  ;;  %p8906_p7 = scmp.lt.s32.totalorder %s8900_s29, %s8900_s29 }
  0x2f   :  { %p8907_p8 = por %p8906_p7, %p8905_p6 }
  0x31   :  { %p8908_p9 = pnand %p8907_p8, %p8901_p5 }
  0x33   :  { %8911 = shalt.err (!%p8908_p9)
}
  0x34   :  { %s8993_s3 = smov 1600   ;;  %s8994_s30 = smov 100  }
  0x35   :  { %25 = dma.hbm_to_vmem [thread:$0]  %s9103_s0, 3200, %s20_s21, [#allocation3], %s8993_s3, %s8993_s3, %s8994_s30  }
  0x36   :  { %s8995_s8 = smov [#allocation7]   ;;  %s8996_s10 = smov [#allocation10]  }
  0x37   :  { %s44_s9 = sshll.u32 %s8995_s8, 4  ;;  %s66_s11 = sshll.u32 %s8996_s10, 4  ;;  %s45_s9 = int_to_ptr.vmem [resolvable:$true] %s44_s9  ;;  %s67_s11 = int_to_ptr.vmem [resolvable:$true] %s66_s11 }
  0x38   :  { %s8912_s14 = scalar_lea.hbm %s9105_s2, 64 }
  0x39   :  { %p8913_p10 = scmp.ne.s32.totalorder %s9105_s2, %s8912_s14  ;;  %p8916_p11 = scmp.lt.u32.totalorder %s8912_s14, %s9105_s2 }
  0x3b   :  { %p8918_p12 = pnand %p8916_p11, %p8913_p10 }
  0x3d   :  { %8921 = shalt.err (!%p8918_p12)
}
  0x3e   :  { %s8922_s0 = scalar_lea.vmem %s45_s9, 64  ;;  %p8927_p0 = scmp.lt.s32.totalorder %s45_s9, %s45_s9 }
  0x3f   :  { %p8923_p13 = scmp.ne.s32.totalorder %s45_s9, %s8922_s0  ;;  %p8928_p1 = scmp.lt.s32.totalorder %s8922_s0, %s8922_s0 }
  0x41   :  { %p8929_p2 = por %p8928_p1, %p8927_p0 }
  0x43   :  { %p8930_p3 = pnand %p8929_p2, %p8923_p13 }
  0x45   :  { %8933 = shalt.err (!%p8930_p3)
}
  0x46   :  { %47 = dma.hbm_to_vmem [thread:$0]  %s9105_s2, 64, %s45_s9, [#allocation6]  }
  0x47   :  { %s8934_s22 = scalar_lea.hbm %s9107_s4, 16 }
  0x48   :  { %p8935_p4 = scmp.ne.s32.totalorder %s9107_s4, %s8934_s22  ;;  %p8938_p5 = scmp.lt.u32.totalorder %s8934_s22, %s9107_s4 }
  0x4a   :  { %p8940_p6 = pnand %p8938_p5, %p8935_p4 }
  0x4c   :  { %8943 = shalt.err (!%p8940_p6)
}
  0x4d   :  { %s8944_s27 = scalar_lea.vmem %s67_s11, 16  ;;  %s8948_s28 = scalar_lea.vmem %s67_s11, 32 }
  0x4e   :  { %p8945_p7 = scmp.ne.s32.totalorder %s67_s11, %s8944_s27  ;;  %p8949_p8 = scmp.lt.s32.totalorder %s67_s11, %s67_s11 }
  0x4f   :  { %p8950_p9 = scmp.lt.s32.totalorder %s8948_s28, %s8944_s27 }
  0x51   :  { %p8951_p10 = por %p8950_p9, %p8949_p8 }
  0x53   :  { %p8952_p11 = pnand %p8951_p10, %p8945_p7 }
  0x55   :  { %8955 = shalt.err (!%p8952_p11)
}
  0x56   :  { %69 = dma.hbm_to_vmem [thread:$0]  %s9107_s4, 16, %s67_s11, [#allocation9]  }
  0x57   :  { %8978 = dma.done.wait [#allocation3], 3200  }
  0x58   :  { %8979 = vsyncadd [#allocation3], 4294964096 }
  0x59   :  { %8980 = dma.done.wait [#allocation6], 102464  }
  0x5a   :  { %8981 = vsyncadd [#allocation6], 4294864832 }
  0x5b   :  { %8982 = dma.done.wait [#allocation9], 4112  }
  0x5c   :  { %8983 = vsyncadd [#allocation9], 4294963184  ;;  %v7577_v0 = vld [vmem:[#allocation5 + $0x4] ss:$16 sps:$4 sm:$0xff]   ;;  %v7579_v1 = vld [vmem:[#allocation5 + $0xc] ss:$16 sps:$4 sm:$0xff]  }
  0x5d   :  { %5060 = vmatprep.subr.bf16.mxu0 %v7577_v0  ;;  %v7581_v2 = vld [vmem:[#allocation5] ss:$16 sps:$4 sm:$0xff]   ;;  %v7582_v3 = vld [vmem:[#allocation5 + $0x8] ss:$16 sps:$4 sm:$0xff]   ;;  %5619 = vmatprep.subr.bf16.mxu1 %v7579_v1  ;;  %v7583_v4 = vld [vmem:[#allocation5 + $0x24] ss:$16 sps:$4 sm:$0xff]  }
  0x5e   :  { %5061 = vmatpush1.bf16.msra.mxu0 %v7581_v2  ;;  %5620 = vmatpush1.bf16.msra.mxu1 %v7582_v3  ;;  %v7585_v5 = vld [vmem:[#allocation5 + $0x2c] ss:$16 sps:$4 sm:$0xff]   ;;  %v7587_v6 = vld [vmem:[#allocation5 + $0x20] ss:$16 sps:$4 sm:$0xff]   ;;  %v7588_v7 = vld [vmem:[#allocation5 + $0x28] ss:$16 sps:$4 sm:$0xff]  }
  0x5f   :  { %5062 = vmatprep.subr.bf16.mxu0 %v7583_v4  ;;  %5621 = vmatprep.subr.bf16.mxu1 %v7585_v5  ;;  %v7589_v8 = vld [vmem:[#allocation5 + $0x44] ss:$16 sps:$4 sm:$0xff]   ;;  %v7591_v9 = vld [vmem:[#allocation5 + $0x4c] ss:$16 sps:$4 sm:$0xff]   ;;  %v7593_v10 = vld [vmem:[#allocation5 + $0x40] ss:$16 sps:$4 sm:$0xff]  }
  0x60   :  { %v7594_v11 = vld [vmem:[#allocation5 + $0x48] ss:$16 sps:$4 sm:$0xff]   ;;  %v7595_v12 = vld [vmem:[#allocation5 + $0x64] ss:$16 sps:$4 sm:$0xff]   ;;  %v7597_v13 = vld [vmem:[#allocation5 + $0x6c] ss:$16 sps:$4 sm:$0xff]  }
  0x61   :  { %v7599_v14 = vld [vmem:[#allocation5 + $0x60] ss:$16 sps:$4 sm:$0xff]   ;;  %v7600_v15 = vld [vmem:[#allocation5 + $0x68] ss:$16 sps:$4 sm:$0xff]   ;;  %v7601_v16 = vld [vmem:[#allocation5 + $0x84] ss:$16 sps:$4 sm:$0xff]  }
  0x62   :  { %5063 = vmatpush1.bf16.msra.mxu0 %v7587_v6  ;;  %5622 = vmatpush1.bf16.msra.mxu1 %v7588_v7  ;;  %v7603_v17 = vld [vmem:[#allocation5 + $0x8c] ss:$16 sps:$4 sm:$0xff]   ;;  %v7605_v18 = vld [vmem:[#allocation5 + $0x80] ss:$16 sps:$4 sm:$0xff]   ;;  %v7606_v19 = vld [vmem:[#allocation5 + $0x88] ss:$16 sps:$4 sm:$0xff]  }
  0x63   :  { %5064 = vmatprep.subr.bf16.mxu0 %v7589_v8  ;;  %5623 = vmatprep.subr.bf16.mxu1 %v7591_v9  ;;  %v7607_v20 = vld [vmem:[#allocation5 + $0xa4] ss:$16 sps:$4 sm:$0xff]   ;;  %v7609_v21 = vld [vmem:[#allocation5 + $0xac] ss:$16 sps:$4 sm:$0xff]   ;;  %v7611_v22 = vld [vmem:[#allocation5 + $0xa0] ss:$16 sps:$4 sm:$0xff]  }
  0x64   :  { %v7612_v23 = vld [vmem:[#allocation5 + $0xa8] ss:$16 sps:$4 sm:$0xff]   ;;  %v7613_v24 = vld [vmem:[#allocation5 + $0xc4] ss:$16 sps:$4 sm:$0xff]   ;;  %v7615_v25 = vld [vmem:[#allocation5 + $0xcc] ss:$16 sps:$4 sm:$0xff]  }
  0x65   :  { %v7617_v26 = vld [vmem:[#allocation5 + $0xc0] ss:$16 sps:$4 sm:$0xff]   ;;  %v7618_v27 = vld [vmem:[#allocation5 + $0xc8] ss:$16 sps:$4 sm:$0xff]   ;;  %v7619_v28 = vld [vmem:[#allocation5 + $0xe4] ss:$16 sps:$4 sm:$0xff]  }
  0x66   :  { %5065 = vmatpush1.bf16.msra.mxu0 %v7593_v10  ;;  %5624 = vmatpush1.bf16.msra.mxu1 %v7594_v11  ;;  %v7621_v29 = vld [vmem:[#allocation5 + $0xec] ss:$16 sps:$4 sm:$0xff]   ;;  %v7623_v30 = vld [vmem:[#allocation5 + $0xe0] ss:$16 sps:$4 sm:$0xff]   ;;  %v7624_v31 = vld [vmem:[#allocation5 + $0xe8] ss:$16 sps:$4 sm:$0xff]  }
  0x67   :  { %5066 = vmatprep.subr.bf16.mxu0 %v7595_v12  ;;  %5625 = vmatprep.subr.bf16.mxu1 %v7597_v13  ;;  %v7625_v32 = vld [vmem:[#allocation5 + $0x104] ss:$16 sps:$4 sm:$0xff]   ;;  %v7627_v33 = vld [vmem:[#allocation5 + $0x10c] ss:$16 sps:$4 sm:$0xff]   ;;  %v7629_v34 = vld [vmem:[#allocation5 + $0x100] ss:$16 sps:$4 sm:$0xff]  }
  0x68   :  { %v7630_v35 = vld [vmem:[#allocation5 + $0x108] ss:$16 sps:$4 sm:$0xff]   ;;  %v7631_v36 = vld [vmem:[#allocation5 + $0x124] ss:$16 sps:$4 sm:$0xff]   ;;  %v7633_v37 = vld [vmem:[#allocation5 + $0x12c] ss:$16 sps:$4 sm:$0xff]  }
  0x69   :  { %v7635_v38 = vld [vmem:[#allocation5 + $0x120] ss:$16 sps:$4 sm:$0xff]   ;;  %v7636_v39 = vld [vmem:[#allocation5 + $0x128] ss:$16 sps:$4 sm:$0xff]   ;;  %v7637_v40 = vld [vmem:[#allocation5 + $0x144] ss:$16 sps:$4 sm:$0xff]  }
  0x6a   :  { %5067 = vmatpush1.bf16.msra.mxu0 %v7599_v14  ;;  %5626 = vmatpush1.bf16.msra.mxu1 %v7600_v15  ;;  %v7639_v41 = vld [vmem:[#allocation5 + $0x14c] ss:$16 sps:$4 sm:$0xff]   ;;  %v7641_v42 = vld [vmem:[#allocation5 + $0x140] ss:$16 sps:$4 sm:$0xff]   ;;  %v7642_v43 = vld [vmem:[#allocation5 + $0x148] ss:$16 sps:$4 sm:$0xff]  }
  0x6b   :  { %5068 = vmatprep.subr.bf16.mxu0 %v7601_v16  ;;  %5627 = vmatprep.subr.bf16.mxu1 %v7603_v17  ;;  %v7643_v44 = vld [vmem:[#allocation5 + $0x164] ss:$16 sps:$4 sm:$0xff]   ;;  %v7645_v45 = vld [vmem:[#allocation5 + $0x16c] ss:$16 sps:$4 sm:$0xff]   ;;  %v7647_v46 = vld [vmem:[#allocation5 + $0x160] ss:$16 sps:$4 sm:$0xff]  }
  0x6c   :  { %v7648_v47 = vld [vmem:[#allocation5 + $0x168] ss:$16 sps:$4 sm:$0xff]   ;;  %v7675_v48 = vld [vmem:[#allocation2 + $0x4] ss:$100 sps:$4 sm:$0xff]   ;;  %v7649_v49 = vld [vmem:[#allocation5 + $0x184] ss:$16 sps:$4 sm:$0xff]  }
  0x6d   :  { %v7651_v50 = vld [vmem:[#allocation5 + $0x18c] ss:$16 sps:$4 sm:$0xff]   ;;  %5092 = vmatprep.mubr.bf16.mxu0 %v7675_v48  ;;  %5651 = vmatprep.mubr.bf16.mxu1 %v7675_v48  ;;  %v7653_v51 = vld [vmem:[#allocation5 + $0x180] ss:$16 sps:$4 sm:$0xff]   ;;  %v7654_v52 = vld [vmem:[#allocation5 + $0x188] ss:$16 sps:$4 sm:$0xff]  }
  0x6e   :  { %5069 = vmatpush1.bf16.msra.mxu0 %v7605_v18  ;;  %5628 = vmatpush1.bf16.msra.mxu1 %v7606_v19  ;;  %v7655_v53 = vld [vmem:[#allocation5 + $0x1a4] ss:$16 sps:$4 sm:$0xff]   ;;  %v7657_v54 = vld [vmem:[#allocation5 + $0x1ac] ss:$16 sps:$4 sm:$0xff]   ;;  %v7659_v55 = vld [vmem:[#allocation5 + $0x1a0] ss:$16 sps:$4 sm:$0xff]  }
  0x6f   :  { %5070 = vmatprep.subr.bf16.mxu0 %v7607_v20  ;;  %5629 = vmatprep.subr.bf16.mxu1 %v7609_v21  ;;  %v7660_v56 = vld [vmem:[#allocation5 + $0x1a8] ss:$16 sps:$4 sm:$0xff]   ;;  %v7661_v57 = vld [vmem:[#allocation5 + $0x1c4] ss:$16 sps:$4 sm:$0xff]   ;;  %v7663_v58 = vld [vmem:[#allocation5 + $0x1cc] ss:$16 sps:$4 sm:$0xff]  }
  0x70   :  { %v7665_v59 = vld [vmem:[#allocation5 + $0x1c0] ss:$16 sps:$4 sm:$0xff]   ;;  %v7666_v60 = vld [vmem:[#allocation5 + $0x1c8] ss:$16 sps:$4 sm:$0xff]   ;;  %v7667_v61 = vld [vmem:[#allocation5 + $0x1e4] ss:$16 sps:$4 sm:$0xff]  }
  0x71   :  { %v7669_v62 = vld [vmem:[#allocation5 + $0x1ec] ss:$16 sps:$4 sm:$0xff]   ;;  %v7671_v63 = vld [vmem:[#allocation5 + $0x1e0] ss:$16 sps:$4 sm:$0xff]   ;;  %v7672_v0 = vld [vmem:[#allocation5 + $0x1e8] ss:$16 sps:$4 sm:$0xff]  }
  0x72   :  { %5071 = vmatpush1.bf16.msra.mxu0 %v7611_v22  ;;  %5630 = vmatpush1.bf16.msra.mxu1 %v7612_v23  ;;  %v7678_v1 = vld [vmem:[#allocation5 + $0x204] ss:$16 sps:$4 sm:$0xff]   ;;  %v7681_v2 = vld [vmem:[#allocation5 + $0x20c] ss:$16 sps:$4 sm:$0xff]   ;;  %v7676_v4 = vld [vmem:[#allocation5 + $0x200] ss:$16 sps:$4 sm:$0xff]  }
  0x73   :  { %5072 = vmatprep.subr.bf16.mxu0 %v7613_v24  ;;  %5631 = vmatprep.subr.bf16.mxu1 %v7615_v25  ;;  %v7673_v3 = vld [vmem:[#allocation2] ss:$100 sps:$4 sm:$0xff]   ;;  %v7684_v6 = vld [vmem:[#allocation5 + $0x224] ss:$16 sps:$4 sm:$0xff]   ;;  %v7682_v8 = vld [vmem:[#allocation5 + $0x220] ss:$16 sps:$4 sm:$0xff]  }
  0x74   :  { %v7679_v5 = vld [vmem:[#allocation5 + $0x208] ss:$16 sps:$4 sm:$0xff]   ;;  %v7687_v7 = vld [vmem:[#allocation5 + $0x22c] ss:$16 sps:$4 sm:$0xff]   ;;  %v7690_v10 = vld [vmem:[#allocation5 + $0x244] ss:$16 sps:$4 sm:$0xff]  }
  0x75   :  { %v7685_v9 = vld [vmem:[#allocation5 + $0x228] ss:$16 sps:$4 sm:$0xff]   ;;  %v7693_v11 = vld [vmem:[#allocation5 + $0x24c] ss:$16 sps:$4 sm:$0xff]   ;;  %v7688_v12 = vld [vmem:[#allocation5 + $0x240] ss:$16 sps:$4 sm:$0xff]  }
  0x76   :  { %5073 = vmatpush1.bf16.msra.mxu0 %v7617_v26  ;;  %5632 = vmatpush1.bf16.msra.mxu1 %v7618_v27  ;;  %v7691_v13 = vld [vmem:[#allocation5 + $0x248] ss:$16 sps:$4 sm:$0xff]   ;;  %v7696_v14 = vld [vmem:[#allocation5 + $0x264] ss:$16 sps:$4 sm:$0xff]   ;;  %v7699_v15 = vld [vmem:[#allocation5 + $0x26c] ss:$16 sps:$4 sm:$0xff]  }
  0x77   :  { %5074 = vmatprep.subr.bf16.mxu0 %v7619_v28  ;;  %5633 = vmatprep.subr.bf16.mxu1 %v7621_v29  ;;  %v7694_v16 = vld [vmem:[#allocation5 + $0x260] ss:$16 sps:$4 sm:$0xff]   ;;  %v7697_v17 = vld [vmem:[#allocation5 + $0x268] ss:$16 sps:$4 sm:$0xff]   ;;  %v7702_v18 = vld [vmem:[#allocation5 + $0x284] ss:$16 sps:$4 sm:$0xff]  }
  0x78   :  { %v7705_v19 = vld [vmem:[#allocation5 + $0x28c] ss:$16 sps:$4 sm:$0xff]   ;;  %v7700_v20 = vld [vmem:[#allocation5 + $0x280] ss:$16 sps:$4 sm:$0xff]   ;;  %v7703_v21 = vld [vmem:[#allocation5 + $0x288] ss:$16 sps:$4 sm:$0xff]  }
  0x79   :  { %v7708_v22 = vld [vmem:[#allocation5 + $0x2a4] ss:$16 sps:$4 sm:$0xff]   ;;  %v7711_v23 = vld [vmem:[#allocation5 + $0x2ac] ss:$16 sps:$4 sm:$0xff]   ;;  %v7706_v24 = vld [vmem:[#allocation5 + $0x2a0] ss:$16 sps:$4 sm:$0xff]  }
  0x7a   :  { %5075 = vmatpush1.bf16.msra.mxu0 %v7623_v30  ;;  %5634 = vmatpush1.bf16.msra.mxu1 %v7624_v31  ;;  %v7709_v25 = vld [vmem:[#allocation5 + $0x2a8] ss:$16 sps:$4 sm:$0xff]   ;;  %v7714_v26 = vld [vmem:[#allocation5 + $0x2c4] ss:$16 sps:$4 sm:$0xff]   ;;  %v7717_v27 = vld [vmem:[#allocation5 + $0x2cc] ss:$16 sps:$4 sm:$0xff]  }
  0x7b   :  { %5076 = vmatprep.subr.bf16.mxu0 %v7625_v32  ;;  %5635 = vmatprep.subr.bf16.mxu1 %v7627_v33  ;;  %v7712_v28 = vld [vmem:[#allocation5 + $0x2c0] ss:$16 sps:$4 sm:$0xff]   ;;  %v7715_v29 = vld [vmem:[#allocation5 + $0x2c8] ss:$16 sps:$4 sm:$0xff]   ;;  %v7720_v31 = vld [vmem:[#allocation5 + $0x2e4] ss:$16 sps:$4 sm:$0xff]  }
  0x7c   :  { %v7774_v30 = vld [vmem:[#allocation2 + $0xc] ss:$100 sps:$4 sm:$0xff]   ;;  %v7723_v32 = vld [vmem:[#allocation5 + $0x2ec] ss:$16 sps:$4 sm:$0xff]   ;;  %v7718_v33 = vld [vmem:[#allocation5 + $0x2e0] ss:$16 sps:$4 sm:$0xff]  }
  0x7d   :  { %v7747_v48 = vld [vmem:[#allocation5 + $0x36c] ss:$16 sps:$4 sm:$0xff]   ;;  %s8998_s4 = smov [#allocation11]  }
  0x7e   :  { %5077 = vmatpush1.bf16.msra.mxu0 %v7629_v34  ;;  %5636 = vmatpush1.bf16.msra.mxu1 %v7630_v35  ;;  %v7721_v34 = vld [vmem:[#allocation5 + $0x2e8] ss:$16 sps:$4 sm:$0xff]   ;;  %v7726_v35 = vld [vmem:[#allocation5 + $0x304] ss:$16 sps:$4 sm:$0xff]   ;;  %s6542_s3 = sshll.u32 %s8998_s4, 4  ;;  %s6543_s3 = int_to_ptr.vmem [resolvable:$true] %s6542_s3 }
  0x7f   :  { %5078 = vmatprep.subr.bf16.mxu0 %v7631_v36  ;;  %5637 = vmatprep.subr.bf16.mxu1 %v7633_v37  ;;  %v7729_v36 = vld [vmem:[#allocation5 + $0x30c] ss:$16 sps:$4 sm:$0xff]   ;;  %v7724_v37 = vld [vmem:[#allocation5 + $0x300] ss:$16 sps:$4 sm:$0xff]   ;;  %s8956_s30 = scalar_lea.vmem %s6543_s3, 256  ;;  %p8961_p13 = scmp.lt.s32.totalorder %s6543_s3, %s6543_s3 }
  0x80   :  { %p8957_p12 = scmp.ne.s32.totalorder %s6543_s3, %s8956_s30  ;;  %p8962_p0 = scmp.lt.s32.totalorder %s8956_s30, %s8956_s30 }
  0x82   :  { %5079 = vmatpush1.bf16.msra.mxu0 %v7635_v38  ;;  %5638 = vmatpush1.bf16.msra.mxu1 %v7636_v39  ;;  %v7727_v38 = vld [vmem:[#allocation5 + $0x308] ss:$16 sps:$4 sm:$0xff]   ;;  %v7732_v39 = vld [vmem:[#allocation5 + $0x324] ss:$16 sps:$4 sm:$0xff]   ;;  %p8963_p1 = por %p8962_p0, %p8961_p13 }
  0x83   :  { %5080 = vmatprep.subr.bf16.mxu0 %v7637_v40  ;;  %5639 = vmatprep.subr.bf16.mxu1 %v7639_v41  ;;  %v7735_v40 = vld [vmem:[#allocation5 + $0x32c] ss:$16 sps:$4 sm:$0xff]   ;;  %v7730_v41 = vld [vmem:[#allocation5 + $0x320] ss:$16 sps:$4 sm:$0xff]  }
  0x84   :  { %p8964_p2 = pnand %p8963_p1, %p8957_p12 }
  0x86   :  { %5081 = vmatpush1.bf16.msra.mxu0 %v7641_v42  ;;  %5640 = vmatpush1.bf16.msra.mxu1 %v7642_v43  ;;  %v7733_v42 = vld [vmem:[#allocation5 + $0x328] ss:$16 sps:$4 sm:$0xff]   ;;  %v7738_v43 = vld [vmem:[#allocation5 + $0x344] ss:$16 sps:$4 sm:$0xff]  }
  0x87   :  { %5082 = vmatprep.subr.bf16.mxu0 %v7643_v44  ;;  %5641 = vmatprep.subr.bf16.mxu1 %v7645_v45  ;;  %v7741_v44 = vld [vmem:[#allocation5 + $0x34c] ss:$16 sps:$4 sm:$0xff]   ;;  %v7736_v45 = vld [vmem:[#allocation5 + $0x340] ss:$16 sps:$4 sm:$0xff]  }
  0x8a   :  { %5083 = vmatpush1.bf16.msra.mxu0 %v7647_v46  ;;  %5642 = vmatpush1.bf16.msra.mxu1 %v7648_v47  ;;  %v7739_v46 = vld [vmem:[#allocation5 + $0x348] ss:$16 sps:$4 sm:$0xff]   ;;  %v7744_v47 = vld [vmem:[#allocation5 + $0x364] ss:$16 sps:$4 sm:$0xff]  }
  0x8b   :  { %5084 = vmatprep.subr.bf16.mxu0 %v7649_v49  ;;  %5643 = vmatprep.subr.bf16.mxu1 %v7651_v50  ;;  %v7742_v49 = vld [vmem:[#allocation5 + $0x360] ss:$16 sps:$4 sm:$0xff]   ;;  %v7745_v50 = vld [vmem:[#allocation5 + $0x368] ss:$16 sps:$4 sm:$0xff]  }
  0x8e   :  { %5085 = vmatpush1.bf16.msra.mxu0 %v7653_v51  ;;  %5644 = vmatpush1.bf16.msra.mxu1 %v7654_v52  ;;  %v7750_v51 = vld [vmem:[#allocation5 + $0x384] ss:$16 sps:$4 sm:$0xff]   ;;  %v7753_v52 = vld [vmem:[#allocation5 + $0x38c] ss:$16 sps:$4 sm:$0xff]  }
  0x8f   :  { %5086 = vmatprep.subr.bf16.mxu0 %v7655_v53  ;;  %5645 = vmatprep.subr.bf16.mxu1 %v7657_v54  ;;  %v7748_v53 = vld [vmem:[#allocation5 + $0x380] ss:$16 sps:$4 sm:$0xff]   ;;  %v7751_v54 = vld [vmem:[#allocation5 + $0x388] ss:$16 sps:$4 sm:$0xff]  }
  0x92   :  { %5087 = vmatpush1.bf16.msra.mxu0 %v7659_v55  ;;  %5646 = vmatpush1.bf16.msra.mxu1 %v7660_v56  ;;  %v7756_v55 = vld [vmem:[#allocation5 + $0x3a4] ss:$16 sps:$4 sm:$0xff]   ;;  %v7759_v56 = vld [vmem:[#allocation5 + $0x3ac] ss:$16 sps:$4 sm:$0xff]  }
  0x93   :  { %5088 = vmatprep.subr.bf16.mxu0 %v7661_v57  ;;  %5647 = vmatprep.subr.bf16.mxu1 %v7663_v58  ;;  %v7754_v57 = vld [vmem:[#allocation5 + $0x3a0] ss:$16 sps:$4 sm:$0xff]   ;;  %v7757_v58 = vld [vmem:[#allocation5 + $0x3a8] ss:$16 sps:$4 sm:$0xff]  }
  0x96   :  { %5089 = vmatpush1.bf16.msra.mxu0 %v7665_v59  ;;  %5648 = vmatpush1.bf16.msra.mxu1 %v7666_v60  ;;  %v7762_v59 = vld [vmem:[#allocation5 + $0x3c4] ss:$16 sps:$4 sm:$0xff]   ;;  %v7765_v60 = vld [vmem:[#allocation5 + $0x3cc] ss:$16 sps:$4 sm:$0xff]  }
  0x97   :  { %5090 = vmatprep.subr.bf16.mxu0 %v7667_v61  ;;  %5649 = vmatprep.subr.bf16.mxu1 %v7669_v62  ;;  %v7760_v61 = vld [vmem:[#allocation5 + $0x3c0] ss:$16 sps:$4 sm:$0xff]   ;;  %v7763_v62 = vld [vmem:[#allocation5 + $0x3c8] ss:$16 sps:$4 sm:$0xff]  }
  0x9a   :  { %5091 = vmatpush1.bf16.msra.mxu0 %v7671_v63  ;;  %5650 = vmatpush1.bf16.msra.mxu1 %v7672_v0  ;;  %v7768_v63 = vld [vmem:[#allocation5 + $0x3e4] ss:$16 sps:$4 sm:$0xff]   ;;  %v7771_v0 = vld [vmem:[#allocation5 + $0x3ec] ss:$16 sps:$4 sm:$0xff]  }
  0x9b   :  { %5103 = vmatprep.subr.bf16.mxu0 %v7678_v1  ;;  %5662 = vmatprep.subr.bf16.mxu1 %v7681_v2  ;;  %v7766_v1 = vld [vmem:[#allocation5 + $0x3e0] ss:$16 sps:$4 sm:$0xff]   ;;  %v7769_v2 = vld [vmem:[#allocation5 + $0x3e8] ss:$16 sps:$4 sm:$0xff]  }
  0x9d   :  { %5093 = vmatmul.mubr.bf16.vlgmr.msra.gmra.mrb[0].mxu0 %v7673_v3  ;;  %5652 = vmatmul.mubr.bf16.vlgmr.msra.gmra.mrb[0].mxu1 %v7673_v3  ;;  %v7777_v3 = vld [vmem:[#allocation5 + $0x404] ss:$16 sps:$4 sm:$0xff]  }
  0x9e   :  { %5104 = vmatpush1.bf16.msra.mxu0 %v7676_v4  ;;  %5663 = vmatpush1.bf16.msra.mxu1 %v7679_v5  ;;  %v7780_v4 = vld [vmem:[#allocation5 + $0x40c] ss:$16 sps:$4 sm:$0xff]   ;;  %v7772_v5 = vld [vmem:[#allocation2 + $0x8] ss:$100 sps:$4 sm:$0xff]  }
  0x9f   :  { %5105 = vmatprep.subr.bf16.mxu0 %v7684_v6  ;;  %5664 = vmatprep.subr.bf16.mxu1 %v7687_v7  ;;  %v7775_v6 = vld [vmem:[#allocation5 + $0x400] ss:$16 sps:$4 sm:$0xff]   ;;  %v7778_v7 = vld [vmem:[#allocation5 + $0x408] ss:$16 sps:$4 sm:$0xff]  }
  0xa0   :  { %5135 = vmatprep.mubr.bf16.mxu0 %v7774_v30  ;;  %5694 = vmatprep.mubr.bf16.mxu1 %v7774_v30  ;;  %v7816_v30 = vld [vmem:[#allocation5 + $0x4cc] ss:$16 sps:$4 sm:$0xff]  }
  0xa2   :  { %5106 = vmatpush1.bf16.msra.mxu0 %v7682_v8  ;;  %5665 = vmatpush1.bf16.msra.mxu1 %v7685_v9  ;;  %v7783_v8 = vld [vmem:[#allocation5 + $0x424] ss:$16 sps:$4 sm:$0xff]   ;;  %v7786_v9 = vld [vmem:[#allocation5 + $0x42c] ss:$16 sps:$4 sm:$0xff]  }
  0xa3   :  { %5107 = vmatprep.subr.bf16.mxu0 %v7690_v10  ;;  %5666 = vmatprep.subr.bf16.mxu1 %v7693_v11  ;;  %v7781_v10 = vld [vmem:[#allocation5 + $0x420] ss:$16 sps:$4 sm:$0xff]   ;;  %v7784_v11 = vld [vmem:[#allocation5 + $0x428] ss:$16 sps:$4 sm:$0xff]  }
  0xa6   :  { %5108 = vmatpush1.bf16.msra.mxu0 %v7688_v12  ;;  %5667 = vmatpush1.bf16.msra.mxu1 %v7691_v13  ;;  %v7873_v12 = vld [vmem:[#allocation2 + $0x14] ss:$100 sps:$4 sm:$0xff]   ;;  %v7789_v13 = vld [vmem:[#allocation5 + $0x444] ss:$16 sps:$4 sm:$0xff]  }
  0xa7   :  { %5109 = vmatprep.subr.bf16.mxu0 %v7696_v14  ;;  %5668 = vmatprep.subr.bf16.mxu1 %v7699_v15  ;;  %v7792_v14 = vld [vmem:[#allocation5 + $0x44c] ss:$16 sps:$4 sm:$0xff]   ;;  %v7787_v15 = vld [vmem:[#allocation5 + $0x440] ss:$16 sps:$4 sm:$0xff]  }
  0xaa   :  { %5110 = vmatpush1.bf16.msra.mxu0 %v7694_v16  ;;  %5669 = vmatpush1.bf16.msra.mxu1 %v7697_v17  ;;  %v7790_v16 = vld [vmem:[#allocation5 + $0x448] ss:$16 sps:$4 sm:$0xff]   ;;  %v7795_v17 = vld [vmem:[#allocation5 + $0x464] ss:$16 sps:$4 sm:$0xff]  }
  0xab   :  { %5111 = vmatprep.subr.bf16.mxu0 %v7702_v18  ;;  %5670 = vmatprep.subr.bf16.mxu1 %v7705_v19  ;;  %v7798_v18 = vld [vmem:[#allocation5 + $0x46c] ss:$16 sps:$4 sm:$0xff]   ;;  %v7793_v19 = vld [vmem:[#allocation5 + $0x460] ss:$16 sps:$4 sm:$0xff]  }
  0xae   :  { %5112 = vmatpush1.bf16.msra.mxu0 %v7700_v20  ;;  %5671 = vmatpush1.bf16.msra.mxu1 %v7703_v21  ;;  %v7796_v20 = vld [vmem:[#allocation5 + $0x468] ss:$16 sps:$4 sm:$0xff]   ;;  %v7801_v21 = vld [vmem:[#allocation5 + $0x484] ss:$16 sps:$4 sm:$0xff]  }
  0xaf   :  { %5113 = vmatprep.subr.bf16.mxu0 %v7708_v22  ;;  %5672 = vmatprep.subr.bf16.mxu1 %v7711_v23  ;;  %v7804_v22 = vld [vmem:[#allocation5 + $0x48c] ss:$16 sps:$4 sm:$0xff]   ;;  %v7799_v23 = vld [vmem:[#allocation5 + $0x480] ss:$16 sps:$4 sm:$0xff]  }
  0xb2   :  { %5114 = vmatpush1.bf16.msra.mxu0 %v7706_v24  ;;  %5673 = vmatpush1.bf16.msra.mxu1 %v7709_v25  ;;  %v7802_v24 = vld [vmem:[#allocation5 + $0x488] ss:$16 sps:$4 sm:$0xff]   ;;  %v7807_v25 = vld [vmem:[#allocation5 + $0x4a4] ss:$16 sps:$4 sm:$0xff]  }
  0xb3   :  { %5115 = vmatprep.subr.bf16.mxu0 %v7714_v26  ;;  %5674 = vmatprep.subr.bf16.mxu1 %v7717_v27  ;;  %v7810_v26 = vld [vmem:[#allocation5 + $0x4ac] ss:$16 sps:$4 sm:$0xff]   ;;  %v7805_v27 = vld [vmem:[#allocation5 + $0x4a0] ss:$16 sps:$4 sm:$0xff]  }
  0xb6   :  { %5116 = vmatpush1.bf16.msra.mxu0 %v7712_v28  ;;  %5675 = vmatpush1.bf16.msra.mxu1 %v7715_v29  ;;  %v7808_v28 = vld [vmem:[#allocation5 + $0x4a8] ss:$16 sps:$4 sm:$0xff]   ;;  %v7813_v29 = vld [vmem:[#allocation5 + $0x4c4] ss:$16 sps:$4 sm:$0xff]  }
  0xb7   :  { %5117 = vmatprep.subr.bf16.mxu0 %v7720_v31  ;;  %5676 = vmatprep.subr.bf16.mxu1 %v7723_v32  ;;  %v7811_v31 = vld [vmem:[#allocation5 + $0x4c0] ss:$16 sps:$4 sm:$0xff]   ;;  %v7814_v32 = vld [vmem:[#allocation5 + $0x4c8] ss:$16 sps:$4 sm:$0xff]  }
  0xba   :  { %5118 = vmatpush1.bf16.msra.mxu0 %v7718_v33  ;;  %5677 = vmatpush1.bf16.msra.mxu1 %v7721_v34  ;;  %v7819_v33 = vld [vmem:[#allocation5 + $0x4e4] ss:$16 sps:$4 sm:$0xff]   ;;  %v7822_v34 = vld [vmem:[#allocation5 + $0x4ec] ss:$16 sps:$4 sm:$0xff]  }
  0xbb   :  { %5119 = vmatprep.subr.bf16.mxu0 %v7726_v35  ;;  %5678 = vmatprep.subr.bf16.mxu1 %v7729_v36  ;;  %v7817_v35 = vld [vmem:[#allocation5 + $0x4e0] ss:$16 sps:$4 sm:$0xff]   ;;  %v7820_v36 = vld [vmem:[#allocation5 + $0x4e8] ss:$16 sps:$4 sm:$0xff]  }
  0xbe   :  { %5120 = vmatpush1.bf16.msra.mxu0 %v7724_v37  ;;  %5679 = vmatpush1.bf16.msra.mxu1 %v7727_v38  ;;  %v7825_v37 = vld [vmem:[#allocation5 + $0x504] ss:$16 sps:$4 sm:$0xff]   ;;  %v7828_v38 = vld [vmem:[#allocation5 + $0x50c] ss:$16 sps:$4 sm:$0xff]  }
  0xbf   :  { %5121 = vmatprep.subr.bf16.mxu0 %v7732_v39  ;;  %5680 = vmatprep.subr.bf16.mxu1 %v7735_v40  ;;  %v7823_v39 = vld [vmem:[#allocation5 + $0x500] ss:$16 sps:$4 sm:$0xff]   ;;  %v7826_v40 = vld [vmem:[#allocation5 + $0x508] ss:$16 sps:$4 sm:$0xff]  }
  0xc2   :  { %5122 = vmatpush1.bf16.msra.mxu0 %v7730_v41  ;;  %5681 = vmatpush1.bf16.msra.mxu1 %v7733_v42  ;;  %v7831_v41 = vld [vmem:[#allocation5 + $0x524] ss:$16 sps:$4 sm:$0xff]   ;;  %v7834_v42 = vld [vmem:[#allocation5 + $0x52c] ss:$16 sps:$4 sm:$0xff]  }
  0xc3   :  { %5123 = vmatprep.subr.bf16.mxu0 %v7738_v43  ;;  %5682 = vmatprep.subr.bf16.mxu1 %v7741_v44  ;;  %v7829_v43 = vld [vmem:[#allocation5 + $0x520] ss:$16 sps:$4 sm:$0xff]   ;;  %v7832_v44 = vld [vmem:[#allocation5 + $0x528] ss:$16 sps:$4 sm:$0xff]  }
  0xc6   :  { %5124 = vmatpush1.bf16.msra.mxu0 %v7736_v45  ;;  %5683 = vmatpush1.bf16.msra.mxu1 %v7739_v46  ;;  %v7837_v45 = vld [vmem:[#allocation5 + $0x544] ss:$16 sps:$4 sm:$0xff]   ;;  %v7840_v46 = vld [vmem:[#allocation5 + $0x54c] ss:$16 sps:$4 sm:$0xff]  }
  0xc7   :  { %5125 = vmatprep.subr.bf16.mxu0 %v7744_v47  ;;  %5684 = vmatprep.subr.bf16.mxu1 %v7747_v48  ;;  %v7835_v47 = vld [vmem:[#allocation5 + $0x540] ss:$16 sps:$4 sm:$0xff]   ;;  %v7838_v48 = vld [vmem:[#allocation5 + $0x548] ss:$16 sps:$4 sm:$0xff]  }
  0xca   :  { %5126 = vmatpush1.bf16.msra.mxu0 %v7742_v49  ;;  %5685 = vmatpush1.bf16.msra.mxu1 %v7745_v50  ;;  %v7843_v49 = vld [vmem:[#allocation5 + $0x564] ss:$16 sps:$4 sm:$0xff]   ;;  %v7846_v50 = vld [vmem:[#allocation5 + $0x56c] ss:$16 sps:$4 sm:$0xff]  }
  0xcb   :  { %5127 = vmatprep.subr.bf16.mxu0 %v7750_v51  ;;  %5686 = vmatprep.subr.bf16.mxu1 %v7753_v52  ;;  %v7841_v51 = vld [vmem:[#allocation5 + $0x560] ss:$16 sps:$4 sm:$0xff]   ;;  %v7844_v52 = vld [vmem:[#allocation5 + $0x568] ss:$16 sps:$4 sm:$0xff]  }
  0xce   :  { %5128 = vmatpush1.bf16.msra.mxu0 %v7748_v53  ;;  %5687 = vmatpush1.bf16.msra.mxu1 %v7751_v54  ;;  %v7849_v53 = vld [vmem:[#allocation5 + $0x584] ss:$16 sps:$4 sm:$0xff]   ;;  %v7852_v54 = vld [vmem:[#allocation5 + $0x58c] ss:$16 sps:$4 sm:$0xff]  }
  0xcf   :  { %5129 = vmatprep.subr.bf16.mxu0 %v7756_v55  ;;  %5688 = vmatprep.subr.bf16.mxu1 %v7759_v56  ;;  %v7847_v55 = vld [vmem:[#allocation5 + $0x580] ss:$16 sps:$4 sm:$0xff]   ;;  %v7850_v56 = vld [vmem:[#allocation5 + $0x588] ss:$16 sps:$4 sm:$0xff]  }
  0xd2   :  { %5130 = vmatpush1.bf16.msra.mxu0 %v7754_v57  ;;  %5689 = vmatpush1.bf16.msra.mxu1 %v7757_v58  ;;  %v7855_v57 = vld [vmem:[#allocation5 + $0x5a4] ss:$16 sps:$4 sm:$0xff]   ;;  %v7858_v58 = vld [vmem:[#allocation5 + $0x5ac] ss:$16 sps:$4 sm:$0xff]  }
  0xd3   :  { %5131 = vmatprep.subr.bf16.mxu0 %v7762_v59  ;;  %5690 = vmatprep.subr.bf16.mxu1 %v7765_v60  ;;  %v7853_v59 = vld [vmem:[#allocation5 + $0x5a0] ss:$16 sps:$4 sm:$0xff]   ;;  %v7856_v60 = vld [vmem:[#allocation5 + $0x5a8] ss:$16 sps:$4 sm:$0xff]  }
  0xd6   :  { %5132 = vmatpush1.bf16.msra.mxu0 %v7760_v61  ;;  %5691 = vmatpush1.bf16.msra.mxu1 %v7763_v62  ;;  %v7861_v61 = vld [vmem:[#allocation5 + $0x5c4] ss:$16 sps:$4 sm:$0xff]   ;;  %v7864_v62 = vld [vmem:[#allocation5 + $0x5cc] ss:$16 sps:$4 sm:$0xff]  }
  0xd7   :  { %5133 = vmatprep.subr.bf16.mxu0 %v7768_v63  ;;  %5692 = vmatprep.subr.bf16.mxu1 %v7771_v0  ;;  %v7859_v63 = vld [vmem:[#allocation5 + $0x5c0] ss:$16 sps:$4 sm:$0xff]   ;;  %v7862_v0 = vld [vmem:[#allocation5 + $0x5c8] ss:$16 sps:$4 sm:$0xff]  }
  0xda   :  { %5134 = vmatpush1.bf16.msra.mxu0 %v7766_v1  ;;  %5693 = vmatpush1.bf16.msra.mxu1 %v7769_v2  ;;  %v7867_v1 = vld [vmem:[#allocation5 + $0x5e4] ss:$16 sps:$4 sm:$0xff]   ;;  %v7870_v2 = vld [vmem:[#allocation5 + $0x5ec] ss:$16 sps:$4 sm:$0xff]  }
  0xdb   :  { %5146 = vmatprep.subr.bf16.mxu0 %v7777_v3  ;;  %5705 = vmatprep.subr.bf16.mxu1 %v7780_v4  ;;  %v7865_v3 = vld [vmem:[#allocation5 + $0x5e0] ss:$16 sps:$4 sm:$0xff]   ;;  %v7868_v4 = vld [vmem:[#allocation5 + $0x5e8] ss:$16 sps:$4 sm:$0xff]  }
  0xdd   :  { %5136 = vmatmul.mubr.bf16.vlgmr.msra.gmra.mrb[0].mxu0 %v7772_v5  ;;  %5695 = vmatmul.mubr.bf16.vlgmr.msra.gmra.mrb[0].mxu1 %v7772_v5  ;;  %v7876_v5 = vld [vmem:[#allocation5 + $0x604] ss:$16 sps:$4 sm:$0xff]  }
  0xde   :  { %5147 = vmatpush1.bf16.msra.mxu0 %v7775_v6  ;;  %5706 = vmatpush1.bf16.msra.mxu1 %v7778_v7  ;;  %v7879_v6 = vld [vmem:[#allocation5 + $0x60c] ss:$16 sps:$4 sm:$0xff]  }
  0xdf   :  { %5148 = vmatprep.subr.bf16.mxu0 %v7783_v8  ;;  %5707 = vmatprep.subr.bf16.mxu1 %v7786_v9  ;;  %v7871_v7 = vld [vmem:[#allocation2 + $0x10] ss:$100 sps:$4 sm:$0xff]   ;;  %v7874_v8 = vld [vmem:[#allocation5 + $0x600] ss:$16 sps:$4 sm:$0xff]  }
  0xe0   :  { %5178 = vmatprep.mubr.bf16.mxu0 %v7873_v12  ;;  %5737 = vmatprep.mubr.bf16.mxu1 %v7873_v12  ;;  %v7877_v9 = vld [vmem:[#allocation5 + $0x608] ss:$16 sps:$4 sm:$0xff]  }
  0xe1   :  { %v7972_v12 = vld [vmem:[#allocation2 + $0x1c] ss:$100 sps:$4 sm:$0xff]  }
  0xe2   :  { %5149 = vmatpush1.bf16.msra.mxu0 %v7781_v10  ;;  %5708 = vmatpush1.bf16.msra.mxu1 %v7784_v11  ;;  %v7882_v10 = vld [vmem:[#allocation5 + $0x624] ss:$16 sps:$4 sm:$0xff]   ;;  %v7885_v11 = vld [vmem:[#allocation5 + $0x62c] ss:$16 sps:$4 sm:$0xff]  }
  0xe3   :  { %5150 = vmatprep.subr.bf16.mxu0 %v7789_v13  ;;  %5709 = vmatprep.subr.bf16.mxu1 %v7792_v14  ;;  %v7880_v13 = vld [vmem:[#allocation5 + $0x620] ss:$16 sps:$4 sm:$0xff]   ;;  %v7883_v14 = vld [vmem:[#allocation5 + $0x628] ss:$16 sps:$4 sm:$0xff]  }
  0xe6   :  { %5151 = vmatpush1.bf16.msra.mxu0 %v7787_v15  ;;  %5710 = vmatpush1.bf16.msra.mxu1 %v7790_v16  ;;  %v7888_v15 = vld [vmem:[#allocation5 + $0x644] ss:$16 sps:$4 sm:$0xff]   ;;  %v7891_v16 = vld [vmem:[#allocation5 + $0x64c] ss:$16 sps:$4 sm:$0xff]  }
  0xe7   :  { %5152 = vmatprep.subr.bf16.mxu0 %v7795_v17  ;;  %5711 = vmatprep.subr.bf16.mxu1 %v7798_v18  ;;  %v7886_v17 = vld [vmem:[#allocation5 + $0x640] ss:$16 sps:$4 sm:$0xff]   ;;  %v7889_v18 = vld [vmem:[#allocation5 + $0x648] ss:$16 sps:$4 sm:$0xff]  }
  0xea   :  { %5153 = vmatpush1.bf16.msra.mxu0 %v7793_v19  ;;  %5712 = vmatpush1.bf16.msra.mxu1 %v7796_v20  ;;  %v7894_v19 = vld [vmem:[#allocation5 + $0x664] ss:$16 sps:$4 sm:$0xff]   ;;  %v7897_v20 = vld [vmem:[#allocation5 + $0x66c] ss:$16 sps:$4 sm:$0xff]  }
  0xeb   :  { %5154 = vmatprep.subr.bf16.mxu0 %v7801_v21  ;;  %5713 = vmatprep.subr.bf16.mxu1 %v7804_v22  ;;  %v7892_v21 = vld [vmem:[#allocation5 + $0x660] ss:$16 sps:$4 sm:$0xff]   ;;  %v7895_v22 = vld [vmem:[#allocation5 + $0x668] ss:$16 sps:$4 sm:$0xff]  }
  0xee   :  { %5155 = vmatpush1.bf16.msra.mxu0 %v7799_v23  ;;  %5714 = vmatpush1.bf16.msra.mxu1 %v7802_v24  ;;  %v7900_v23 = vld [vmem:[#allocation5 + $0x684] ss:$16 sps:$4 sm:$0xff]   ;;  %v7903_v24 = vld [vmem:[#allocation5 + $0x68c] ss:$16 sps:$4 sm:$0xff]  }
  0xef   :  { %5156 = vmatprep.subr.bf16.mxu0 %v7807_v25  ;;  %5715 = vmatprep.subr.bf16.mxu1 %v7810_v26  ;;  %v7898_v25 = vld [vmem:[#allocation5 + $0x680] ss:$16 sps:$4 sm:$0xff]   ;;  %v7901_v26 = vld [vmem:[#allocation5 + $0x688] ss:$16 sps:$4 sm:$0xff]  }
  0xf2   :  { %5157 = vmatpush1.bf16.msra.mxu0 %v7805_v27  ;;  %5716 = vmatpush1.bf16.msra.mxu1 %v7808_v28  ;;  %v7906_v27 = vld [vmem:[#allocation5 + $0x6a4] ss:$16 sps:$4 sm:$0xff]   ;;  %v7909_v28 = vld [vmem:[#allocation5 + $0x6ac] ss:$16 sps:$4 sm:$0xff]  }
  0xf3   :  { %5158 = vmatprep.subr.bf16.mxu0 %v7813_v29  ;;  %5717 = vmatprep.subr.bf16.mxu1 %v7816_v30  ;;  %v7904_v29 = vld [vmem:[#allocation5 + $0x6a0] ss:$16 sps:$4 sm:$0xff]   ;;  %v7907_v30 = vld [vmem:[#allocation5 + $0x6a8] ss:$16 sps:$4 sm:$0xff]  }
  0xf6   :  { %5159 = vmatpush1.bf16.msra.mxu0 %v7811_v31  ;;  %5718 = vmatpush1.bf16.msra.mxu1 %v7814_v32  ;;  %v7912_v31 = vld [vmem:[#allocation5 + $0x6c4] ss:$16 sps:$4 sm:$0xff]   ;;  %v7915_v32 = vld [vmem:[#allocation5 + $0x6cc] ss:$16 sps:$4 sm:$0xff]  }
  0xf7   :  { %5160 = vmatprep.subr.bf16.mxu0 %v7819_v33  ;;  %5719 = vmatprep.subr.bf16.mxu1 %v7822_v34  ;;  %v7910_v33 = vld [vmem:[#allocation5 + $0x6c0] ss:$16 sps:$4 sm:$0xff]   ;;  %v7913_v34 = vld [vmem:[#allocation5 + $0x6c8] ss:$16 sps:$4 sm:$0xff]  }
  0xfa   :  { %5161 = vmatpush1.bf16.msra.mxu0 %v7817_v35  ;;  %5720 = vmatpush1.bf16.msra.mxu1 %v7820_v36  ;;  %v7918_v35 = vld [vmem:[#allocation5 + $0x6e4] ss:$16 sps:$4 sm:$0xff]   ;;  %v7921_v36 = vld [vmem:[#allocation5 + $0x6ec] ss:$16 sps:$4 sm:$0xff]  }
  0xfb   :  { %5162 = vmatprep.subr.bf16.mxu0 %v7825_v37  ;;  %5721 = vmatprep.subr.bf16.mxu1 %v7828_v38  ;;  %v7916_v37 = vld [vmem:[#allocation5 + $0x6e0] ss:$16 sps:$4 sm:$0xff]   ;;  %v7919_v38 = vld [vmem:[#allocation5 + $0x6e8] ss:$16 sps:$4 sm:$0xff]  }
  0xfe   :  { %5163 = vmatpush1.bf16.msra.mxu0 %v7823_v39  ;;  %5722 = vmatpush1.bf16.msra.mxu1 %v7826_v40  ;;  %v7924_v39 = vld [vmem:[#allocation5 + $0x704] ss:$16 sps:$4 sm:$0xff]   ;;  %v7927_v40 = vld [vmem:[#allocation5 + $0x70c] ss:$16 sps:$4 sm:$0xff]  }
  0xff   :  { %5164 = vmatprep.subr.bf16.mxu0 %v7831_v41  ;;  %5723 = vmatprep.subr.bf16.mxu1 %v7834_v42  ;;  %v7922_v41 = vld [vmem:[#allocation5 + $0x700] ss:$16 sps:$4 sm:$0xff]   ;;  %v7925_v42 = vld [vmem:[#allocation5 + $0x708] ss:$16 sps:$4 sm:$0xff]  }
 0x102   :  { %5165 = vmatpush1.bf16.msra.mxu0 %v7829_v43  ;;  %5724 = vmatpush1.bf16.msra.mxu1 %v7832_v44  ;;  %v7930_v43 = vld [vmem:[#allocation5 + $0x724] ss:$16 sps:$4 sm:$0xff]   ;;  %v7933_v44 = vld [vmem:[#allocation5 + $0x72c] ss:$16 sps:$4 sm:$0xff]  }
 0x103   :  { %5166 = vmatprep.subr.bf16.mxu0 %v7837_v45  ;;  %5725 = vmatprep.subr.bf16.mxu1 %v7840_v46  ;;  %v7928_v45 = vld [vmem:[#allocation5 + $0x720] ss:$16 sps:$4 sm:$0xff]   ;;  %v7931_v46 = vld [vmem:[#allocation5 + $0x728] ss:$16 sps:$4 sm:$0xff]  }
 0x106   :  { %5167 = vmatpush1.bf16.msra.mxu0 %v7835_v47  ;;  %5726 = vmatpush1.bf16.msra.mxu1 %v7838_v48  ;;  %v7936_v47 = vld [vmem:[#allocation5 + $0x744] ss:$16 sps:$4 sm:$0xff]   ;;  %v7939_v48 = vld [vmem:[#allocation5 + $0x74c] ss:$16 sps:$4 sm:$0xff]  }
 0x107   :  { %5168 = vmatprep.subr.bf16.mxu0 %v7843_v49  ;;  %5727 = vmatprep.subr.bf16.mxu1 %v7846_v50  ;;  %v7934_v49 = vld [vmem:[#allocation5 + $0x740] ss:$16 sps:$4 sm:$0xff]   ;;  %v7937_v50 = vld [vmem:[#allocation5 + $0x748] ss:$16 sps:$4 sm:$0xff]  }
 0x10a   :  { %5169 = vmatpush1.bf16.msra.mxu0 %v7841_v51  ;;  %5728 = vmatpush1.bf16.msra.mxu1 %v7844_v52  ;;  %v7942_v51 = vld [vmem:[#allocation5 + $0x764] ss:$16 sps:$4 sm:$0xff]   ;;  %v7945_v52 = vld [vmem:[#allocation5 + $0x76c] ss:$16 sps:$4 sm:$0xff]  }
 0x10b   :  { %5170 = vmatprep.subr.bf16.mxu0 %v7849_v53  ;;  %5729 = vmatprep.subr.bf16.mxu1 %v7852_v54  ;;  %v7940_v53 = vld [vmem:[#allocation5 + $0x760] ss:$16 sps:$4 sm:$0xff]   ;;  %v7943_v54 = vld [vmem:[#allocation5 + $0x768] ss:$16 sps:$4 sm:$0xff]  }
 0x10e   :  { %5171 = vmatpush1.bf16.msra.mxu0 %v7847_v55  ;;  %5730 = vmatpush1.bf16.msra.mxu1 %v7850_v56  ;;  %v7948_v55 = vld [vmem:[#allocation5 + $0x784] ss:$16 sps:$4 sm:$0xff]   ;;  %v7951_v56 = vld [vmem:[#allocation5 + $0x78c] ss:$16 sps:$4 sm:$0xff]  }
 0x10f   :  { %5172 = vmatprep.subr.bf16.mxu0 %v7855_v57  ;;  %5731 = vmatprep.subr.bf16.mxu1 %v7858_v58  ;;  %v7946_v57 = vld [vmem:[#allocation5 + $0x780] ss:$16 sps:$4 sm:$0xff]   ;;  %v7949_v58 = vld [vmem:[#allocation5 + $0x788] ss:$16 sps:$4 sm:$0xff]  }
 0x112   :  { %5173 = vmatpush1.bf16.msra.mxu0 %v7853_v59  ;;  %5732 = vmatpush1.bf16.msra.mxu1 %v7856_v60  ;;  %v7954_v59 = vld [vmem:[#allocation5 + $0x7a4] ss:$16 sps:$4 sm:$0xff]   ;;  %v7957_v60 = vld [vmem:[#allocation5 + $0x7ac] ss:$16 sps:$4 sm:$0xff]  }
 0x113   :  { %5174 = vmatprep.subr.bf16.mxu0 %v7861_v61  ;;  %5733 = vmatprep.subr.bf16.mxu1 %v7864_v62  ;;  %v7952_v61 = vld [vmem:[#allocation5 + $0x7a0] ss:$16 sps:$4 sm:$0xff]   ;;  %v7955_v62 = vld [vmem:[#allocation5 + $0x7a8] ss:$16 sps:$4 sm:$0xff]  }
 0x116   :  { %5175 = vmatpush1.bf16.msra.mxu0 %v7859_v63  ;;  %5734 = vmatpush1.bf16.msra.mxu1 %v7862_v0  ;;  %v7960_v63 = vld [vmem:[#allocation5 + $0x7c4] ss:$16 sps:$4 sm:$0xff]   ;;  %v7963_v0 = vld [vmem:[#allocation5 + $0x7cc] ss:$16 sps:$4 sm:$0xff]  }
 0x117   :  { %5176 = vmatprep.subr.bf16.mxu0 %v7867_v1  ;;  %5735 = vmatprep.subr.bf16.mxu1 %v7870_v2  ;;  %v7958_v1 = vld [vmem:[#allocation5 + $0x7c0] ss:$16 sps:$4 sm:$0xff]   ;;  %v7961_v2 = vld [vmem:[#allocation5 + $0x7c8] ss:$16 sps:$4 sm:$0xff]  }
 0x11a   :  { %5177 = vmatpush1.bf16.msra.mxu0 %v7865_v3  ;;  %5736 = vmatpush1.bf16.msra.mxu1 %v7868_v4  ;;  %v7966_v3 = vld [vmem:[#allocation5 + $0x7e4] ss:$16 sps:$4 sm:$0xff]   ;;  %v7969_v4 = vld [vmem:[#allocation5 + $0x7ec] ss:$16 sps:$4 sm:$0xff]  }
 0x11b   :  { %5189 = vmatprep.subr.bf16.mxu0 %v7876_v5  ;;  %5748 = vmatprep.subr.bf16.mxu1 %v7879_v6  ;;  %v7964_v5 = vld [vmem:[#allocation5 + $0x7e0] ss:$16 sps:$4 sm:$0xff]   ;;  %v7967_v6 = vld [vmem:[#allocation5 + $0x7e8] ss:$16 sps:$4 sm:$0xff]  }
 0x11d   :  { %5179 = vmatmul.mubr.bf16.vlgmr.msra.gmra.mrb[0].mxu0 %v7871_v7  ;;  %5738 = vmatmul.mubr.bf16.vlgmr.msra.gmra.mrb[0].mxu1 %v7871_v7  ;;  %v7975_v7 = vld [vmem:[#allocation5 + $0x804] ss:$16 sps:$4 sm:$0xff]  }
 0x11e   :  { %5190 = vmatpush1.bf16.msra.mxu0 %v7874_v8  ;;  %5749 = vmatpush1.bf16.msra.mxu1 %v7877_v9  ;;  %v7978_v8 = vld [vmem:[#allocation5 + $0x80c] ss:$16 sps:$4 sm:$0xff]   ;;  %v7970_v9 = vld [vmem:[#allocation2 + $0x18] ss:$100 sps:$4 sm:$0xff]  }
 0x11f   :  { %5191 = vmatprep.subr.bf16.mxu0 %v7882_v10  ;;  %5750 = vmatprep.subr.bf16.mxu1 %v7885_v11  ;;  %v7973_v10 = vld [vmem:[#allocation5 + $0x800] ss:$16 sps:$4 sm:$0xff]   ;;  %v7976_v11 = vld [vmem:[#allocation5 + $0x808] ss:$16 sps:$4 sm:$0xff]  }
 0x120   :  { %5221 = vmatprep.mubr.bf16.mxu0 %v7972_v12  ;;  %5780 = vmatprep.mubr.bf16.mxu1 %v7972_v12  ;;  %v7981_v12 = vld [vmem:[#allocation5 + $0x824] ss:$16 sps:$4 sm:$0xff]  }
 0x122   :  { %5192 = vmatpush1.bf16.msra.mxu0 %v7880_v13  ;;  %5751 = vmatpush1.bf16.msra.mxu1 %v7883_v14  ;;  %v7984_v13 = vld [vmem:[#allocation5 + $0x82c] ss:$16 sps:$4 sm:$0xff]  }
 0x123   :  { %5193 = vmatprep.subr.bf16.mxu0 %v7888_v15  ;;  %5752 = vmatprep.subr.bf16.mxu1 %v7891_v16  ;;  %v8071_v14 = vld [vmem:[#allocation2 + $0x24] ss:$100 sps:$4 sm:$0xff]   ;;  %v7982_v16 = vld [vmem:[#allocation5 + $0x828] ss:$16 sps:$4 sm:$0xff]  }
 0x124   :  { %v7979_v15 = vld [vmem:[#allocation5 + $0x820] ss:$16 sps:$4 sm:$0xff]  }
 0x126   :  { %5194 = vmatpush1.bf16.msra.mxu0 %v7886_v17  ;;  %5753 = vmatpush1.bf16.msra.mxu1 %v7889_v18  ;;  %v7987_v17 = vld [vmem:[#allocation5 + $0x844] ss:$16 sps:$4 sm:$0xff]   ;;  %v7990_v18 = vld [vmem:[#allocation5 + $0x84c] ss:$16 sps:$4 sm:$0xff]  }
 0x127   :  { %5195 = vmatprep.subr.bf16.mxu0 %v7894_v19  ;;  %5754 = vmatprep.subr.bf16.mxu1 %v7897_v20  ;;  %v7985_v19 = vld [vmem:[#allocation5 + $0x840] ss:$16 sps:$4 sm:$0xff]   ;;  %v7988_v20 = vld [vmem:[#allocation5 + $0x848] ss:$16 sps:$4 sm:$0xff]  }
 0x12a   :  { %5196 = vmatpush1.bf16.msra.mxu0 %v7892_v21  ;;  %5755 = vmatpush1.bf16.msra.mxu1 %v7895_v22  ;;  %v7993_v21 = vld [vmem:[#allocation5 + $0x864] ss:$16 sps:$4 sm:$0xff]   ;;  %v7996_v22 = vld [vmem:[#allocation5 + $0x86c] ss:$16 sps:$4 sm:$0xff]  }
 0x12b   :  { %5197 = vmatprep.subr.bf16.mxu0 %v7900_v23  ;;  %5756 = vmatprep.subr.bf16.mxu1 %v7903_v24  ;;  %v7991_v23 = vld [vmem:[#allocation5 + $0x860] ss:$16 sps:$4 sm:$0xff]   ;;  %v7994_v24 = vld [vmem:[#allocation5 + $0x868] ss:$16 sps:$4 sm:$0xff]  }
 0x12e   :  { %5198 = vmatpush1.bf16.msra.mxu0 %v7898_v25  ;;  %5757 = vmatpush1.bf16.msra.mxu1 %v7901_v26  ;;  %v7999_v25 = vld [vmem:[#allocation5 + $0x884] ss:$16 sps:$4 sm:$0xff]   ;;  %v8002_v26 = vld [vmem:[#allocation5 + $0x88c] ss:$16 sps:$4 sm:$0xff]  }
 0x12f   :  { %5199 = vmatprep.subr.bf16.mxu0 %v7906_v27  ;;  %5758 = vmatprep.subr.bf16.mxu1 %v7909_v28  ;;  %v7997_v27 = vld [vmem:[#allocation5 + $0x880] ss:$16 sps:$4 sm:$0xff]   ;;  %v8000_v28 = vld [vmem:[#allocation5 + $0x888] ss:$16 sps:$4 sm:$0xff]  }
 0x132   :  { %5200 = vmatpush1.bf16.msra.mxu0 %v7904_v29  ;;  %5759 = vmatpush1.bf16.msra.mxu1 %v7907_v30  ;;  %v8005_v29 = vld [vmem:[#allocation5 + $0x8a4] ss:$16 sps:$4 sm:$0xff]   ;;  %v8008_v30 = vld [vmem:[#allocation5 + $0x8ac] ss:$16 sps:$4 sm:$0xff]  }
 0x133   :  { %5201 = vmatprep.subr.bf16.mxu0 %v7912_v31  ;;  %5760 = vmatprep.subr.bf16.mxu1 %v7915_v32  ;;  %v8003_v31 = vld [vmem:[#allocation5 + $0x8a0] ss:$16 sps:$4 sm:$0xff]   ;;  %v8006_v32 = vld [vmem:[#allocation5 + $0x8a8] ss:$16 sps:$4 sm:$0xff]  }
 0x136   :  { %5202 = vmatpush1.bf16.msra.mxu0 %v7910_v33  ;;  %5761 = vmatpush1.bf16.msra.mxu1 %v7913_v34  ;;  %v8011_v33 = vld [vmem:[#allocation5 + $0x8c4] ss:$16 sps:$4 sm:$0xff]   ;;  %v8014_v34 = vld [vmem:[#allocation5 + $0x8cc] ss:$16 sps:$4 sm:$0xff]  }
 0x137   :  { %5203 = vmatprep.subr.bf16.mxu0 %v7918_v35  ;;  %5762 = vmatprep.subr.bf16.mxu1 %v7921_v36  ;;  %v8009_v35 = vld [vmem:[#allocation5 + $0x8c0] ss:$16 sps:$4 sm:$0xff]   ;;  %v8012_v36 = vld [vmem:[#allocation5 + $0x8c8] ss:$16 sps:$4 sm:$0xff]  }
 0x13a   :  { %5204 = vmatpush1.bf16.msra.mxu0 %v7916_v37  ;;  %5763 = vmatpush1.bf16.msra.mxu1 %v7919_v38  ;;  %v8017_v37 = vld [vmem:[#allocation5 + $0x8e4] ss:$16 sps:$4 sm:$0xff]   ;;  %v8020_v38 = vld [vmem:[#allocation5 + $0x8ec] ss:$16 sps:$4 sm:$0xff]  }
 0x13b   :  { %5205 = vmatprep.subr.bf16.mxu0 %v7924_v39  ;;  %5764 = vmatprep.subr.bf16.mxu1 %v7927_v40  ;;  %v8015_v39 = vld [vmem:[#allocation5 + $0x8e0] ss:$16 sps:$4 sm:$0xff]   ;;  %v8018_v40 = vld [vmem:[#allocation5 + $0x8e8] ss:$16 sps:$4 sm:$0xff]  }
 0x13e   :  { %5206 = vmatpush1.bf16.msra.mxu0 %v7922_v41  ;;  %5765 = vmatpush1.bf16.msra.mxu1 %v7925_v42  ;;  %v8023_v41 = vld [vmem:[#allocation5 + $0x904] ss:$16 sps:$4 sm:$0xff]   ;;  %v8026_v42 = vld [vmem:[#allocation5 + $0x90c] ss:$16 sps:$4 sm:$0xff]  }
 0x13f   :  { %5207 = vmatprep.subr.bf16.mxu0 %v7930_v43  ;;  %5766 = vmatprep.subr.bf16.mxu1 %v7933_v44  ;;  %v8021_v43 = vld [vmem:[#allocation5 + $0x900] ss:$16 sps:$4 sm:$0xff]   ;;  %v8024_v44 = vld [vmem:[#allocation5 + $0x908] ss:$16 sps:$4 sm:$0xff]  }
 0x142   :  { %5208 = vmatpush1.bf16.msra.mxu0 %v7928_v45  ;;  %5767 = vmatpush1.bf16.msra.mxu1 %v7931_v46  ;;  %v8029_v45 = vld [vmem:[#allocation5 + $0x924] ss:$16 sps:$4 sm:$0xff]   ;;  %v8032_v46 = vld [vmem:[#allocation5 + $0x92c] ss:$16 sps:$4 sm:$0xff]  }
 0x143   :  { %5209 = vmatprep.subr.bf16.mxu0 %v7936_v47  ;;  %5768 = vmatprep.subr.bf16.mxu1 %v7939_v48  ;;  %v8027_v47 = vld [vmem:[#allocation5 + $0x920] ss:$16 sps:$4 sm:$0xff]   ;;  %v8030_v48 = vld [vmem:[#allocation5 + $0x928] ss:$16 sps:$4 sm:$0xff]  }
 0x146   :  { %5210 = vmatpush1.bf16.msra.mxu0 %v7934_v49  ;;  %5769 = vmatpush1.bf16.msra.mxu1 %v7937_v50  ;;  %v8035_v49 = vld [vmem:[#allocation5 + $0x944] ss:$16 sps:$4 sm:$0xff]   ;;  %v8038_v50 = vld [vmem:[#allocation5 + $0x94c] ss:$16 sps:$4 sm:$0xff]  }
 0x147   :  { %5211 = vmatprep.subr.bf16.mxu0 %v7942_v51  ;;  %5770 = vmatprep.subr.bf16.mxu1 %v7945_v52  ;;  %v8033_v51 = vld [vmem:[#allocation5 + $0x940] ss:$16 sps:$4 sm:$0xff]   ;;  %v8036_v52 = vld [vmem:[#allocation5 + $0x948] ss:$16 sps:$4 sm:$0xff]  }
 0x14a   :  { %5212 = vmatpush1.bf16.msra.mxu0 %v7940_v53  ;;  %5771 = vmatpush1.bf16.msra.mxu1 %v7943_v54  ;;  %v8041_v53 = vld [vmem:[#allocation5 + $0x964] ss:$16 sps:$4 sm:$0xff]   ;;  %v8044_v54 = vld [vmem:[#allocation5 + $0x96c] ss:$16 sps:$4 sm:$0xff]  }
 0x14b   :  { %5213 = vmatprep.subr.bf16.mxu0 %v7948_v55  ;;  %5772 = vmatprep.subr.bf16.mxu1 %v7951_v56  ;;  %v8039_v55 = vld [vmem:[#allocation5 + $0x960] ss:$16 sps:$4 sm:$0xff]   ;;  %v8042_v56 = vld [vmem:[#allocation5 + $0x968] ss:$16 sps:$4 sm:$0xff]  }
 0x14e   :  { %5214 = vmatpush1.bf16.msra.mxu0 %v7946_v57  ;;  %5773 = vmatpush1.bf16.msra.mxu1 %v7949_v58  ;;  %v8047_v57 = vld [vmem:[#allocation5 + $0x984] ss:$16 sps:$4 sm:$0xff]   ;;  %v8050_v58 = vld [vmem:[#allocation5 + $0x98c] ss:$16 sps:$4 sm:$0xff]  }
 0x14f   :  { %5215 = vmatprep.subr.bf16.mxu0 %v7954_v59  ;;  %5774 = vmatprep.subr.bf16.mxu1 %v7957_v60  ;;  %v8045_v59 = vld [vmem:[#allocation5 + $0x980] ss:$16 sps:$4 sm:$0xff]   ;;  %v8048_v60 = vld [vmem:[#allocation5 + $0x988] ss:$16 sps:$4 sm:$0xff]  }
 0x152   :  { %5216 = vmatpush1.bf16.msra.mxu0 %v7952_v61  ;;  %5775 = vmatpush1.bf16.msra.mxu1 %v7955_v62  ;;  %v8053_v61 = vld [vmem:[#allocation5 + $0x9a4] ss:$16 sps:$4 sm:$0xff]   ;;  %v8056_v62 = vld [vmem:[#allocation5 + $0x9ac] ss:$16 sps:$4 sm:$0xff]  }
 0x153   :  { %5217 = vmatprep.subr.bf16.mxu0 %v7960_v63  ;;  %5776 = vmatprep.subr.bf16.mxu1 %v7963_v0  ;;  %v8051_v63 = vld [vmem:[#allocation5 + $0x9a0] ss:$16 sps:$4 sm:$0xff]   ;;  %v8054_v0 = vld [vmem:[#allocation5 + $0x9a8] ss:$16 sps:$4 sm:$0xff]  }
 0x156   :  { %5218 = vmatpush1.bf16.msra.mxu0 %v7958_v1  ;;  %5777 = vmatpush1.bf16.msra.mxu1 %v7961_v2  ;;  %v8059_v1 = vld [vmem:[#allocation5 + $0x9c4] ss:$16 sps:$4 sm:$0xff]   ;;  %v8062_v2 = vld [vmem:[#allocation5 + $0x9cc] ss:$16 sps:$4 sm:$0xff]  }
 0x157   :  { %5219 = vmatprep.subr.bf16.mxu0 %v7966_v3  ;;  %5778 = vmatprep.subr.bf16.mxu1 %v7969_v4  ;;  %v8057_v3 = vld [vmem:[#allocation5 + $0x9c0] ss:$16 sps:$4 sm:$0xff]   ;;  %v8060_v4 = vld [vmem:[#allocation5 + $0x9c8] ss:$16 sps:$4 sm:$0xff]  }
 0x15a   :  { %5220 = vmatpush1.bf16.msra.mxu0 %v7964_v5  ;;  %5779 = vmatpush1.bf16.msra.mxu1 %v7967_v6  ;;  %v8065_v5 = vld [vmem:[#allocation5 + $0x9e4] ss:$16 sps:$4 sm:$0xff]   ;;  %v8068_v6 = vld [vmem:[#allocation5 + $0x9ec] ss:$16 sps:$4 sm:$0xff]  }
 0x15b   :  { %5232 = vmatprep.subr.bf16.mxu0 %v7975_v7  ;;  %5791 = vmatprep.subr.bf16.mxu1 %v7978_v8  ;;  %v8063_v7 = vld [vmem:[#allocation5 + $0x9e0] ss:$16 sps:$4 sm:$0xff]   ;;  %v8066_v8 = vld [vmem:[#allocation5 + $0x9e8] ss:$16 sps:$4 sm:$0xff]  }
 0x15d   :  { %5222 = vmatmul.mubr.bf16.vlgmr.msra.gmra.mrb[0].mxu0 %v7970_v9  ;;  %5781 = vmatmul.mubr.bf16.vlgmr.msra.gmra.mrb[0].mxu1 %v7970_v9  ;;  %v8069_v9 = vld [vmem:[#allocation2 + $0x20] ss:$100 sps:$4 sm:$0xff]  }
 0x15e   :  { %5233 = vmatpush1.bf16.msra.mxu0 %v7973_v10  ;;  %5792 = vmatpush1.bf16.msra.mxu1 %v7976_v11  ;;  %v8074_v10 = vld [vmem:[#allocation5 + $0xa04] ss:$16 sps:$4 sm:$0xff]   ;;  %v8077_v11 = vld [vmem:[#allocation5 + $0xa0c] ss:$16 sps:$4 sm:$0xff]  }
 0x15f   :  { %5234 = vmatprep.subr.bf16.mxu0 %v7981_v12  ;;  %5793 = vmatprep.subr.bf16.mxu1 %v7984_v13  ;;  %v8072_v12 = vld [vmem:[#allocation5 + $0xa00] ss:$16 sps:$4 sm:$0xff]   ;;  %v8075_v13 = vld [vmem:[#allocation5 + $0xa08] ss:$16 sps:$4 sm:$0xff]  }
 0x160   :  { %5264 = vmatprep.mubr.bf16.mxu0 %v8071_v14  ;;  %5823 = vmatprep.mubr.bf16.mxu1 %v8071_v14  ;;  %v8080_v14 = vld [vmem:[#allocation5 + $0xa24] ss:$16 sps:$4 sm:$0xff]  }
 0x162   :  { %5235 = vmatpush1.bf16.msra.mxu0 %v7979_v15  ;;  %5794 = vmatpush1.bf16.msra.mxu1 %v7982_v16  ;;  %v8083_v15 = vld [vmem:[#allocation5 + $0xa2c] ss:$16 sps:$4 sm:$0xff]   ;;  %v8170_v16 = vld [vmem:[#allocation2 + $0x2c] ss:$100 sps:$4 sm:$0xff]  }
 0x163   :  { %5236 = vmatprep.subr.bf16.mxu0 %v7987_v17  ;;  %5795 = vmatprep.subr.bf16.mxu1 %v7990_v18  ;;  %v8078_v17 = vld [vmem:[#allocation5 + $0xa20] ss:$16 sps:$4 sm:$0xff]   ;;  %v8081_v18 = vld [vmem:[#allocation5 + $0xa28] ss:$16 sps:$4 sm:$0xff]  }
 0x166   :  { %5237 = vmatpush1.bf16.msra.mxu0 %v7985_v19  ;;  %5796 = vmatpush1.bf16.msra.mxu1 %v7988_v20  ;;  %v8086_v19 = vld [vmem:[#allocation5 + $0xa44] ss:$16 sps:$4 sm:$0xff]   ;;  %v8089_v20 = vld [vmem:[#allocation5 + $0xa4c] ss:$16 sps:$4 sm:$0xff]  }
 0x167   :  { %5238 = vmatprep.subr.bf16.mxu0 %v7993_v21  ;;  %5797 = vmatprep.subr.bf16.mxu1 %v7996_v22  ;;  %v8084_v21 = vld [vmem:[#allocation5 + $0xa40] ss:$16 sps:$4 sm:$0xff]   ;;  %v8087_v22 = vld [vmem:[#allocation5 + $0xa48] ss:$16 sps:$4 sm:$0xff]  }
 0x16a   :  { %5239 = vmatpush1.bf16.msra.mxu0 %v7991_v23  ;;  %5798 = vmatpush1.bf16.msra.mxu1 %v7994_v24  ;;  %v8092_v23 = vld [vmem:[#allocation5 + $0xa64] ss:$16 sps:$4 sm:$0xff]   ;;  %v8095_v24 = vld [vmem:[#allocation5 + $0xa6c] ss:$16 sps:$4 sm:$0xff]  }
 0x16b   :  { %5240 = vmatprep.subr.bf16.mxu0 %v7999_v25  ;;  %5799 = vmatprep.subr.bf16.mxu1 %v8002_v26  ;;  %v8090_v25 = vld [vmem:[#allocation5 + $0xa60] ss:$16 sps:$4 sm:$0xff]   ;;  %v8093_v26 = vld [vmem:[#allocation5 + $0xa68] ss:$16 sps:$4 sm:$0xff]  }
 0x16e   :  { %5241 = vmatpush1.bf16.msra.mxu0 %v7997_v27  ;;  %5800 = vmatpush1.bf16.msra.mxu1 %v8000_v28  ;;  %v8098_v27 = vld [vmem:[#allocation5 + $0xa84] ss:$16 sps:$4 sm:$0xff]   ;;  %v8101_v28 = vld [vmem:[#allocation5 + $0xa8c] ss:$16 sps:$4 sm:$0xff]  }
 0x16f   :  { %5242 = vmatprep.subr.bf16.mxu0 %v8005_v29  ;;  %5801 = vmatprep.subr.bf16.mxu1 %v8008_v30  ;;  %v8096_v29 = vld [vmem:[#allocation5 + $0xa80] ss:$16 sps:$4 sm:$0xff]   ;;  %v8099_v30 = vld [vmem:[#allocation5 + $0xa88] ss:$16 sps:$4 sm:$0xff]  }
 0x172   :  { %5243 = vmatpush1.bf16.msra.mxu0 %v8003_v31  ;;  %5802 = vmatpush1.bf16.msra.mxu1 %v8006_v32  ;;  %v8104_v31 = vld [vmem:[#allocation5 + $0xaa4] ss:$16 sps:$4 sm:$0xff]   ;;  %v8107_v32 = vld [vmem:[#allocation5 + $0xaac] ss:$16 sps:$4 sm:$0xff]  }
 0x173   :  { %5244 = vmatprep.subr.bf16.mxu0 %v8011_v33  ;;  %5803 = vmatprep.subr.bf16.mxu1 %v8014_v34  ;;  %v8102_v33 = vld [vmem:[#allocation5 + $0xaa0] ss:$16 sps:$4 sm:$0xff]   ;;  %v8105_v34 = vld [vmem:[#allocation5 + $0xaa8] ss:$16 sps:$4 sm:$0xff]  }
 0x176   :  { %5245 = vmatpush1.bf16.msra.mxu0 %v8009_v35  ;;  %5804 = vmatpush1.bf16.msra.mxu1 %v8012_v36  ;;  %v8110_v35 = vld [vmem:[#allocation5 + $0xac4] ss:$16 sps:$4 sm:$0xff]   ;;  %v8113_v36 = vld [vmem:[#allocation5 + $0xacc] ss:$16 sps:$4 sm:$0xff]  }
 0x177   :  { %5246 = vmatprep.subr.bf16.mxu0 %v8017_v37  ;;  %5805 = vmatprep.subr.bf16.mxu1 %v8020_v38  ;;  %v8108_v37 = vld [vmem:[#allocation5 + $0xac0] ss:$16 sps:$4 sm:$0xff]   ;;  %v8111_v38 = vld [vmem:[#allocation5 + $0xac8] ss:$16 sps:$4 sm:$0xff]  }
 0x17a   :  { %5247 = vmatpush1.bf16.msra.mxu0 %v8015_v39  ;;  %5806 = vmatpush1.bf16.msra.mxu1 %v8018_v40  ;;  %v8116_v39 = vld [vmem:[#allocation5 + $0xae4] ss:$16 sps:$4 sm:$0xff]   ;;  %v8119_v40 = vld [vmem:[#allocation5 + $0xaec] ss:$16 sps:$4 sm:$0xff]  }
 0x17b   :  { %5248 = vmatprep.subr.bf16.mxu0 %v8023_v41  ;;  %5807 = vmatprep.subr.bf16.mxu1 %v8026_v42  ;;  %v8114_v41 = vld [vmem:[#allocation5 + $0xae0] ss:$16 sps:$4 sm:$0xff]   ;;  %v8117_v42 = vld [vmem:[#allocation5 + $0xae8] ss:$16 sps:$4 sm:$0xff]  }
 0x17e   :  { %5249 = vmatpush1.bf16.msra.mxu0 %v8021_v43  ;;  %5808 = vmatpush1.bf16.msra.mxu1 %v8024_v44  ;;  %v8122_v43 = vld [vmem:[#allocation5 + $0xb04] ss:$16 sps:$4 sm:$0xff]   ;;  %v8125_v44 = vld [vmem:[#allocation5 + $0xb0c] ss:$16 sps:$4 sm:$0xff]  }
 0x17f   :  { %5250 = vmatprep.subr.bf16.mxu0 %v8029_v45  ;;  %5809 = vmatprep.subr.bf16.mxu1 %v8032_v46  ;;  %v8120_v45 = vld [vmem:[#allocation5 + $0xb00] ss:$16 sps:$4 sm:$0xff]   ;;  %v8123_v46 = vld [vmem:[#allocation5 + $0xb08] ss:$16 sps:$4 sm:$0xff]  }
 0x182   :  { %5251 = vmatpush1.bf16.msra.mxu0 %v8027_v47  ;;  %5810 = vmatpush1.bf16.msra.mxu1 %v8030_v48  ;;  %v8128_v47 = vld [vmem:[#allocation5 + $0xb24] ss:$16 sps:$4 sm:$0xff]   ;;  %v8131_v48 = vld [vmem:[#allocation5 + $0xb2c] ss:$16 sps:$4 sm:$0xff]  }
 0x183   :  { %5252 = vmatprep.subr.bf16.mxu0 %v8035_v49  ;;  %5811 = vmatprep.subr.bf16.mxu1 %v8038_v50  ;;  %v8126_v49 = vld [vmem:[#allocation5 + $0xb20] ss:$16 sps:$4 sm:$0xff]   ;;  %v8129_v50 = vld [vmem:[#allocation5 + $0xb28] ss:$16 sps:$4 sm:$0xff]  }
 0x186   :  { %5253 = vmatpush1.bf16.msra.mxu0 %v8033_v51  ;;  %5812 = vmatpush1.bf16.msra.mxu1 %v8036_v52  ;;  %v8134_v51 = vld [vmem:[#allocation5 + $0xb44] ss:$16 sps:$4 sm:$0xff]   ;;  %v8137_v52 = vld [vmem:[#allocation5 + $0xb4c] ss:$16 sps:$4 sm:$0xff]  }
 0x187   :  { %5254 = vmatprep.subr.bf16.mxu0 %v8041_v53  ;;  %5813 = vmatprep.subr.bf16.mxu1 %v8044_v54  ;;  %v8132_v53 = vld [vmem:[#allocation5 + $0xb40] ss:$16 sps:$4 sm:$0xff]   ;;  %v8135_v54 = vld [vmem:[#allocation5 + $0xb48] ss:$16 sps:$4 sm:$0xff]  }
 0x18a   :  { %5255 = vmatpush1.bf16.msra.mxu0 %v8039_v55  ;;  %5814 = vmatpush1.bf16.msra.mxu1 %v8042_v56  ;;  %v8140_v55 = vld [vmem:[#allocation5 + $0xb64] ss:$16 sps:$4 sm:$0xff]   ;;  %v8143_v56 = vld [vmem:[#allocation5 + $0xb6c] ss:$16 sps:$4 sm:$0xff]  }
 0x18b   :  { %5256 = vmatprep.subr.bf16.mxu0 %v8047_v57  ;;  %5815 = vmatprep.subr.bf16.mxu1 %v8050_v58  ;;  %v8138_v57 = vld [vmem:[#allocation5 + $0xb60] ss:$16 sps:$4 sm:$0xff]   ;;  %v8141_v58 = vld [vmem:[#allocation5 + $0xb68] ss:$16 sps:$4 sm:$0xff]  }
 0x18e   :  { %5257 = vmatpush1.bf16.msra.mxu0 %v8045_v59  ;;  %5816 = vmatpush1.bf16.msra.mxu1 %v8048_v60  ;;  %v8146_v59 = vld [vmem:[#allocation5 + $0xb84] ss:$16 sps:$4 sm:$0xff]   ;;  %v8149_v60 = vld [vmem:[#allocation5 + $0xb8c] ss:$16 sps:$4 sm:$0xff]  }
 0x18f   :  { %5258 = vmatprep.subr.bf16.mxu0 %v8053_v61  ;;  %5817 = vmatprep.subr.bf16.mxu1 %v8056_v62  ;;  %v8144_v61 = vld [vmem:[#allocation5 + $0xb80] ss:$16 sps:$4 sm:$0xff]   ;;  %v8147_v62 = vld [vmem:[#allocation5 + $0xb88] ss:$16 sps:$4 sm:$0xff]  }
 0x192   :  { %5259 = vmatpush1.bf16.msra.mxu0 %v8051_v63  ;;  %5818 = vmatpush1.bf16.msra.mxu1 %v8054_v0  ;;  %v8152_v63 = vld [vmem:[#allocation5 + $0xba4] ss:$16 sps:$4 sm:$0xff]   ;;  %v8155_v0 = vld [vmem:[#allocation5 + $0xbac] ss:$16 sps:$4 sm:$0xff]  }
 0x193   :  { %5260 = vmatprep.subr.bf16.mxu0 %v8059_v1  ;;  %5819 = vmatprep.subr.bf16.mxu1 %v8062_v2  ;;  %v8150_v1 = vld [vmem:[#allocation5 + $0xba0] ss:$16 sps:$4 sm:$0xff]   ;;  %v8153_v2 = vld [vmem:[#allocation5 + $0xba8] ss:$16 sps:$4 sm:$0xff]  }
 0x196   :  { %5261 = vmatpush1.bf16.msra.mxu0 %v8057_v3  ;;  %5820 = vmatpush1.bf16.msra.mxu1 %v8060_v4  ;;  %v8158_v3 = vld [vmem:[#allocation5 + $0xbc4] ss:$16 sps:$4 sm:$0xff]   ;;  %v8161_v4 = vld [vmem:[#allocation5 + $0xbcc] ss:$16 sps:$4 sm:$0xff]  }
 0x197   :  { %5262 = vmatprep.subr.bf16.mxu0 %v8065_v5  ;;  %5821 = vmatprep.subr.bf16.mxu1 %v8068_v6  ;;  %v8156_v5 = vld [vmem:[#allocation5 + $0xbc0] ss:$16 sps:$4 sm:$0xff]   ;;  %v8159_v6 = vld [vmem:[#allocation5 + $0xbc8] ss:$16 sps:$4 sm:$0xff]  }
 0x19a   :  { %5263 = vmatpush1.bf16.msra.mxu0 %v8063_v7  ;;  %5822 = vmatpush1.bf16.msra.mxu1 %v8066_v8  ;;  %v8164_v7 = vld [vmem:[#allocation5 + $0xbe4] ss:$16 sps:$4 sm:$0xff]   ;;  %v8167_v8 = vld [vmem:[#allocation5 + $0xbec] ss:$16 sps:$4 sm:$0xff]  }
 0x19b   :  { %5275 = vmatprep.subr.bf16.mxu0 %v8074_v10  ;;  %5834 = vmatprep.subr.bf16.mxu1 %v8077_v11  ;;  %v8165_v10 = vld [vmem:[#allocation5 + $0xbe8] ss:$16 sps:$4 sm:$0xff]   ;;  %v8168_v11 = vld [vmem:[#allocation2 + $0x28] ss:$100 sps:$4 sm:$0xff]  }
 0x19d   :  { %5265 = vmatmul.mubr.bf16.vlgmr.msra.gmra.mrb[0].mxu0 %v8069_v9  ;;  %5824 = vmatmul.mubr.bf16.vlgmr.msra.gmra.mrb[0].mxu1 %v8069_v9  ;;  %v8162_v9 = vld [vmem:[#allocation5 + $0xbe0] ss:$16 sps:$4 sm:$0xff]  }
 0x19e   :  { %5276 = vmatpush1.bf16.msra.mxu0 %v8072_v12  ;;  %5835 = vmatpush1.bf16.msra.mxu1 %v8075_v13  ;;  %v8173_v12 = vld [vmem:[#allocation5 + $0xc04] ss:$16 sps:$4 sm:$0xff]   ;;  %v8176_v13 = vld [vmem:[#allocation5 + $0xc0c] ss:$16 sps:$4 sm:$0xff]  }
 0x19f   :  { %5277 = vmatprep.subr.bf16.mxu0 %v8080_v14  ;;  %5836 = vmatprep.subr.bf16.mxu1 %v8083_v15  ;;  %v8171_v14 = vld [vmem:[#allocation5 + $0xc00] ss:$16 sps:$4 sm:$0xff]   ;;  %v8174_v15 = vld [vmem:[#allocation5 + $0xc08] ss:$16 sps:$4 sm:$0xff]  }
 0x1a0   :  { %5307 = vmatprep.mubr.bf16.mxu0 %v8170_v16  ;;  %5866 = vmatprep.mubr.bf16.mxu1 %v8170_v16  ;;  %v8179_v16 = vld [vmem:[#allocation5 + $0xc24] ss:$16 sps:$4 sm:$0xff]  }
 0x1a2   :  { %5278 = vmatpush1.bf16.msra.mxu0 %v8078_v17  ;;  %5837 = vmatpush1.bf16.msra.mxu1 %v8081_v18  ;;  %v8182_v17 = vld [vmem:[#allocation5 + $0xc2c] ss:$16 sps:$4 sm:$0xff]  }
 0x1a3   :  { %5279 = vmatprep.subr.bf16.mxu0 %v8086_v19  ;;  %5838 = vmatprep.subr.bf16.mxu1 %v8089_v20  ;;  %v8269_v18 = vld [vmem:[#allocation2 + $0x34] ss:$100 sps:$4 sm:$0xff]   ;;  %v8180_v20 = vld [vmem:[#allocation5 + $0xc28] ss:$16 sps:$4 sm:$0xff]  }
 0x1a4   :  { %v8177_v19 = vld [vmem:[#allocation5 + $0xc20] ss:$16 sps:$4 sm:$0xff]  }
 0x1a6   :  { %5280 = vmatpush1.bf16.msra.mxu0 %v8084_v21  ;;  %5839 = vmatpush1.bf16.msra.mxu1 %v8087_v22  ;;  %v8185_v21 = vld [vmem:[#allocation5 + $0xc44] ss:$16 sps:$4 sm:$0xff]   ;;  %v8188_v22 = vld [vmem:[#allocation5 + $0xc4c] ss:$16 sps:$4 sm:$0xff]  }
 0x1a7   :  { %5281 = vmatprep.subr.bf16.mxu0 %v8092_v23  ;;  %5840 = vmatprep.subr.bf16.mxu1 %v8095_v24  ;;  %v8183_v23 = vld [vmem:[#allocation5 + $0xc40] ss:$16 sps:$4 sm:$0xff]   ;;  %v8186_v24 = vld [vmem:[#allocation5 + $0xc48] ss:$16 sps:$4 sm:$0xff]  }
 0x1aa   :  { %5282 = vmatpush1.bf16.msra.mxu0 %v8090_v25  ;;  %5841 = vmatpush1.bf16.msra.mxu1 %v8093_v26  ;;  %v8191_v25 = vld [vmem:[#allocation5 + $0xc64] ss:$16 sps:$4 sm:$0xff]   ;;  %v8194_v26 = vld [vmem:[#allocation5 + $0xc6c] ss:$16 sps:$4 sm:$0xff]  }
 0x1ab   :  { %5283 = vmatprep.subr.bf16.mxu0 %v8098_v27  ;;  %5842 = vmatprep.subr.bf16.mxu1 %v8101_v28  ;;  %v8189_v27 = vld [vmem:[#allocation5 + $0xc60] ss:$16 sps:$4 sm:$0xff]   ;;  %v8192_v28 = vld [vmem:[#allocation5 + $0xc68] ss:$16 sps:$4 sm:$0xff]  }
 0x1ae   :  { %5284 = vmatpush1.bf16.msra.mxu0 %v8096_v29  ;;  %5843 = vmatpush1.bf16.msra.mxu1 %v8099_v30  ;;  %v8197_v29 = vld [vmem:[#allocation5 + $0xc84] ss:$16 sps:$4 sm:$0xff]   ;;  %v8200_v30 = vld [vmem:[#allocation5 + $0xc8c] ss:$16 sps:$4 sm:$0xff]  }
 0x1af   :  { %5285 = vmatprep.subr.bf16.mxu0 %v8104_v31  ;;  %5844 = vmatprep.subr.bf16.mxu1 %v8107_v32  ;;  %v8195_v31 = vld [vmem:[#allocation5 + $0xc80] ss:$16 sps:$4 sm:$0xff]   ;;  %v8198_v32 = vld [vmem:[#allocation5 + $0xc88] ss:$16 sps:$4 sm:$0xff]  }
 0x1b2   :  { %5286 = vmatpush1.bf16.msra.mxu0 %v8102_v33  ;;  %5845 = vmatpush1.bf16.msra.mxu1 %v8105_v34  ;;  %v8203_v33 = vld [vmem:[#allocation5 + $0xca4] ss:$16 sps:$4 sm:$0xff]   ;;  %v8206_v34 = vld [vmem:[#allocation5 + $0xcac] ss:$16 sps:$4 sm:$0xff]  }
 0x1b3   :  { %5287 = vmatprep.subr.bf16.mxu0 %v8110_v35  ;;  %5846 = vmatprep.subr.bf16.mxu1 %v8113_v36  ;;  %v8201_v35 = vld [vmem:[#allocation5 + $0xca0] ss:$16 sps:$4 sm:$0xff]   ;;  %v8204_v36 = vld [vmem:[#allocation5 + $0xca8] ss:$16 sps:$4 sm:$0xff]  }
 0x1b6   :  { %5288 = vmatpush1.bf16.msra.mxu0 %v8108_v37  ;;  %5847 = vmatpush1.bf16.msra.mxu1 %v8111_v38  ;;  %v8209_v37 = vld [vmem:[#allocation5 + $0xcc4] ss:$16 sps:$4 sm:$0xff]   ;;  %v8212_v38 = vld [vmem:[#allocation5 + $0xccc] ss:$16 sps:$4 sm:$0xff]  }
 0x1b7   :  { %5289 = vmatprep.subr.bf16.mxu0 %v8116_v39  ;;  %5848 = vmatprep.subr.bf16.mxu1 %v8119_v40  ;;  %v8207_v39 = vld [vmem:[#allocation5 + $0xcc0] ss:$16 sps:$4 sm:$0xff]   ;;  %v8210_v40 = vld [vmem:[#allocation5 + $0xcc8] ss:$16 sps:$4 sm:$0xff]  }
 0x1ba   :  { %5290 = vmatpush1.bf16.msra.mxu0 %v8114_v41  ;;  %5849 = vmatpush1.bf16.msra.mxu1 %v8117_v42  ;;  %v8215_v41 = vld [vmem:[#allocation5 + $0xce4] ss:$16 sps:$4 sm:$0xff]   ;;  %v8218_v42 = vld [vmem:[#allocation5 + $0xcec] ss:$16 sps:$4 sm:$0xff]  }
 0x1bb   :  { %5291 = vmatprep.subr.bf16.mxu0 %v8122_v43  ;;  %5850 = vmatprep.subr.bf16.mxu1 %v8125_v44  ;;  %v8213_v43 = vld [vmem:[#allocation5 + $0xce0] ss:$16 sps:$4 sm:$0xff]   ;;  %v8216_v44 = vld [vmem:[#allocation5 + $0xce8] ss:$16 sps:$4 sm:$0xff]  }
 0x1be   :  { %5292 = vmatpush1.bf16.msra.mxu0 %v8120_v45  ;;  %5851 = vmatpush1.bf16.msra.mxu1 %v8123_v46  ;;  %v8221_v45 = vld [vmem:[#allocation5 + $0xd04] ss:$16 sps:$4 sm:$0xff]   ;;  %v8224_v46 = vld [vmem:[#allocation5 + $0xd0c] ss:$16 sps:$4 sm:$0xff]  }
 0x1bf   :  { %5293 = vmatprep.subr.bf16.mxu0 %v8128_v47  ;;  %5852 = vmatprep.subr.bf16.mxu1 %v8131_v48  ;;  %v8219_v47 = vld [vmem:[#allocation5 + $0xd00] ss:$16 sps:$4 sm:$0xff]   ;;  %v8222_v48 = vld [vmem:[#allocation5 + $0xd08] ss:$16 sps:$4 sm:$0xff]  }
 0x1c2   :  { %5294 = vmatpush1.bf16.msra.mxu0 %v8126_v49  ;;  %5853 = vmatpush1.bf16.msra.mxu1 %v8129_v50  ;;  %v8227_v49 = vld [vmem:[#allocation5 + $0xd24] ss:$16 sps:$4 sm:$0xff]   ;;  %v8230_v50 = vld [vmem:[#allocation5 + $0xd2c] ss:$16 sps:$4 sm:$0xff]  }
 0x1c3   :  { %5295 = vmatprep.subr.bf16.mxu0 %v8134_v51  ;;  %5854 = vmatprep.subr.bf16.mxu1 %v8137_v52  ;;  %v8225_v51 = vld [vmem:[#allocation5 + $0xd20] ss:$16 sps:$4 sm:$0xff]   ;;  %v8228_v52 = vld [vmem:[#allocation5 + $0xd28] ss:$16 sps:$4 sm:$0xff]  }
 0x1c6   :  { %5296 = vmatpush1.bf16.msra.mxu0 %v8132_v53  ;;  %5855 = vmatpush1.bf16.msra.mxu1 %v8135_v54  ;;  %v8233_v53 = vld [vmem:[#allocation5 + $0xd44] ss:$16 sps:$4 sm:$0xff]   ;;  %v8236_v54 = vld [vmem:[#allocation5 + $0xd4c] ss:$16 sps:$4 sm:$0xff]  }
 0x1c7   :  { %5297 = vmatprep.subr.bf16.mxu0 %v8140_v55  ;;  %5856 = vmatprep.subr.bf16.mxu1 %v8143_v56  ;;  %v8231_v55 = vld [vmem:[#allocation5 + $0xd40] ss:$16 sps:$4 sm:$0xff]   ;;  %v8234_v56 = vld [vmem:[#allocation5 + $0xd48] ss:$16 sps:$4 sm:$0xff]  }
 0x1ca   :  { %5298 = vmatpush1.bf16.msra.mxu0 %v8138_v57  ;;  %5857 = vmatpush1.bf16.msra.mxu1 %v8141_v58  ;;  %v8239_v57 = vld [vmem:[#allocation5 + $0xd64] ss:$16 sps:$4 sm:$0xff]   ;;  %v8242_v58 = vld [vmem:[#allocation5 + $0xd6c] ss:$16 sps:$4 sm:$0xff]  }
 0x1cb   :  { %5299 = vmatprep.subr.bf16.mxu0 %v8146_v59  ;;  %5858 = vmatprep.subr.bf16.mxu1 %v8149_v60  ;;  %v8237_v59 = vld [vmem:[#allocation5 + $0xd60] ss:$16 sps:$4 sm:$0xff]   ;;  %v8240_v60 = vld [vmem:[#allocation5 + $0xd68] ss:$16 sps:$4 sm:$0xff]  }
 0x1ce   :  { %5300 = vmatpush1.bf16.msra.mxu0 %v8144_v61  ;;  %5859 = vmatpush1.bf16.msra.mxu1 %v8147_v62  ;;  %v8245_v61 = vld [vmem:[#allocation5 + $0xd84] ss:$16 sps:$4 sm:$0xff]   ;;  %v8248_v62 = vld [vmem:[#allocation5 + $0xd8c] ss:$16 sps:$4 sm:$0xff]  }
 0x1cf   :  { %5301 = vmatprep.subr.bf16.mxu0 %v8152_v63  ;;  %5860 = vmatprep.subr.bf16.mxu1 %v8155_v0  ;;  %v8243_v63 = vld [vmem:[#allocation5 + $0xd80] ss:$16 sps:$4 sm:$0xff]   ;;  %v8246_v0 = vld [vmem:[#allocation5 + $0xd88] ss:$16 sps:$4 sm:$0xff]  }
 0x1d2   :  { %5302 = vmatpush1.bf16.msra.mxu0 %v8150_v1  ;;  %5861 = vmatpush1.bf16.msra.mxu1 %v8153_v2  ;;  %v8251_v1 = vld [vmem:[#allocation5 + $0xda4] ss:$16 sps:$4 sm:$0xff]   ;;  %v8254_v2 = vld [vmem:[#allocation5 + $0xdac] ss:$16 sps:$4 sm:$0xff]  }
 0x1d3   :  { %5303 = vmatprep.subr.bf16.mxu0 %v8158_v3  ;;  %5862 = vmatprep.subr.bf16.mxu1 %v8161_v4  ;;  %v8249_v3 = vld [vmem:[#allocation5 + $0xda0] ss:$16 sps:$4 sm:$0xff]   ;;  %v8252_v4 = vld [vmem:[#allocation5 + $0xda8] ss:$16 sps:$4 sm:$0xff]  }
 0x1d6   :  { %5304 = vmatpush1.bf16.msra.mxu0 %v8156_v5  ;;  %5863 = vmatpush1.bf16.msra.mxu1 %v8159_v6  ;;  %v8257_v5 = vld [vmem:[#allocation5 + $0xdc4] ss:$16 sps:$4 sm:$0xff]   ;;  %v8260_v6 = vld [vmem:[#allocation5 + $0xdcc] ss:$16 sps:$4 sm:$0xff]  }
 0x1d7   :  { %5305 = vmatprep.subr.bf16.mxu0 %v8164_v7  ;;  %5864 = vmatprep.subr.bf16.mxu1 %v8167_v8  ;;  %v8255_v7 = vld [vmem:[#allocation5 + $0xdc0] ss:$16 sps:$4 sm:$0xff]   ;;  %v8258_v8 = vld [vmem:[#allocation5 + $0xdc8] ss:$16 sps:$4 sm:$0xff]  }
 0x1da   :  { %5306 = vmatpush1.bf16.msra.mxu0 %v8162_v9  ;;  %5865 = vmatpush1.bf16.msra.mxu1 %v8165_v10  ;;  %v8263_v9 = vld [vmem:[#allocation5 + $0xde4] ss:$16 sps:$4 sm:$0xff]   ;;  %v8266_v10 = vld [vmem:[#allocation5 + $0xdec] ss:$16 sps:$4 sm:$0xff]  }
 0x1db   :  { %5318 = vmatprep.subr.bf16.mxu0 %v8173_v12  ;;  %5877 = vmatprep.subr.bf16.mxu1 %v8176_v13  ;;  %v8264_v12 = vld [vmem:[#allocation5 + $0xde8] ss:$16 sps:$4 sm:$0xff]  }
 0x1dc   :  { %v8267_v13 = vld [vmem:[#allocation2 + $0x30] ss:$100 sps:$4 sm:$0xff]  }
 0x1dd   :  { %5308 = vmatmul.mubr.bf16.vlgmr.msra.gmra.mrb[0].mxu0 %v8168_v11  ;;  %5867 = vmatmul.mubr.bf16.vlgmr.msra.gmra.mrb[0].mxu1 %v8168_v11  ;;  %v8261_v11 = vld [vmem:[#allocation5 + $0xde0] ss:$16 sps:$4 sm:$0xff]  }
 0x1de   :  { %5319 = vmatpush1.bf16.msra.mxu0 %v8171_v14  ;;  %5878 = vmatpush1.bf16.msra.mxu1 %v8174_v15  ;;  %v8272_v14 = vld [vmem:[#allocation5 + $0xe04] ss:$16 sps:$4 sm:$0xff]   ;;  %v8275_v15 = vld [vmem:[#allocation5 + $0xe0c] ss:$16 sps:$4 sm:$0xff]  }
 0x1df   :  { %5320 = vmatprep.subr.bf16.mxu0 %v8179_v16  ;;  %5879 = vmatprep.subr.bf16.mxu1 %v8182_v17  ;;  %v8270_v16 = vld [vmem:[#allocation5 + $0xe00] ss:$16 sps:$4 sm:$0xff]   ;;  %v8273_v17 = vld [vmem:[#allocation5 + $0xe08] ss:$16 sps:$4 sm:$0xff]  }
 0x1e0   :  { %5350 = vmatprep.mubr.bf16.mxu0 %v8269_v18  ;;  %5909 = vmatprep.mubr.bf16.mxu1 %v8269_v18  ;;  %v8278_v18 = vld [vmem:[#allocation5 + $0xe24] ss:$16 sps:$4 sm:$0xff]  }
 0x1e2   :  { %5321 = vmatpush1.bf16.msra.mxu0 %v8177_v19  ;;  %5880 = vmatpush1.bf16.msra.mxu1 %v8180_v20  ;;  %v8281_v19 = vld [vmem:[#allocation5 + $0xe2c] ss:$16 sps:$4 sm:$0xff]   ;;  %v8368_v20 = vld [vmem:[#allocation2 + $0x3c] ss:$100 sps:$4 sm:$0xff]  }
 0x1e3   :  { %5322 = vmatprep.subr.bf16.mxu0 %v8185_v21  ;;  %5881 = vmatprep.subr.bf16.mxu1 %v8188_v22  ;;  %v8276_v21 = vld [vmem:[#allocation5 + $0xe20] ss:$16 sps:$4 sm:$0xff]   ;;  %v8279_v22 = vld [vmem:[#allocation5 + $0xe28] ss:$16 sps:$4 sm:$0xff]  }
 0x1e6   :  { %5323 = vmatpush1.bf16.msra.mxu0 %v8183_v23  ;;  %5882 = vmatpush1.bf16.msra.mxu1 %v8186_v24  ;;  %v8284_v23 = vld [vmem:[#allocation5 + $0xe44] ss:$16 sps:$4 sm:$0xff]   ;;  %v8287_v24 = vld [vmem:[#allocation5 + $0xe4c] ss:$16 sps:$4 sm:$0xff]  }
 0x1e7   :  { %5324 = vmatprep.subr.bf16.mxu0 %v8191_v25  ;;  %5883 = vmatprep.subr.bf16.mxu1 %v8194_v26  ;;  %v8282_v25 = vld [vmem:[#allocation5 + $0xe40] ss:$16 sps:$4 sm:$0xff]   ;;  %v8285_v26 = vld [vmem:[#allocation5 + $0xe48] ss:$16 sps:$4 sm:$0xff]  }
 0x1ea   :  { %5325 = vmatpush1.bf16.msra.mxu0 %v8189_v27  ;;  %5884 = vmatpush1.bf16.msra.mxu1 %v8192_v28  ;;  %v8290_v27 = vld [vmem:[#allocation5 + $0xe64] ss:$16 sps:$4 sm:$0xff]   ;;  %v8293_v28 = vld [vmem:[#allocation5 + $0xe6c] ss:$16 sps:$4 sm:$0xff]  }
 0x1eb   :  { %5326 = vmatprep.subr.bf16.mxu0 %v8197_v29  ;;  %5885 = vmatprep.subr.bf16.mxu1 %v8200_v30  ;;  %v8288_v29 = vld [vmem:[#allocation5 + $0xe60] ss:$16 sps:$4 sm:$0xff]   ;;  %v8291_v30 = vld [vmem:[#allocation5 + $0xe68] ss:$16 sps:$4 sm:$0xff]  }
 0x1ee   :  { %5327 = vmatpush1.bf16.msra.mxu0 %v8195_v31  ;;  %5886 = vmatpush1.bf16.msra.mxu1 %v8198_v32  ;;  %v8296_v31 = vld [vmem:[#allocation5 + $0xe84] ss:$16 sps:$4 sm:$0xff]   ;;  %v8299_v32 = vld [vmem:[#allocation5 + $0xe8c] ss:$16 sps:$4 sm:$0xff]  }
 0x1ef   :  { %5328 = vmatprep.subr.bf16.mxu0 %v8203_v33  ;;  %5887 = vmatprep.subr.bf16.mxu1 %v8206_v34  ;;  %v8294_v33 = vld [vmem:[#allocation5 + $0xe80] ss:$16 sps:$4 sm:$0xff]   ;;  %v8297_v34 = vld [vmem:[#allocation5 + $0xe88] ss:$16 sps:$4 sm:$0xff]  }
 0x1f2   :  { %5329 = vmatpush1.bf16.msra.mxu0 %v8201_v35  ;;  %5888 = vmatpush1.bf16.msra.mxu1 %v8204_v36  ;;  %v8302_v35 = vld [vmem:[#allocation5 + $0xea4] ss:$16 sps:$4 sm:$0xff]   ;;  %v8305_v36 = vld [vmem:[#allocation5 + $0xeac] ss:$16 sps:$4 sm:$0xff]  }
 0x1f3   :  { %5330 = vmatprep.subr.bf16.mxu0 %v8209_v37  ;;  %5889 = vmatprep.subr.bf16.mxu1 %v8212_v38  ;;  %v8300_v37 = vld [vmem:[#allocation5 + $0xea0] ss:$16 sps:$4 sm:$0xff]   ;;  %v8303_v38 = vld [vmem:[#allocation5 + $0xea8] ss:$16 sps:$4 sm:$0xff]  }
 0x1f6   :  { %5331 = vmatpush1.bf16.msra.mxu0 %v8207_v39  ;;  %5890 = vmatpush1.bf16.msra.mxu1 %v8210_v40  ;;  %v8308_v39 = vld [vmem:[#allocation5 + $0xec4] ss:$16 sps:$4 sm:$0xff]   ;;  %v8311_v40 = vld [vmem:[#allocation5 + $0xecc] ss:$16 sps:$4 sm:$0xff]  }
 0x1f7   :  { %5332 = vmatprep.subr.bf16.mxu0 %v8215_v41  ;;  %5891 = vmatprep.subr.bf16.mxu1 %v8218_v42  ;;  %v8306_v41 = vld [vmem:[#allocation5 + $0xec0] ss:$16 sps:$4 sm:$0xff]   ;;  %v8309_v42 = vld [vmem:[#allocation5 + $0xec8] ss:$16 sps:$4 sm:$0xff]  }
 0x1fa   :  { %5333 = vmatpush1.bf16.msra.mxu0 %v8213_v43  ;;  %5892 = vmatpush1.bf16.msra.mxu1 %v8216_v44  ;;  %v8314_v43 = vld [vmem:[#allocation5 + $0xee4] ss:$16 sps:$4 sm:$0xff]   ;;  %v8317_v44 = vld [vmem:[#allocation5 + $0xeec] ss:$16 sps:$4 sm:$0xff]  }
 0x1fb   :  { %5334 = vmatprep.subr.bf16.mxu0 %v8221_v45  ;;  %5893 = vmatprep.subr.bf16.mxu1 %v8224_v46  ;;  %v8312_v45 = vld [vmem:[#allocation5 + $0xee0] ss:$16 sps:$4 sm:$0xff]   ;;  %v8315_v46 = vld [vmem:[#allocation5 + $0xee8] ss:$16 sps:$4 sm:$0xff]  }
 0x1fe   :  { %5335 = vmatpush1.bf16.msra.mxu0 %v8219_v47  ;;  %5894 = vmatpush1.bf16.msra.mxu1 %v8222_v48  ;;  %v8320_v47 = vld [vmem:[#allocation5 + $0xf04] ss:$16 sps:$4 sm:$0xff]   ;;  %v8323_v48 = vld [vmem:[#allocation5 + $0xf0c] ss:$16 sps:$4 sm:$0xff]  }
 0x1ff   :  { %5336 = vmatprep.subr.bf16.mxu0 %v8227_v49  ;;  %5895 = vmatprep.subr.bf16.mxu1 %v8230_v50  ;;  %v8318_v49 = vld [vmem:[#allocation5 + $0xf00] ss:$16 sps:$4 sm:$0xff]   ;;  %v8321_v50 = vld [vmem:[#allocation5 + $0xf08] ss:$16 sps:$4 sm:$0xff]  }
 0x202   :  { %5337 = vmatpush1.bf16.msra.mxu0 %v8225_v51  ;;  %5896 = vmatpush1.bf16.msra.mxu1 %v8228_v52  ;;  %v8326_v51 = vld [vmem:[#allocation5 + $0xf24] ss:$16 sps:$4 sm:$0xff]   ;;  %v8329_v52 = vld [vmem:[#allocation5 + $0xf2c] ss:$16 sps:$4 sm:$0xff]  }
 0x203   :  { %5338 = vmatprep.subr.bf16.mxu0 %v8233_v53  ;;  %5897 = vmatprep.subr.bf16.mxu1 %v8236_v54  ;;  %v8324_v53 = vld [vmem:[#allocation5 + $0xf20] ss:$16 sps:$4 sm:$0xff]   ;;  %v8327_v54 = vld [vmem:[#allocation5 + $0xf28] ss:$16 sps:$4 sm:$0xff]  }
 0x206   :  { %5339 = vmatpush1.bf16.msra.mxu0 %v8231_v55  ;;  %5898 = vmatpush1.bf16.msra.mxu1 %v8234_v56  ;;  %v8332_v55 = vld [vmem:[#allocation5 + $0xf44] ss:$16 sps:$4 sm:$0xff]   ;;  %v8335_v56 = vld [vmem:[#allocation5 + $0xf4c] ss:$16 sps:$4 sm:$0xff]  }
 0x207   :  { %5340 = vmatprep.subr.bf16.mxu0 %v8239_v57  ;;  %5899 = vmatprep.subr.bf16.mxu1 %v8242_v58  ;;  %v8330_v57 = vld [vmem:[#allocation5 + $0xf40] ss:$16 sps:$4 sm:$0xff]   ;;  %v8333_v58 = vld [vmem:[#allocation5 + $0xf48] ss:$16 sps:$4 sm:$0xff]  }
 0x20a   :  { %5341 = vmatpush1.bf16.msra.mxu0 %v8237_v59  ;;  %5900 = vmatpush1.bf16.msra.mxu1 %v8240_v60  ;;  %v8338_v59 = vld [vmem:[#allocation5 + $0xf64] ss:$16 sps:$4 sm:$0xff]   ;;  %v8341_v60 = vld [vmem:[#allocation5 + $0xf6c] ss:$16 sps:$4 sm:$0xff]  }
 0x20b   :  { %5342 = vmatprep.subr.bf16.mxu0 %v8245_v61  ;;  %5901 = vmatprep.subr.bf16.mxu1 %v8248_v62  ;;  %v8336_v61 = vld [vmem:[#allocation5 + $0xf60] ss:$16 sps:$4 sm:$0xff]   ;;  %v8339_v62 = vld [vmem:[#allocation5 + $0xf68] ss:$16 sps:$4 sm:$0xff]  }
 0x20e   :  { %5343 = vmatpush1.bf16.msra.mxu0 %v8243_v63  ;;  %5902 = vmatpush1.bf16.msra.mxu1 %v8246_v0  ;;  %v8344_v63 = vld [vmem:[#allocation5 + $0xf84] ss:$16 sps:$4 sm:$0xff]   ;;  %v8347_v0 = vld [vmem:[#allocation5 + $0xf8c] ss:$16 sps:$4 sm:$0xff]  }
 0x20f   :  { %5344 = vmatprep.subr.bf16.mxu0 %v8251_v1  ;;  %5903 = vmatprep.subr.bf16.mxu1 %v8254_v2  ;;  %v8342_v1 = vld [vmem:[#allocation5 + $0xf80] ss:$16 sps:$4 sm:$0xff]   ;;  %v8345_v2 = vld [vmem:[#allocation5 + $0xf88] ss:$16 sps:$4 sm:$0xff]  }
 0x212   :  { %5345 = vmatpush1.bf16.msra.mxu0 %v8249_v3  ;;  %5904 = vmatpush1.bf16.msra.mxu1 %v8252_v4  ;;  %v8350_v3 = vld [vmem:[#allocation5 + $0xfa4] ss:$16 sps:$4 sm:$0xff]   ;;  %v8353_v4 = vld [vmem:[#allocation5 + $0xfac] ss:$16 sps:$4 sm:$0xff]  }
 0x213   :  { %5346 = vmatprep.subr.bf16.mxu0 %v8257_v5  ;;  %5905 = vmatprep.subr.bf16.mxu1 %v8260_v6  ;;  %v8348_v5 = vld [vmem:[#allocation5 + $0xfa0] ss:$16 sps:$4 sm:$0xff]   ;;  %v8351_v6 = vld [vmem:[#allocation5 + $0xfa8] ss:$16 sps:$4 sm:$0xff]  }
 0x216   :  { %5347 = vmatpush1.bf16.msra.mxu0 %v8255_v7  ;;  %5906 = vmatpush1.bf16.msra.mxu1 %v8258_v8  ;;  %v8356_v7 = vld [vmem:[#allocation5 + $0xfc4] ss:$16 sps:$4 sm:$0xff]   ;;  %v8359_v8 = vld [vmem:[#allocation5 + $0xfcc] ss:$16 sps:$4 sm:$0xff]  }
 0x217   :  { %5348 = vmatprep.subr.bf16.mxu0 %v8263_v9  ;;  %5907 = vmatprep.subr.bf16.mxu1 %v8266_v10  ;;  %v8354_v9 = vld [vmem:[#allocation5 + $0xfc0] ss:$16 sps:$4 sm:$0xff]   ;;  %v8357_v10 = vld [vmem:[#allocation5 + $0xfc8] ss:$16 sps:$4 sm:$0xff]  }
 0x21a   :  { %5349 = vmatpush1.bf16.msra.mxu0 %v8261_v11  ;;  %5908 = vmatpush1.bf16.msra.mxu1 %v8264_v12  ;;  %v8362_v11 = vld [vmem:[#allocation5 + $0xfe4] ss:$16 sps:$4 sm:$0xff]   ;;  %v8365_v12 = vld [vmem:[#allocation5 + $0xfec] ss:$16 sps:$4 sm:$0xff]  }
 0x21b   :  { %5361 = vmatprep.subr.bf16.mxu0 %v8272_v14  ;;  %5920 = vmatprep.subr.bf16.mxu1 %v8275_v15  ;;  %v8363_v14 = vld [vmem:[#allocation5 + $0xfe8] ss:$16 sps:$4 sm:$0xff]   ;;  %v8366_v15 = vld [vmem:[#allocation2 + $0x38] ss:$100 sps:$4 sm:$0xff]  }
 0x21d   :  { %5351 = vmatmul.mubr.bf16.vlgmr.msra.gmra.mrb[0].mxu0 %v8267_v13  ;;  %5910 = vmatmul.mubr.bf16.vlgmr.msra.gmra.mrb[0].mxu1 %v8267_v13  ;;  %v8360_v13 = vld [vmem:[#allocation5 + $0xfe0] ss:$16 sps:$4 sm:$0xff]  }
 0x21e   :  { %5362 = vmatpush1.bf16.msra.mxu0 %v8270_v16  ;;  %5921 = vmatpush1.bf16.msra.mxu1 %v8273_v17  ;;  %v8371_v16 = vld [vmem:[#allocation5 + $0x1004] ss:$16 sps:$4 sm:$0xff]   ;;  %v8374_v17 = vld [vmem:[#allocation5 + $0x100c] ss:$16 sps:$4 sm:$0xff]  }
 0x21f   :  { %5363 = vmatprep.subr.bf16.mxu0 %v8278_v18  ;;  %5922 = vmatprep.subr.bf16.mxu1 %v8281_v19  ;;  %v8369_v18 = vld [vmem:[#allocation5 + $0x1000] ss:$16 sps:$4 sm:$0xff]   ;;  %v8372_v19 = vld [vmem:[#allocation5 + $0x1008] ss:$16 sps:$4 sm:$0xff]  }
 0x220   :  { %5393 = vmatprep.mubr.bf16.mxu0 %v8368_v20  ;;  %5952 = vmatprep.mubr.bf16.mxu1 %v8368_v20  ;;  %v8377_v20 = vld [vmem:[#allocation5 + $0x1024] ss:$16 sps:$4 sm:$0xff]  }
 0x222   :  { %5364 = vmatpush1.bf16.msra.mxu0 %v8276_v21  ;;  %5923 = vmatpush1.bf16.msra.mxu1 %v8279_v22  ;;  %v8380_v21 = vld [vmem:[#allocation5 + $0x102c] ss:$16 sps:$4 sm:$0xff]  }
 0x223   :  { %5365 = vmatprep.subr.bf16.mxu0 %v8284_v23  ;;  %5924 = vmatprep.subr.bf16.mxu1 %v8287_v24  ;;  %v8467_v22 = vld [vmem:[#allocation2 + $0x44] ss:$100 sps:$4 sm:$0xff]   ;;  %v8378_v24 = vld [vmem:[#allocation5 + $0x1028] ss:$16 sps:$4 sm:$0xff]  }
 0x224   :  { %v8375_v23 = vld [vmem:[#allocation5 + $0x1020] ss:$16 sps:$4 sm:$0xff]  }
 0x226   :  { %5366 = vmatpush1.bf16.msra.mxu0 %v8282_v25  ;;  %5925 = vmatpush1.bf16.msra.mxu1 %v8285_v26  ;;  %v8383_v25 = vld [vmem:[#allocation5 + $0x1044] ss:$16 sps:$4 sm:$0xff]   ;;  %v8386_v26 = vld [vmem:[#allocation5 + $0x104c] ss:$16 sps:$4 sm:$0xff]  }
 0x227   :  { %5367 = vmatprep.subr.bf16.mxu0 %v8290_v27  ;;  %5926 = vmatprep.subr.bf16.mxu1 %v8293_v28  ;;  %v8381_v27 = vld [vmem:[#allocation5 + $0x1040] ss:$16 sps:$4 sm:$0xff]   ;;  %v8384_v28 = vld [vmem:[#allocation5 + $0x1048] ss:$16 sps:$4 sm:$0xff]  }
 0x22a   :  { %5368 = vmatpush1.bf16.msra.mxu0 %v8288_v29  ;;  %5927 = vmatpush1.bf16.msra.mxu1 %v8291_v30  ;;  %v8389_v29 = vld [vmem:[#allocation5 + $0x1064] ss:$16 sps:$4 sm:$0xff]   ;;  %v8392_v30 = vld [vmem:[#allocation5 + $0x106c] ss:$16 sps:$4 sm:$0xff]  }
 0x22b   :  { %5369 = vmatprep.subr.bf16.mxu0 %v8296_v31  ;;  %5928 = vmatprep.subr.bf16.mxu1 %v8299_v32  ;;  %v8387_v31 = vld [vmem:[#allocation5 + $0x1060] ss:$16 sps:$4 sm:$0xff]   ;;  %v8390_v32 = vld [vmem:[#allocation5 + $0x1068] ss:$16 sps:$4 sm:$0xff]  }
 0x22e   :  { %5370 = vmatpush1.bf16.msra.mxu0 %v8294_v33  ;;  %5929 = vmatpush1.bf16.msra.mxu1 %v8297_v34  ;;  %v8395_v33 = vld [vmem:[#allocation5 + $0x1084] ss:$16 sps:$4 sm:$0xff]   ;;  %v8398_v34 = vld [vmem:[#allocation5 + $0x108c] ss:$16 sps:$4 sm:$0xff]  }
 0x22f   :  { %5371 = vmatprep.subr.bf16.mxu0 %v8302_v35  ;;  %5930 = vmatprep.subr.bf16.mxu1 %v8305_v36  ;;  %v8393_v35 = vld [vmem:[#allocation5 + $0x1080] ss:$16 sps:$4 sm:$0xff]   ;;  %v8396_v36 = vld [vmem:[#allocation5 + $0x1088] ss:$16 sps:$4 sm:$0xff]  }
 0x232   :  { %5372 = vmatpush1.bf16.msra.mxu0 %v8300_v37  ;;  %5931 = vmatpush1.bf16.msra.mxu1 %v8303_v38  ;;  %v8401_v37 = vld [vmem:[#allocation5 + $0x10a4] ss:$16 sps:$4 sm:$0xff]   ;;  %v8404_v38 = vld [vmem:[#allocation5 + $0x10ac] ss:$16 sps:$4 sm:$0xff]  }
 0x233   :  { %5373 = vmatprep.subr.bf16.mxu0 %v8308_v39  ;;  %5932 = vmatprep.subr.bf16.mxu1 %v8311_v40  ;;  %v8399_v39 = vld [vmem:[#allocation5 + $0x10a0] ss:$16 sps:$4 sm:$0xff]   ;;  %v8402_v40 = vld [vmem:[#allocation5 + $0x10a8] ss:$16 sps:$4 sm:$0xff]  }
 0x236   :  { %5374 = vmatpush1.bf16.msra.mxu0 %v8306_v41  ;;  %5933 = vmatpush1.bf16.msra.mxu1 %v8309_v42  ;;  %v8407_v41 = vld [vmem:[#allocation5 + $0x10c4] ss:$16 sps:$4 sm:$0xff]   ;;  %v8410_v42 = vld [vmem:[#allocation5 + $0x10cc] ss:$16 sps:$4 sm:$0xff]  }
 0x237   :  { %5375 = vmatprep.subr.bf16.mxu0 %v8314_v43  ;;  %5934 = vmatprep.subr.bf16.mxu1 %v8317_v44  ;;  %v8405_v43 = vld [vmem:[#allocation5 + $0x10c0] ss:$16 sps:$4 sm:$0xff]   ;;  %v8408_v44 = vld [vmem:[#allocation5 + $0x10c8] ss:$16 sps:$4 sm:$0xff]  }
 0x23a   :  { %5376 = vmatpush1.bf16.msra.mxu0 %v8312_v45  ;;  %5935 = vmatpush1.bf16.msra.mxu1 %v8315_v46  ;;  %v8413_v45 = vld [vmem:[#allocation5 + $0x10e4] ss:$16 sps:$4 sm:$0xff]   ;;  %v8416_v46 = vld [vmem:[#allocation5 + $0x10ec] ss:$16 sps:$4 sm:$0xff]  }
 0x23b   :  { %5377 = vmatprep.subr.bf16.mxu0 %v8320_v47  ;;  %5936 = vmatprep.subr.bf16.mxu1 %v8323_v48  ;;  %v8411_v47 = vld [vmem:[#allocation5 + $0x10e0] ss:$16 sps:$4 sm:$0xff]   ;;  %v8414_v48 = vld [vmem:[#allocation5 + $0x10e8] ss:$16 sps:$4 sm:$0xff]  }
 0x23e   :  { %5378 = vmatpush1.bf16.msra.mxu0 %v8318_v49  ;;  %5937 = vmatpush1.bf16.msra.mxu1 %v8321_v50  ;;  %v8419_v49 = vld [vmem:[#allocation5 + $0x1104] ss:$16 sps:$4 sm:$0xff]   ;;  %v8422_v50 = vld [vmem:[#allocation5 + $0x110c] ss:$16 sps:$4 sm:$0xff]  }
 0x23f   :  { %5379 = vmatprep.subr.bf16.mxu0 %v8326_v51  ;;  %5938 = vmatprep.subr.bf16.mxu1 %v8329_v52  ;;  %v8417_v51 = vld [vmem:[#allocation5 + $0x1100] ss:$16 sps:$4 sm:$0xff]   ;;  %v8420_v52 = vld [vmem:[#allocation5 + $0x1108] ss:$16 sps:$4 sm:$0xff]  }
 0x242   :  { %5380 = vmatpush1.bf16.msra.mxu0 %v8324_v53  ;;  %5939 = vmatpush1.bf16.msra.mxu1 %v8327_v54  ;;  %v8425_v53 = vld [vmem:[#allocation5 + $0x1124] ss:$16 sps:$4 sm:$0xff]   ;;  %v8428_v54 = vld [vmem:[#allocation5 + $0x112c] ss:$16 sps:$4 sm:$0xff]  }
 0x243   :  { %5381 = vmatprep.subr.bf16.mxu0 %v8332_v55  ;;  %5940 = vmatprep.subr.bf16.mxu1 %v8335_v56  ;;  %v8423_v55 = vld [vmem:[#allocation5 + $0x1120] ss:$16 sps:$4 sm:$0xff]   ;;  %v8426_v56 = vld [vmem:[#allocation5 + $0x1128] ss:$16 sps:$4 sm:$0xff]  }
 0x246   :  { %5382 = vmatpush1.bf16.msra.mxu0 %v8330_v57  ;;  %5941 = vmatpush1.bf16.msra.mxu1 %v8333_v58  ;;  %v8431_v57 = vld [vmem:[#allocation5 + $0x1144] ss:$16 sps:$4 sm:$0xff]   ;;  %v8434_v58 = vld [vmem:[#allocation5 + $0x114c] ss:$16 sps:$4 sm:$0xff]  }
 0x247   :  { %5383 = vmatprep.subr.bf16.mxu0 %v8338_v59  ;;  %5942 = vmatprep.subr.bf16.mxu1 %v8341_v60  ;;  %v8429_v59 = vld [vmem:[#allocation5 + $0x1140] ss:$16 sps:$4 sm:$0xff]   ;;  %v8432_v60 = vld [vmem:[#allocation5 + $0x1148] ss:$16 sps:$4 sm:$0xff]  }
 0x24a   :  { %5384 = vmatpush1.bf16.msra.mxu0 %v8336_v61  ;;  %5943 = vmatpush1.bf16.msra.mxu1 %v8339_v62  ;;  %v8437_v61 = vld [vmem:[#allocation5 + $0x1164] ss:$16 sps:$4 sm:$0xff]   ;;  %v8440_v62 = vld [vmem:[#allocation5 + $0x116c] ss:$16 sps:$4 sm:$0xff]  }
 0x24b   :  { %5385 = vmatprep.subr.bf16.mxu0 %v8344_v63  ;;  %5944 = vmatprep.subr.bf16.mxu1 %v8347_v0  ;;  %v8435_v63 = vld [vmem:[#allocation5 + $0x1160] ss:$16 sps:$4 sm:$0xff]   ;;  %v8438_v0 = vld [vmem:[#allocation5 + $0x1168] ss:$16 sps:$4 sm:$0xff]  }
 0x24e   :  { %5386 = vmatpush1.bf16.msra.mxu0 %v8342_v1  ;;  %5945 = vmatpush1.bf16.msra.mxu1 %v8345_v2  ;;  %v8443_v1 = vld [vmem:[#allocation5 + $0x1184] ss:$16 sps:$4 sm:$0xff]   ;;  %v8446_v2 = vld [vmem:[#allocation5 + $0x118c] ss:$16 sps:$4 sm:$0xff]  }
 0x24f   :  { %5387 = vmatprep.subr.bf16.mxu0 %v8350_v3  ;;  %5946 = vmatprep.subr.bf16.mxu1 %v8353_v4  ;;  %v8441_v3 = vld [vmem:[#allocation5 + $0x1180] ss:$16 sps:$4 sm:$0xff]   ;;  %v8444_v4 = vld [vmem:[#allocation5 + $0x1188] ss:$16 sps:$4 sm:$0xff]  }
 0x252   :  { %5388 = vmatpush1.bf16.msra.mxu0 %v8348_v5  ;;  %5947 = vmatpush1.bf16.msra.mxu1 %v8351_v6  ;;  %v8449_v5 = vld [vmem:[#allocation5 + $0x11a4] ss:$16 sps:$4 sm:$0xff]   ;;  %v8452_v6 = vld [vmem:[#allocation5 + $0x11ac] ss:$16 sps:$4 sm:$0xff]  }
 0x253   :  { %5389 = vmatprep.subr.bf16.mxu0 %v8356_v7  ;;  %5948 = vmatprep.subr.bf16.mxu1 %v8359_v8  ;;  %v8447_v7 = vld [vmem:[#allocation5 + $0x11a0] ss:$16 sps:$4 sm:$0xff]   ;;  %v8450_v8 = vld [vmem:[#allocation5 + $0x11a8] ss:$16 sps:$4 sm:$0xff]  }
 0x256   :  { %5390 = vmatpush1.bf16.msra.mxu0 %v8354_v9  ;;  %5949 = vmatpush1.bf16.msra.mxu1 %v8357_v10  ;;  %v8455_v9 = vld [vmem:[#allocation5 + $0x11c4] ss:$16 sps:$4 sm:$0xff]   ;;  %v8458_v10 = vld [vmem:[#allocation5 + $0x11cc] ss:$16 sps:$4 sm:$0xff]  }
 0x257   :  { %5391 = vmatprep.subr.bf16.mxu0 %v8362_v11  ;;  %5950 = vmatprep.subr.bf16.mxu1 %v8365_v12  ;;  %v8453_v11 = vld [vmem:[#allocation5 + $0x11c0] ss:$16 sps:$4 sm:$0xff]   ;;  %v8456_v12 = vld [vmem:[#allocation5 + $0x11c8] ss:$16 sps:$4 sm:$0xff]  }
 0x25a   :  { %5392 = vmatpush1.bf16.msra.mxu0 %v8360_v13  ;;  %5951 = vmatpush1.bf16.msra.mxu1 %v8363_v14  ;;  %v8461_v13 = vld [vmem:[#allocation5 + $0x11e4] ss:$16 sps:$4 sm:$0xff]   ;;  %v8464_v14 = vld [vmem:[#allocation5 + $0x11ec] ss:$16 sps:$4 sm:$0xff]  }
 0x25b   :  { %5404 = vmatprep.subr.bf16.mxu0 %v8371_v16  ;;  %5963 = vmatprep.subr.bf16.mxu1 %v8374_v17  ;;  %v8462_v16 = vld [vmem:[#allocation5 + $0x11e8] ss:$16 sps:$4 sm:$0xff]   ;;  %v8470_v17 = vld [vmem:[#allocation5 + $0x1204] ss:$16 sps:$4 sm:$0xff]  }
 0x25d   :  { %5394 = vmatmul.mubr.bf16.vlgmr.msra.gmra.mrb[0].mxu0 %v8366_v15  ;;  %5953 = vmatmul.mubr.bf16.vlgmr.msra.gmra.mrb[0].mxu1 %v8366_v15  ;;  %v8459_v15 = vld [vmem:[#allocation5 + $0x11e0] ss:$16 sps:$4 sm:$0xff]  }
 0x25e   :  { %5405 = vmatpush1.bf16.msra.mxu0 %v8369_v18  ;;  %5964 = vmatpush1.bf16.msra.mxu1 %v8372_v19  ;;  %v8473_v18 = vld [vmem:[#allocation5 + $0x120c] ss:$16 sps:$4 sm:$0xff]  }
 0x25f   :  { %5406 = vmatprep.subr.bf16.mxu0 %v8377_v20  ;;  %5965 = vmatprep.subr.bf16.mxu1 %v8380_v21  ;;  %v8465_v19 = vld [vmem:[#allocation2 + $0x40] ss:$100 sps:$4 sm:$0xff]   ;;  %v8468_v20 = vld [vmem:[#allocation5 + $0x1200] ss:$16 sps:$4 sm:$0xff]  }
 0x260   :  { %5436 = vmatprep.mubr.bf16.mxu0 %v8467_v22  ;;  %5995 = vmatprep.mubr.bf16.mxu1 %v8467_v22  ;;  %v8471_v21 = vld [vmem:[#allocation5 + $0x1208] ss:$16 sps:$4 sm:$0xff]   ;;  %v8476_v22 = vld [vmem:[#allocation5 + $0x1224] ss:$16 sps:$4 sm:$0xff]  }
 0x262   :  { %5407 = vmatpush1.bf16.msra.mxu0 %v8375_v23  ;;  %5966 = vmatpush1.bf16.msra.mxu1 %v8378_v24  ;;  %v8479_v23 = vld [vmem:[#allocation5 + $0x122c] ss:$16 sps:$4 sm:$0xff]   ;;  %v8566_v24 = vld [vmem:[#allocation2 + $0x4c] ss:$100 sps:$4 sm:$0xff]  }
 0x263   :  { %5408 = vmatprep.subr.bf16.mxu0 %v8383_v25  ;;  %5967 = vmatprep.subr.bf16.mxu1 %v8386_v26  ;;  %v8474_v25 = vld [vmem:[#allocation5 + $0x1220] ss:$16 sps:$4 sm:$0xff]   ;;  %v8477_v26 = vld [vmem:[#allocation5 + $0x1228] ss:$16 sps:$4 sm:$0xff]  }
 0x266   :  { %5409 = vmatpush1.bf16.msra.mxu0 %v8381_v27  ;;  %5968 = vmatpush1.bf16.msra.mxu1 %v8384_v28  ;;  %v8482_v27 = vld [vmem:[#allocation5 + $0x1244] ss:$16 sps:$4 sm:$0xff]   ;;  %v8485_v28 = vld [vmem:[#allocation5 + $0x124c] ss:$16 sps:$4 sm:$0xff]  }
 0x267   :  { %5410 = vmatprep.subr.bf16.mxu0 %v8389_v29  ;;  %5969 = vmatprep.subr.bf16.mxu1 %v8392_v30  ;;  %v8480_v29 = vld [vmem:[#allocation5 + $0x1240] ss:$16 sps:$4 sm:$0xff]   ;;  %v8483_v30 = vld [vmem:[#allocation5 + $0x1248] ss:$16 sps:$4 sm:$0xff]  }
 0x26a   :  { %5411 = vmatpush1.bf16.msra.mxu0 %v8387_v31  ;;  %5970 = vmatpush1.bf16.msra.mxu1 %v8390_v32  ;;  %v8488_v31 = vld [vmem:[#allocation5 + $0x1264] ss:$16 sps:$4 sm:$0xff]   ;;  %v8491_v32 = vld [vmem:[#allocation5 + $0x126c] ss:$16 sps:$4 sm:$0xff]  }
 0x26b   :  { %5412 = vmatprep.subr.bf16.mxu0 %v8395_v33  ;;  %5971 = vmatprep.subr.bf16.mxu1 %v8398_v34  ;;  %v8486_v33 = vld [vmem:[#allocation5 + $0x1260] ss:$16 sps:$4 sm:$0xff]   ;;  %v8489_v34 = vld [vmem:[#allocation5 + $0x1268] ss:$16 sps:$4 sm:$0xff]  }
 0x26e   :  { %5413 = vmatpush1.bf16.msra.mxu0 %v8393_v35  ;;  %5972 = vmatpush1.bf16.msra.mxu1 %v8396_v36  ;;  %v8494_v35 = vld [vmem:[#allocation5 + $0x1284] ss:$16 sps:$4 sm:$0xff]   ;;  %v8497_v36 = vld [vmem:[#allocation5 + $0x128c] ss:$16 sps:$4 sm:$0xff]  }
 0x26f   :  { %5414 = vmatprep.subr.bf16.mxu0 %v8401_v37  ;;  %5973 = vmatprep.subr.bf16.mxu1 %v8404_v38  ;;  %v8492_v37 = vld [vmem:[#allocation5 + $0x1280] ss:$16 sps:$4 sm:$0xff]   ;;  %v8495_v38 = vld [vmem:[#allocation5 + $0x1288] ss:$16 sps:$4 sm:$0xff]  }
 0x272   :  { %5415 = vmatpush1.bf16.msra.mxu0 %v8399_v39  ;;  %5974 = vmatpush1.bf16.msra.mxu1 %v8402_v40  ;;  %v8500_v39 = vld [vmem:[#allocation5 + $0x12a4] ss:$16 sps:$4 sm:$0xff]   ;;  %v8503_v40 = vld [vmem:[#allocation5 + $0x12ac] ss:$16 sps:$4 sm:$0xff]  }
 0x273   :  { %5416 = vmatprep.subr.bf16.mxu0 %v8407_v41  ;;  %5975 = vmatprep.subr.bf16.mxu1 %v8410_v42  ;;  %v8498_v41 = vld [vmem:[#allocation5 + $0x12a0] ss:$16 sps:$4 sm:$0xff]   ;;  %v8501_v42 = vld [vmem:[#allocation5 + $0x12a8] ss:$16 sps:$4 sm:$0xff]  }
 0x276   :  { %5417 = vmatpush1.bf16.msra.mxu0 %v8405_v43  ;;  %5976 = vmatpush1.bf16.msra.mxu1 %v8408_v44  ;;  %v8506_v43 = vld [vmem:[#allocation5 + $0x12c4] ss:$16 sps:$4 sm:$0xff]   ;;  %v8509_v44 = vld [vmem:[#allocation5 + $0x12cc] ss:$16 sps:$4 sm:$0xff]  }
 0x277   :  { %5418 = vmatprep.subr.bf16.mxu0 %v8413_v45  ;;  %5977 = vmatprep.subr.bf16.mxu1 %v8416_v46  ;;  %v8504_v45 = vld [vmem:[#allocation5 + $0x12c0] ss:$16 sps:$4 sm:$0xff]   ;;  %v8507_v46 = vld [vmem:[#allocation5 + $0x12c8] ss:$16 sps:$4 sm:$0xff]  }
 0x27a   :  { %5419 = vmatpush1.bf16.msra.mxu0 %v8411_v47  ;;  %5978 = vmatpush1.bf16.msra.mxu1 %v8414_v48  ;;  %v8512_v47 = vld [vmem:[#allocation5 + $0x12e4] ss:$16 sps:$4 sm:$0xff]   ;;  %v8515_v48 = vld [vmem:[#allocation5 + $0x12ec] ss:$16 sps:$4 sm:$0xff]  }
 0x27b   :  { %5420 = vmatprep.subr.bf16.mxu0 %v8419_v49  ;;  %5979 = vmatprep.subr.bf16.mxu1 %v8422_v50  ;;  %v8510_v49 = vld [vmem:[#allocation5 + $0x12e0] ss:$16 sps:$4 sm:$0xff]   ;;  %v8513_v50 = vld [vmem:[#allocation5 + $0x12e8] ss:$16 sps:$4 sm:$0xff]  }
 0x27e   :  { %5421 = vmatpush1.bf16.msra.mxu0 %v8417_v51  ;;  %5980 = vmatpush1.bf16.msra.mxu1 %v8420_v52  ;;  %v8518_v51 = vld [vmem:[#allocation5 + $0x1304] ss:$16 sps:$4 sm:$0xff]   ;;  %v8521_v52 = vld [vmem:[#allocation5 + $0x130c] ss:$16 sps:$4 sm:$0xff]  }
 0x27f   :  { %5422 = vmatprep.subr.bf16.mxu0 %v8425_v53  ;;  %5981 = vmatprep.subr.bf16.mxu1 %v8428_v54  ;;  %v8516_v53 = vld [vmem:[#allocation5 + $0x1300] ss:$16 sps:$4 sm:$0xff]   ;;  %v8519_v54 = vld [vmem:[#allocation5 + $0x1308] ss:$16 sps:$4 sm:$0xff]  }
 0x282   :  { %5423 = vmatpush1.bf16.msra.mxu0 %v8423_v55  ;;  %5982 = vmatpush1.bf16.msra.mxu1 %v8426_v56  ;;  %v8524_v55 = vld [vmem:[#allocation5 + $0x1324] ss:$16 sps:$4 sm:$0xff]   ;;  %v8527_v56 = vld [vmem:[#allocation5 + $0x132c] ss:$16 sps:$4 sm:$0xff]  }
 0x283   :  { %5424 = vmatprep.subr.bf16.mxu0 %v8431_v57  ;;  %5983 = vmatprep.subr.bf16.mxu1 %v8434_v58  ;;  %v8522_v57 = vld [vmem:[#allocation5 + $0x1320] ss:$16 sps:$4 sm:$0xff]   ;;  %v8525_v58 = vld [vmem:[#allocation5 + $0x1328] ss:$16 sps:$4 sm:$0xff]  }
 0x286   :  { %5425 = vmatpush1.bf16.msra.mxu0 %v8429_v59  ;;  %5984 = vmatpush1.bf16.msra.mxu1 %v8432_v60  ;;  %v8530_v59 = vld [vmem:[#allocation5 + $0x1344] ss:$16 sps:$4 sm:$0xff]   ;;  %v8533_v60 = vld [vmem:[#allocation5 + $0x134c] ss:$16 sps:$4 sm:$0xff]  }
 0x287   :  { %5426 = vmatprep.subr.bf16.mxu0 %v8437_v61  ;;  %5985 = vmatprep.subr.bf16.mxu1 %v8440_v62  ;;  %v8528_v61 = vld [vmem:[#allocation5 + $0x1340] ss:$16 sps:$4 sm:$0xff]   ;;  %v8531_v62 = vld [vmem:[#allocation5 + $0x1348] ss:$16 sps:$4 sm:$0xff]  }
 0x28a   :  { %5427 = vmatpush1.bf16.msra.mxu0 %v8435_v63  ;;  %5986 = vmatpush1.bf16.msra.mxu1 %v8438_v0  ;;  %v8536_v63 = vld [vmem:[#allocation5 + $0x1364] ss:$16 sps:$4 sm:$0xff]   ;;  %v8539_v0 = vld [vmem:[#allocation5 + $0x136c] ss:$16 sps:$4 sm:$0xff]  }
 0x28b   :  { %5428 = vmatprep.subr.bf16.mxu0 %v8443_v1  ;;  %5987 = vmatprep.subr.bf16.mxu1 %v8446_v2  ;;  %v8534_v1 = vld [vmem:[#allocation5 + $0x1360] ss:$16 sps:$4 sm:$0xff]   ;;  %v8537_v2 = vld [vmem:[#allocation5 + $0x1368] ss:$16 sps:$4 sm:$0xff]  }
 0x28e   :  { %5429 = vmatpush1.bf16.msra.mxu0 %v8441_v3  ;;  %5988 = vmatpush1.bf16.msra.mxu1 %v8444_v4  ;;  %v8542_v3 = vld [vmem:[#allocation5 + $0x1384] ss:$16 sps:$4 sm:$0xff]   ;;  %v8545_v4 = vld [vmem:[#allocation5 + $0x138c] ss:$16 sps:$4 sm:$0xff]  }
 0x28f   :  { %5430 = vmatprep.subr.bf16.mxu0 %v8449_v5  ;;  %5989 = vmatprep.subr.bf16.mxu1 %v8452_v6  ;;  %v8540_v5 = vld [vmem:[#allocation5 + $0x1380] ss:$16 sps:$4 sm:$0xff]   ;;  %v8543_v6 = vld [vmem:[#allocation5 + $0x1388] ss:$16 sps:$4 sm:$0xff]  }
 0x292   :  { %5431 = vmatpush1.bf16.msra.mxu0 %v8447_v7  ;;  %5990 = vmatpush1.bf16.msra.mxu1 %v8450_v8  ;;  %v8548_v7 = vld [vmem:[#allocation5 + $0x13a4] ss:$16 sps:$4 sm:$0xff]   ;;  %v8551_v8 = vld [vmem:[#allocation5 + $0x13ac] ss:$16 sps:$4 sm:$0xff]  }
 0x293   :  { %5432 = vmatprep.subr.bf16.mxu0 %v8455_v9  ;;  %5991 = vmatprep.subr.bf16.mxu1 %v8458_v10  ;;  %v8546_v9 = vld [vmem:[#allocation5 + $0x13a0] ss:$16 sps:$4 sm:$0xff]   ;;  %v8549_v10 = vld [vmem:[#allocation5 + $0x13a8] ss:$16 sps:$4 sm:$0xff]  }
 0x296   :  { %5433 = vmatpush1.bf16.msra.mxu0 %v8453_v11  ;;  %5992 = vmatpush1.bf16.msra.mxu1 %v8456_v12  ;;  %v8554_v11 = vld [vmem:[#allocation5 + $0x13c4] ss:$16 sps:$4 sm:$0xff]   ;;  %v8557_v12 = vld [vmem:[#allocation5 + $0x13cc] ss:$16 sps:$4 sm:$0xff]  }
 0x297   :  { %5434 = vmatprep.subr.bf16.mxu0 %v8461_v13  ;;  %5993 = vmatprep.subr.bf16.mxu1 %v8464_v14  ;;  %v8552_v13 = vld [vmem:[#allocation5 + $0x13c0] ss:$16 sps:$4 sm:$0xff]   ;;  %v8555_v14 = vld [vmem:[#allocation5 + $0x13c8] ss:$16 sps:$4 sm:$0xff]  }
 0x29a   :  { %5435 = vmatpush1.bf16.msra.mxu0 %v8459_v15  ;;  %5994 = vmatpush1.bf16.msra.mxu1 %v8462_v16  ;;  %v8560_v15 = vld [vmem:[#allocation5 + $0x13e4] ss:$16 sps:$4 sm:$0xff]   ;;  %v8563_v16 = vld [vmem:[#allocation5 + $0x13ec] ss:$16 sps:$4 sm:$0xff]  }
 0x29b   :  { %5447 = vmatprep.subr.bf16.mxu0 %v8470_v17  ;;  %6006 = vmatprep.subr.bf16.mxu1 %v8473_v18  ;;  %v8558_v17 = vld [vmem:[#allocation5 + $0x13e0] ss:$16 sps:$4 sm:$0xff]   ;;  %v8561_v18 = vld [vmem:[#allocation5 + $0x13e8] ss:$16 sps:$4 sm:$0xff]  }
 0x29d   :  { %5437 = vmatmul.mubr.bf16.vlgmr.msra.gmra.mrb[0].mxu0 %v8465_v19  ;;  %5996 = vmatmul.mubr.bf16.vlgmr.msra.gmra.mrb[0].mxu1 %v8465_v19  ;;  %v8569_v19 = vld [vmem:[#allocation5 + $0x1404] ss:$16 sps:$4 sm:$0xff]  }
 0x29e   :  { %5448 = vmatpush1.bf16.msra.mxu0 %v8468_v20  ;;  %6007 = vmatpush1.bf16.msra.mxu1 %v8471_v21  ;;  %v8572_v20 = vld [vmem:[#allocation5 + $0x140c] ss:$16 sps:$4 sm:$0xff]   ;;  %v8564_v21 = vld [vmem:[#allocation2 + $0x48] ss:$100 sps:$4 sm:$0xff]  }
 0x29f   :  { %5449 = vmatprep.subr.bf16.mxu0 %v8476_v22  ;;  %6008 = vmatprep.subr.bf16.mxu1 %v8479_v23  ;;  %v8567_v22 = vld [vmem:[#allocation5 + $0x1400] ss:$16 sps:$4 sm:$0xff]   ;;  %v8570_v23 = vld [vmem:[#allocation5 + $0x1408] ss:$16 sps:$4 sm:$0xff]  }
 0x2a0   :  { %5479 = vmatprep.mubr.bf16.mxu0 %v8566_v24  ;;  %6038 = vmatprep.mubr.bf16.mxu1 %v8566_v24  ;;  %v8575_v24 = vld [vmem:[#allocation5 + $0x1424] ss:$16 sps:$4 sm:$0xff]  }
 0x2a2   :  { %5450 = vmatpush1.bf16.msra.mxu0 %v8474_v25  ;;  %6009 = vmatpush1.bf16.msra.mxu1 %v8477_v26  ;;  %v8578_v25 = vld [vmem:[#allocation5 + $0x142c] ss:$16 sps:$4 sm:$0xff]  }
 0x2a3   :  { %5451 = vmatprep.subr.bf16.mxu0 %v8482_v27  ;;  %6010 = vmatprep.subr.bf16.mxu1 %v8485_v28  ;;  %v8665_v26 = vld [vmem:[#allocation2 + $0x54] ss:$100 sps:$4 sm:$0xff]   ;;  %v8576_v28 = vld [vmem:[#allocation5 + $0x1428] ss:$16 sps:$4 sm:$0xff]  }
 0x2a4   :  { %v8573_v27 = vld [vmem:[#allocation5 + $0x1420] ss:$16 sps:$4 sm:$0xff]  }
 0x2a6   :  { %5452 = vmatpush1.bf16.msra.mxu0 %v8480_v29  ;;  %6011 = vmatpush1.bf16.msra.mxu1 %v8483_v30  ;;  %v8581_v29 = vld [vmem:[#allocation5 + $0x1444] ss:$16 sps:$4 sm:$0xff]   ;;  %v8584_v30 = vld [vmem:[#allocation5 + $0x144c] ss:$16 sps:$4 sm:$0xff]  }
 0x2a7   :  { %5453 = vmatprep.subr.bf16.mxu0 %v8488_v31  ;;  %6012 = vmatprep.subr.bf16.mxu1 %v8491_v32  ;;  %v8579_v31 = vld [vmem:[#allocation5 + $0x1440] ss:$16 sps:$4 sm:$0xff]   ;;  %v8582_v32 = vld [vmem:[#allocation5 + $0x1448] ss:$16 sps:$4 sm:$0xff]  }
 0x2aa   :  { %5454 = vmatpush1.bf16.msra.mxu0 %v8486_v33  ;;  %6013 = vmatpush1.bf16.msra.mxu1 %v8489_v34  ;;  %v8587_v33 = vld [vmem:[#allocation5 + $0x1464] ss:$16 sps:$4 sm:$0xff]   ;;  %v8590_v34 = vld [vmem:[#allocation5 + $0x146c] ss:$16 sps:$4 sm:$0xff]  }
 0x2ab   :  { %5455 = vmatprep.subr.bf16.mxu0 %v8494_v35  ;;  %6014 = vmatprep.subr.bf16.mxu1 %v8497_v36  ;;  %v8585_v35 = vld [vmem:[#allocation5 + $0x1460] ss:$16 sps:$4 sm:$0xff]   ;;  %v8588_v36 = vld [vmem:[#allocation5 + $0x1468] ss:$16 sps:$4 sm:$0xff]  }
 0x2ae   :  { %5456 = vmatpush1.bf16.msra.mxu0 %v8492_v37  ;;  %6015 = vmatpush1.bf16.msra.mxu1 %v8495_v38  ;;  %v8593_v37 = vld [vmem:[#allocation5 + $0x1484] ss:$16 sps:$4 sm:$0xff]   ;;  %v8596_v38 = vld [vmem:[#allocation5 + $0x148c] ss:$16 sps:$4 sm:$0xff]  }
 0x2af   :  { %5457 = vmatprep.subr.bf16.mxu0 %v8500_v39  ;;  %6016 = vmatprep.subr.bf16.mxu1 %v8503_v40  ;;  %v8591_v39 = vld [vmem:[#allocation5 + $0x1480] ss:$16 sps:$4 sm:$0xff]   ;;  %v8594_v40 = vld [vmem:[#allocation5 + $0x1488] ss:$16 sps:$4 sm:$0xff]  }
 0x2b2   :  { %5458 = vmatpush1.bf16.msra.mxu0 %v8498_v41  ;;  %6017 = vmatpush1.bf16.msra.mxu1 %v8501_v42  ;;  %v8599_v41 = vld [vmem:[#allocation5 + $0x14a4] ss:$16 sps:$4 sm:$0xff]   ;;  %v8602_v42 = vld [vmem:[#allocation5 + $0x14ac] ss:$16 sps:$4 sm:$0xff]  }
 0x2b3   :  { %5459 = vmatprep.subr.bf16.mxu0 %v8506_v43  ;;  %6018 = vmatprep.subr.bf16.mxu1 %v8509_v44  ;;  %v8597_v43 = vld [vmem:[#allocation5 + $0x14a0] ss:$16 sps:$4 sm:$0xff]   ;;  %v8600_v44 = vld [vmem:[#allocation5 + $0x14a8] ss:$16 sps:$4 sm:$0xff]  }
 0x2b6   :  { %5460 = vmatpush1.bf16.msra.mxu0 %v8504_v45  ;;  %6019 = vmatpush1.bf16.msra.mxu1 %v8507_v46  ;;  %v8605_v45 = vld [vmem:[#allocation5 + $0x14c4] ss:$16 sps:$4 sm:$0xff]   ;;  %v8608_v46 = vld [vmem:[#allocation5 + $0x14cc] ss:$16 sps:$4 sm:$0xff]  }
 0x2b7   :  { %5461 = vmatprep.subr.bf16.mxu0 %v8512_v47  ;;  %6020 = vmatprep.subr.bf16.mxu1 %v8515_v48  ;;  %v8603_v47 = vld [vmem:[#allocation5 + $0x14c0] ss:$16 sps:$4 sm:$0xff]   ;;  %v8606_v48 = vld [vmem:[#allocation5 + $0x14c8] ss:$16 sps:$4 sm:$0xff]  }
 0x2ba   :  { %5462 = vmatpush1.bf16.msra.mxu0 %v8510_v49  ;;  %6021 = vmatpush1.bf16.msra.mxu1 %v8513_v50  ;;  %v8611_v49 = vld [vmem:[#allocation5 + $0x14e4] ss:$16 sps:$4 sm:$0xff]   ;;  %v8614_v50 = vld [vmem:[#allocation5 + $0x14ec] ss:$16 sps:$4 sm:$0xff]  }
 0x2bb   :  { %5463 = vmatprep.subr.bf16.mxu0 %v8518_v51  ;;  %6022 = vmatprep.subr.bf16.mxu1 %v8521_v52  ;;  %v8609_v51 = vld [vmem:[#allocation5 + $0x14e0] ss:$16 sps:$4 sm:$0xff]   ;;  %v8612_v52 = vld [vmem:[#allocation5 + $0x14e8] ss:$16 sps:$4 sm:$0xff]  }
 0x2be   :  { %5464 = vmatpush1.bf16.msra.mxu0 %v8516_v53  ;;  %6023 = vmatpush1.bf16.msra.mxu1 %v8519_v54  ;;  %v8617_v53 = vld [vmem:[#allocation5 + $0x1504] ss:$16 sps:$4 sm:$0xff]   ;;  %v8620_v54 = vld [vmem:[#allocation5 + $0x150c] ss:$16 sps:$4 sm:$0xff]  }
 0x2bf   :  { %5465 = vmatprep.subr.bf16.mxu0 %v8524_v55  ;;  %6024 = vmatprep.subr.bf16.mxu1 %v8527_v56  ;;  %v8615_v55 = vld [vmem:[#allocation5 + $0x1500] ss:$16 sps:$4 sm:$0xff]   ;;  %v8618_v56 = vld [vmem:[#allocation5 + $0x1508] ss:$16 sps:$4 sm:$0xff]  }
 0x2c2   :  { %5466 = vmatpush1.bf16.msra.mxu0 %v8522_v57  ;;  %6025 = vmatpush1.bf16.msra.mxu1 %v8525_v58  ;;  %v8623_v57 = vld [vmem:[#allocation5 + $0x1524] ss:$16 sps:$4 sm:$0xff]   ;;  %v8626_v58 = vld [vmem:[#allocation5 + $0x152c] ss:$16 sps:$4 sm:$0xff]  }
 0x2c3   :  { %5467 = vmatprep.subr.bf16.mxu0 %v8530_v59  ;;  %6026 = vmatprep.subr.bf16.mxu1 %v8533_v60  ;;  %v8621_v59 = vld [vmem:[#allocation5 + $0x1520] ss:$16 sps:$4 sm:$0xff]   ;;  %v8624_v60 = vld [vmem:[#allocation5 + $0x1528] ss:$16 sps:$4 sm:$0xff]  }
 0x2c6   :  { %5468 = vmatpush1.bf16.msra.mxu0 %v8528_v61  ;;  %6027 = vmatpush1.bf16.msra.mxu1 %v8531_v62  ;;  %v8629_v61 = vld [vmem:[#allocation5 + $0x1544] ss:$16 sps:$4 sm:$0xff]   ;;  %v8632_v62 = vld [vmem:[#allocation5 + $0x154c] ss:$16 sps:$4 sm:$0xff]  }
 0x2c7   :  { %5469 = vmatprep.subr.bf16.mxu0 %v8536_v63  ;;  %6028 = vmatprep.subr.bf16.mxu1 %v8539_v0  ;;  %v8627_v63 = vld [vmem:[#allocation5 + $0x1540] ss:$16 sps:$4 sm:$0xff]   ;;  %v8630_v0 = vld [vmem:[#allocation5 + $0x1548] ss:$16 sps:$4 sm:$0xff]  }
 0x2ca   :  { %5470 = vmatpush1.bf16.msra.mxu0 %v8534_v1  ;;  %6029 = vmatpush1.bf16.msra.mxu1 %v8537_v2  ;;  %v8635_v1 = vld [vmem:[#allocation5 + $0x1564] ss:$16 sps:$4 sm:$0xff]   ;;  %v8638_v2 = vld [vmem:[#allocation5 + $0x156c] ss:$16 sps:$4 sm:$0xff]  }
 0x2cb   :  { %5471 = vmatprep.subr.bf16.mxu0 %v8542_v3  ;;  %6030 = vmatprep.subr.bf16.mxu1 %v8545_v4  ;;  %v8633_v3 = vld [vmem:[#allocation5 + $0x1560] ss:$16 sps:$4 sm:$0xff]   ;;  %v8636_v4 = vld [vmem:[#allocation5 + $0x1568] ss:$16 sps:$4 sm:$0xff]  }
 0x2ce   :  { %5472 = vmatpush1.bf16.msra.mxu0 %v8540_v5  ;;  %6031 = vmatpush1.bf16.msra.mxu1 %v8543_v6  ;;  %v8641_v5 = vld [vmem:[#allocation5 + $0x1584] ss:$16 sps:$4 sm:$0xff]   ;;  %v8644_v6 = vld [vmem:[#allocation5 + $0x158c] ss:$16 sps:$4 sm:$0xff]  }
 0x2cf   :  { %5473 = vmatprep.subr.bf16.mxu0 %v8548_v7  ;;  %6032 = vmatprep.subr.bf16.mxu1 %v8551_v8  ;;  %v8639_v7 = vld [vmem:[#allocation5 + $0x1580] ss:$16 sps:$4 sm:$0xff]   ;;  %v8642_v8 = vld [vmem:[#allocation5 + $0x1588] ss:$16 sps:$4 sm:$0xff]  }
 0x2d2   :  { %5474 = vmatpush1.bf16.msra.mxu0 %v8546_v9  ;;  %6033 = vmatpush1.bf16.msra.mxu1 %v8549_v10  ;;  %v8647_v9 = vld [vmem:[#allocation5 + $0x15a4] ss:$16 sps:$4 sm:$0xff]   ;;  %v8650_v10 = vld [vmem:[#allocation5 + $0x15ac] ss:$16 sps:$4 sm:$0xff]  }
 0x2d3   :  { %5475 = vmatprep.subr.bf16.mxu0 %v8554_v11  ;;  %6034 = vmatprep.subr.bf16.mxu1 %v8557_v12  ;;  %v8645_v11 = vld [vmem:[#allocation5 + $0x15a0] ss:$16 sps:$4 sm:$0xff]   ;;  %v8648_v12 = vld [vmem:[#allocation5 + $0x15a8] ss:$16 sps:$4 sm:$0xff]  }
 0x2d6   :  { %5476 = vmatpush1.bf16.msra.mxu0 %v8552_v13  ;;  %6035 = vmatpush1.bf16.msra.mxu1 %v8555_v14  ;;  %v8653_v13 = vld [vmem:[#allocation5 + $0x15c4] ss:$16 sps:$4 sm:$0xff]   ;;  %v8656_v14 = vld [vmem:[#allocation5 + $0x15cc] ss:$16 sps:$4 sm:$0xff]  }
 0x2d7   :  { %5477 = vmatprep.subr.bf16.mxu0 %v8560_v15  ;;  %6036 = vmatprep.subr.bf16.mxu1 %v8563_v16  ;;  %v8651_v15 = vld [vmem:[#allocation5 + $0x15c0] ss:$16 sps:$4 sm:$0xff]   ;;  %v8654_v16 = vld [vmem:[#allocation5 + $0x15c8] ss:$16 sps:$4 sm:$0xff]  }
 0x2da   :  { %5478 = vmatpush1.bf16.msra.mxu0 %v8558_v17  ;;  %6037 = vmatpush1.bf16.msra.mxu1 %v8561_v18  ;;  %v8659_v17 = vld [vmem:[#allocation5 + $0x15e4] ss:$16 sps:$4 sm:$0xff]   ;;  %v8662_v18 = vld [vmem:[#allocation5 + $0x15ec] ss:$16 sps:$4 sm:$0xff]  }
 0x2db   :  { %5490 = vmatprep.subr.bf16.mxu0 %v8569_v19  ;;  %6049 = vmatprep.subr.bf16.mxu1 %v8572_v20  ;;  %v8657_v19 = vld [vmem:[#allocation5 + $0x15e0] ss:$16 sps:$4 sm:$0xff]   ;;  %v8660_v20 = vld [vmem:[#allocation5 + $0x15e8] ss:$16 sps:$4 sm:$0xff]  }
 0x2dd   :  { %5480 = vmatmul.mubr.bf16.vlgmr.msra.gmra.mrb[0].mxu0 %v8564_v21  ;;  %6039 = vmatmul.mubr.bf16.vlgmr.msra.gmra.mrb[0].mxu1 %v8564_v21  ;;  %v8668_v21 = vld [vmem:[#allocation5 + $0x1604] ss:$16 sps:$4 sm:$0xff]  }
 0x2de   :  { %5491 = vmatpush1.bf16.msra.mxu0 %v8567_v22  ;;  %6050 = vmatpush1.bf16.msra.mxu1 %v8570_v23  ;;  %v8671_v22 = vld [vmem:[#allocation5 + $0x160c] ss:$16 sps:$4 sm:$0xff]  }
 0x2df   :  { %5492 = vmatprep.subr.bf16.mxu0 %v8575_v24  ;;  %6051 = vmatprep.subr.bf16.mxu1 %v8578_v25  ;;  %v8663_v23 = vld [vmem:[#allocation2 + $0x50] ss:$100 sps:$4 sm:$0xff]   ;;  %v8666_v24 = vld [vmem:[#allocation5 + $0x1600] ss:$16 sps:$4 sm:$0xff]  }
 0x2e0   :  { %5522 = vmatprep.mubr.bf16.mxu0 %v8665_v26  ;;  %6081 = vmatprep.mubr.bf16.mxu1 %v8665_v26  ;;  %v8669_v25 = vld [vmem:[#allocation5 + $0x1608] ss:$16 sps:$4 sm:$0xff]   ;;  %v8674_v26 = vld [vmem:[#allocation5 + $0x1624] ss:$16 sps:$4 sm:$0xff]  }
 0x2e2   :  { %5493 = vmatpush1.bf16.msra.mxu0 %v8573_v27  ;;  %6052 = vmatpush1.bf16.msra.mxu1 %v8576_v28  ;;  %v8677_v27 = vld [vmem:[#allocation5 + $0x162c] ss:$16 sps:$4 sm:$0xff]   ;;  %v8764_v28 = vld [vmem:[#allocation2 + $0x5c] ss:$100 sps:$4 sm:$0xff]  }
 0x2e3   :  { %5494 = vmatprep.subr.bf16.mxu0 %v8581_v29  ;;  %6053 = vmatprep.subr.bf16.mxu1 %v8584_v30  ;;  %v8672_v29 = vld [vmem:[#allocation5 + $0x1620] ss:$16 sps:$4 sm:$0xff]   ;;  %v8675_v30 = vld [vmem:[#allocation5 + $0x1628] ss:$16 sps:$4 sm:$0xff]  }
 0x2e6   :  { %5495 = vmatpush1.bf16.msra.mxu0 %v8579_v31  ;;  %6054 = vmatpush1.bf16.msra.mxu1 %v8582_v32  ;;  %v8680_v31 = vld [vmem:[#allocation5 + $0x1644] ss:$16 sps:$4 sm:$0xff]   ;;  %v8683_v32 = vld [vmem:[#allocation5 + $0x164c] ss:$16 sps:$4 sm:$0xff]  }
 0x2e7   :  { %5496 = vmatprep.subr.bf16.mxu0 %v8587_v33  ;;  %6055 = vmatprep.subr.bf16.mxu1 %v8590_v34  ;;  %v8678_v33 = vld [vmem:[#allocation5 + $0x1640] ss:$16 sps:$4 sm:$0xff]   ;;  %v8681_v34 = vld [vmem:[#allocation5 + $0x1648] ss:$16 sps:$4 sm:$0xff]  }
 0x2ea   :  { %5497 = vmatpush1.bf16.msra.mxu0 %v8585_v35  ;;  %6056 = vmatpush1.bf16.msra.mxu1 %v8588_v36  ;;  %v8686_v35 = vld [vmem:[#allocation5 + $0x1664] ss:$16 sps:$4 sm:$0xff]   ;;  %v8689_v36 = vld [vmem:[#allocation5 + $0x166c] ss:$16 sps:$4 sm:$0xff]  }
 0x2eb   :  { %5498 = vmatprep.subr.bf16.mxu0 %v8593_v37  ;;  %6057 = vmatprep.subr.bf16.mxu1 %v8596_v38  ;;  %v8684_v37 = vld [vmem:[#allocation5 + $0x1660] ss:$16 sps:$4 sm:$0xff]   ;;  %v8687_v38 = vld [vmem:[#allocation5 + $0x1668] ss:$16 sps:$4 sm:$0xff]  }
 0x2ee   :  { %5499 = vmatpush1.bf16.msra.mxu0 %v8591_v39  ;;  %6058 = vmatpush1.bf16.msra.mxu1 %v8594_v40  ;;  %v8692_v39 = vld [vmem:[#allocation5 + $0x1684] ss:$16 sps:$4 sm:$0xff]   ;;  %v8695_v40 = vld [vmem:[#allocation5 + $0x168c] ss:$16 sps:$4 sm:$0xff]  }
 0x2ef   :  { %5500 = vmatprep.subr.bf16.mxu0 %v8599_v41  ;;  %6059 = vmatprep.subr.bf16.mxu1 %v8602_v42  ;;  %v8690_v41 = vld [vmem:[#allocation5 + $0x1680] ss:$16 sps:$4 sm:$0xff]   ;;  %v8693_v42 = vld [vmem:[#allocation5 + $0x1688] ss:$16 sps:$4 sm:$0xff]  }
 0x2f2   :  { %5501 = vmatpush1.bf16.msra.mxu0 %v8597_v43  ;;  %6060 = vmatpush1.bf16.msra.mxu1 %v8600_v44  ;;  %v8698_v43 = vld [vmem:[#allocation5 + $0x16a4] ss:$16 sps:$4 sm:$0xff]   ;;  %v8701_v44 = vld [vmem:[#allocation5 + $0x16ac] ss:$16 sps:$4 sm:$0xff]  }
 0x2f3   :  { %5502 = vmatprep.subr.bf16.mxu0 %v8605_v45  ;;  %6061 = vmatprep.subr.bf16.mxu1 %v8608_v46  ;;  %v8696_v45 = vld [vmem:[#allocation5 + $0x16a0] ss:$16 sps:$4 sm:$0xff]   ;;  %v8699_v46 = vld [vmem:[#allocation5 + $0x16a8] ss:$16 sps:$4 sm:$0xff]  }
 0x2f6   :  { %5503 = vmatpush1.bf16.msra.mxu0 %v8603_v47  ;;  %6062 = vmatpush1.bf16.msra.mxu1 %v8606_v48  ;;  %v8704_v47 = vld [vmem:[#allocation5 + $0x16c4] ss:$16 sps:$4 sm:$0xff]   ;;  %v8707_v48 = vld [vmem:[#allocation5 + $0x16cc] ss:$16 sps:$4 sm:$0xff]  }
 0x2f7   :  { %5504 = vmatprep.subr.bf16.mxu0 %v8611_v49  ;;  %6063 = vmatprep.subr.bf16.mxu1 %v8614_v50  ;;  %v8702_v49 = vld [vmem:[#allocation5 + $0x16c0] ss:$16 sps:$4 sm:$0xff]   ;;  %v8705_v50 = vld [vmem:[#allocation5 + $0x16c8] ss:$16 sps:$4 sm:$0xff]  }
 0x2fa   :  { %5505 = vmatpush1.bf16.msra.mxu0 %v8609_v51  ;;  %6064 = vmatpush1.bf16.msra.mxu1 %v8612_v52  ;;  %v8710_v51 = vld [vmem:[#allocation5 + $0x16e4] ss:$16 sps:$4 sm:$0xff]   ;;  %v8713_v52 = vld [vmem:[#allocation5 + $0x16ec] ss:$16 sps:$4 sm:$0xff]  }
 0x2fb   :  { %5506 = vmatprep.subr.bf16.mxu0 %v8617_v53  ;;  %6065 = vmatprep.subr.bf16.mxu1 %v8620_v54  ;;  %v8708_v53 = vld [vmem:[#allocation5 + $0x16e0] ss:$16 sps:$4 sm:$0xff]   ;;  %v8711_v54 = vld [vmem:[#allocation5 + $0x16e8] ss:$16 sps:$4 sm:$0xff]  }
 0x2fe   :  { %5507 = vmatpush1.bf16.msra.mxu0 %v8615_v55  ;;  %6066 = vmatpush1.bf16.msra.mxu1 %v8618_v56  ;;  %v8716_v55 = vld [vmem:[#allocation5 + $0x1704] ss:$16 sps:$4 sm:$0xff]   ;;  %v8719_v56 = vld [vmem:[#allocation5 + $0x170c] ss:$16 sps:$4 sm:$0xff]  }
 0x2ff   :  { %5508 = vmatprep.subr.bf16.mxu0 %v8623_v57  ;;  %6067 = vmatprep.subr.bf16.mxu1 %v8626_v58  ;;  %v8714_v57 = vld [vmem:[#allocation5 + $0x1700] ss:$16 sps:$4 sm:$0xff]   ;;  %v8717_v58 = vld [vmem:[#allocation5 + $0x1708] ss:$16 sps:$4 sm:$0xff]  }
 0x302   :  { %5509 = vmatpush1.bf16.msra.mxu0 %v8621_v59  ;;  %6068 = vmatpush1.bf16.msra.mxu1 %v8624_v60  ;;  %v8722_v59 = vld [vmem:[#allocation5 + $0x1724] ss:$16 sps:$4 sm:$0xff]   ;;  %v8725_v60 = vld [vmem:[#allocation5 + $0x172c] ss:$16 sps:$4 sm:$0xff]  }
 0x303   :  { %5510 = vmatprep.subr.bf16.mxu0 %v8629_v61  ;;  %6069 = vmatprep.subr.bf16.mxu1 %v8632_v62  ;;  %v8720_v61 = vld [vmem:[#allocation5 + $0x1720] ss:$16 sps:$4 sm:$0xff]   ;;  %v8723_v62 = vld [vmem:[#allocation5 + $0x1728] ss:$16 sps:$4 sm:$0xff]  }
 0x306   :  { %5511 = vmatpush1.bf16.msra.mxu0 %v8627_v63  ;;  %6070 = vmatpush1.bf16.msra.mxu1 %v8630_v0  ;;  %v8728_v63 = vld [vmem:[#allocation5 + $0x1744] ss:$16 sps:$4 sm:$0xff]   ;;  %v8731_v0 = vld [vmem:[#allocation5 + $0x174c] ss:$16 sps:$4 sm:$0xff]  }
 0x307   :  { %5512 = vmatprep.subr.bf16.mxu0 %v8635_v1  ;;  %6071 = vmatprep.subr.bf16.mxu1 %v8638_v2  ;;  %v8726_v1 = vld [vmem:[#allocation5 + $0x1740] ss:$16 sps:$4 sm:$0xff]   ;;  %v8729_v2 = vld [vmem:[#allocation5 + $0x1748] ss:$16 sps:$4 sm:$0xff]  }
 0x30a   :  { %5513 = vmatpush1.bf16.msra.mxu0 %v8633_v3  ;;  %6072 = vmatpush1.bf16.msra.mxu1 %v8636_v4  ;;  %v8734_v3 = vld [vmem:[#allocation5 + $0x1764] ss:$16 sps:$4 sm:$0xff]   ;;  %v8737_v4 = vld [vmem:[#allocation5 + $0x176c] ss:$16 sps:$4 sm:$0xff]  }
 0x30b   :  { %5514 = vmatprep.subr.bf16.mxu0 %v8641_v5  ;;  %6073 = vmatprep.subr.bf16.mxu1 %v8644_v6  ;;  %v8732_v5 = vld [vmem:[#allocation5 + $0x1760] ss:$16 sps:$4 sm:$0xff]   ;;  %v8735_v6 = vld [vmem:[#allocation5 + $0x1768] ss:$16 sps:$4 sm:$0xff]  }
 0x30e   :  { %5515 = vmatpush1.bf16.msra.mxu0 %v8639_v7  ;;  %6074 = vmatpush1.bf16.msra.mxu1 %v8642_v8  ;;  %v8740_v7 = vld [vmem:[#allocation5 + $0x1784] ss:$16 sps:$4 sm:$0xff]   ;;  %v8743_v8 = vld [vmem:[#allocation5 + $0x178c] ss:$16 sps:$4 sm:$0xff]  }
 0x30f   :  { %5516 = vmatprep.subr.bf16.mxu0 %v8647_v9  ;;  %6075 = vmatprep.subr.bf16.mxu1 %v8650_v10  ;;  %v8738_v9 = vld [vmem:[#allocation5 + $0x1780] ss:$16 sps:$4 sm:$0xff]   ;;  %v8741_v10 = vld [vmem:[#allocation5 + $0x1788] ss:$16 sps:$4 sm:$0xff]  }
 0x312   :  { %5517 = vmatpush1.bf16.msra.mxu0 %v8645_v11  ;;  %6076 = vmatpush1.bf16.msra.mxu1 %v8648_v12  ;;  %v8746_v11 = vld [vmem:[#allocation5 + $0x17a4] ss:$16 sps:$4 sm:$0xff]   ;;  %v8749_v12 = vld [vmem:[#allocation5 + $0x17ac] ss:$16 sps:$4 sm:$0xff]  }
 0x313   :  { %5518 = vmatprep.subr.bf16.mxu0 %v8653_v13  ;;  %6077 = vmatprep.subr.bf16.mxu1 %v8656_v14  ;;  %v8744_v13 = vld [vmem:[#allocation5 + $0x17a0] ss:$16 sps:$4 sm:$0xff]   ;;  %v8747_v14 = vld [vmem:[#allocation5 + $0x17a8] ss:$16 sps:$4 sm:$0xff]  }
 0x316   :  { %5519 = vmatpush1.bf16.msra.mxu0 %v8651_v15  ;;  %6078 = vmatpush1.bf16.msra.mxu1 %v8654_v16  ;;  %v8752_v15 = vld [vmem:[#allocation5 + $0x17c4] ss:$16 sps:$4 sm:$0xff]   ;;  %v8755_v16 = vld [vmem:[#allocation5 + $0x17cc] ss:$16 sps:$4 sm:$0xff]  }
 0x317   :  { %5520 = vmatprep.subr.bf16.mxu0 %v8659_v17  ;;  %6079 = vmatprep.subr.bf16.mxu1 %v8662_v18  ;;  %v8750_v17 = vld [vmem:[#allocation5 + $0x17c0] ss:$16 sps:$4 sm:$0xff]   ;;  %v8753_v18 = vld [vmem:[#allocation5 + $0x17c8] ss:$16 sps:$4 sm:$0xff]  }
 0x31a   :  { %5521 = vmatpush1.bf16.msra.mxu0 %v8657_v19  ;;  %6080 = vmatpush1.bf16.msra.mxu1 %v8660_v20  ;;  %v8758_v19 = vld [vmem:[#allocation5 + $0x17e4] ss:$16 sps:$4 sm:$0xff]   ;;  %v8761_v20 = vld [vmem:[#allocation5 + $0x17ec] ss:$16 sps:$4 sm:$0xff]  }
 0x31b   :  { %5533 = vmatprep.subr.bf16.mxu0 %v8668_v21  ;;  %6092 = vmatprep.subr.bf16.mxu1 %v8671_v22  ;;  %v8756_v21 = vld [vmem:[#allocation5 + $0x17e0] ss:$16 sps:$4 sm:$0xff]   ;;  %v8759_v22 = vld [vmem:[#allocation5 + $0x17e8] ss:$16 sps:$4 sm:$0xff]  }
 0x31d   :  { %5523 = vmatmul.mubr.bf16.vlgmr.msra.gmra.mrb[0].mxu0 %v8663_v23  ;;  %6082 = vmatmul.mubr.bf16.vlgmr.msra.gmra.mrb[0].mxu1 %v8663_v23  ;;  %v8767_v23 = vld [vmem:[#allocation5 + $0x1804] ss:$16 sps:$4 sm:$0xff]  }
 0x31e   :  { %5534 = vmatpush1.bf16.msra.mxu0 %v8666_v24  ;;  %6093 = vmatpush1.bf16.msra.mxu1 %v8669_v25  ;;  %v8770_v24 = vld [vmem:[#allocation5 + $0x180c] ss:$16 sps:$4 sm:$0xff]   ;;  %v8762_v25 = vld [vmem:[#allocation2 + $0x58] ss:$100 sps:$4 sm:$0xff]  }
 0x31f   :  { %5535 = vmatprep.subr.bf16.mxu0 %v8674_v26  ;;  %6094 = vmatprep.subr.bf16.mxu1 %v8677_v27  ;;  %v8765_v26 = vld [vmem:[#allocation5 + $0x1800] ss:$16 sps:$4 sm:$0xff]   ;;  %v8768_v27 = vld [vmem:[#allocation5 + $0x1808] ss:$16 sps:$4 sm:$0xff]  }
 0x320   :  { %5565 = vmatprep.mubr.bf16.mxu0 %v8764_v28  ;;  %6124 = vmatprep.mubr.bf16.mxu1 %v8764_v28  ;;  %v8773_v28 = vld [vmem:[#allocation5 + $0x1824] ss:$16 sps:$4 sm:$0xff]  }
 0x322   :  { %5536 = vmatpush1.bf16.msra.mxu0 %v8672_v29  ;;  %6095 = vmatpush1.bf16.msra.mxu1 %v8675_v30  ;;  %v8776_v29 = vld [vmem:[#allocation5 + $0x182c] ss:$16 sps:$4 sm:$0xff]   ;;  %v8771_v30 = vld [vmem:[#allocation5 + $0x1820] ss:$16 sps:$4 sm:$0xff]  }
 0x323   :  { %5537 = vmatprep.subr.bf16.mxu0 %v8680_v31  ;;  %6096 = vmatprep.subr.bf16.mxu1 %v8683_v32  ;;  %v8774_v31 = vld [vmem:[#allocation5 + $0x1828] ss:$16 sps:$4 sm:$0xff]   ;;  %v8779_v32 = vld [vmem:[#allocation5 + $0x1844] ss:$16 sps:$4 sm:$0xff]  }
 0x326   :  { %5538 = vmatpush1.bf16.msra.mxu0 %v8678_v33  ;;  %6097 = vmatpush1.bf16.msra.mxu1 %v8681_v34  ;;  %v8782_v33 = vld [vmem:[#allocation5 + $0x184c] ss:$16 sps:$4 sm:$0xff]   ;;  %v8997_v34 = vmov 0  }
 0x327   :  { %5539 = vmatprep.subr.bf16.mxu0 %v8686_v35  ;;  %6098 = vmatprep.subr.bf16.mxu1 %v8689_v36  ;;  %v8777_v35 = vld [vmem:[#allocation5 + $0x1840] ss:$16 sps:$4 sm:$0xff]   ;;  %v8780_v36 = vld [vmem:[#allocation5 + $0x1848] ss:$16 sps:$4 sm:$0xff]  }
 0x32a   :  { %5540 = vmatpush1.bf16.msra.mxu0 %v8684_v37  ;;  %6099 = vmatpush1.bf16.msra.mxu1 %v8687_v38  ;;  %v8785_v37 = vld [vmem:[#allocation5 + $0x1864] ss:$16 sps:$4 sm:$0xff]   ;;  %v8788_v38 = vld [vmem:[#allocation5 + $0x186c] ss:$16 sps:$4 sm:$0xff]  }
 0x32b   :  { %5541 = vmatprep.subr.bf16.mxu0 %v8692_v39  ;;  %6100 = vmatprep.subr.bf16.mxu1 %v8695_v40  ;;  %v8783_v39 = vld [vmem:[#allocation5 + $0x1860] ss:$16 sps:$4 sm:$0xff]   ;;  %v8786_v40 = vld [vmem:[#allocation5 + $0x1868] ss:$16 sps:$4 sm:$0xff]  }
 0x32e   :  { %5542 = vmatpush1.bf16.msra.mxu0 %v8690_v41  ;;  %6101 = vmatpush1.bf16.msra.mxu1 %v8693_v42  ;;  %v8791_v41 = vld [vmem:[#allocation5 + $0x1884] ss:$16 sps:$4 sm:$0xff]   ;;  %v8794_v42 = vld [vmem:[#allocation5 + $0x188c] ss:$16 sps:$4 sm:$0xff]  }
 0x32f   :  { %5543 = vmatprep.subr.bf16.mxu0 %v8698_v43  ;;  %6102 = vmatprep.subr.bf16.mxu1 %v8701_v44  ;;  %v8789_v43 = vld [vmem:[#allocation5 + $0x1880] ss:$16 sps:$4 sm:$0xff]   ;;  %v8792_v44 = vld [vmem:[#allocation5 + $0x1888] ss:$16 sps:$4 sm:$0xff]  }
 0x332   :  { %5544 = vmatpush1.bf16.msra.mxu0 %v8696_v45  ;;  %6103 = vmatpush1.bf16.msra.mxu1 %v8699_v46  ;;  %v8797_v45 = vld [vmem:[#allocation5 + $0x18a4] ss:$16 sps:$4 sm:$0xff]   ;;  %v8800_v46 = vld [vmem:[#allocation5 + $0x18ac] ss:$16 sps:$4 sm:$0xff]  }
 0x333   :  { %5545 = vmatprep.subr.bf16.mxu0 %v8704_v47  ;;  %6104 = vmatprep.subr.bf16.mxu1 %v8707_v48  ;;  %v8795_v47 = vld [vmem:[#allocation5 + $0x18a0] ss:$16 sps:$4 sm:$0xff]   ;;  %v8798_v48 = vld [vmem:[#allocation5 + $0x18a8] ss:$16 sps:$4 sm:$0xff]  }
 0x336   :  { %5546 = vmatpush1.bf16.msra.mxu0 %v8702_v49  ;;  %6105 = vmatpush1.bf16.msra.mxu1 %v8705_v50  ;;  %v8803_v49 = vld [vmem:[#allocation5 + $0x18c4] ss:$16 sps:$4 sm:$0xff]   ;;  %v8806_v50 = vld [vmem:[#allocation5 + $0x18cc] ss:$16 sps:$4 sm:$0xff]  }
 0x337   :  { %5547 = vmatprep.subr.bf16.mxu0 %v8710_v51  ;;  %6106 = vmatprep.subr.bf16.mxu1 %v8713_v52  ;;  %v8801_v51 = vld [vmem:[#allocation5 + $0x18c0] ss:$16 sps:$4 sm:$0xff]   ;;  %v8804_v52 = vld [vmem:[#allocation5 + $0x18c8] ss:$16 sps:$4 sm:$0xff]  }
 0x33a   :  { %5548 = vmatpush1.bf16.msra.mxu0 %v8708_v53  ;;  %6107 = vmatpush1.bf16.msra.mxu1 %v8711_v54  ;;  %v8809_v53 = vld [vmem:[#allocation5 + $0x18e4] ss:$16 sps:$4 sm:$0xff]   ;;  %v8812_v54 = vld [vmem:[#allocation5 + $0x18ec] ss:$16 sps:$4 sm:$0xff]  }
 0x33b   :  { %5549 = vmatprep.subr.bf16.mxu0 %v8716_v55  ;;  %6108 = vmatprep.subr.bf16.mxu1 %v8719_v56  ;;  %v8807_v55 = vld [vmem:[#allocation5 + $0x18e0] ss:$16 sps:$4 sm:$0xff]   ;;  %v8810_v56 = vld [vmem:[#allocation5 + $0x18e8] ss:$16 sps:$4 sm:$0xff]  }
 0x33e   :  { %5550 = vmatpush1.bf16.msra.mxu0 %v8714_v57  ;;  %6109 = vmatpush1.bf16.msra.mxu1 %v8717_v58  ;;  %v8814_v57 = vld [vmem:[#allocation8 + $0x40] sm:$0xff]  }
 0x33f   :  { %5551 = vmatprep.subr.bf16.mxu0 %v8722_v59  ;;  %6110 = vmatprep.subr.bf16.mxu1 %v8725_v60  ;;  %v8815_v58 = vld [vmem:[#allocation8 + $0xc0] sm:$0xff]   ;;  %v8813_v59 = vld [vmem:[#allocation2 + $0x60] ss:$100 sps:$4 sm:$0xff]  }
 0x340   :  { %v8816_v60 = vld [vmem:[#allocation8] sm:$0xff]  }
 0x342   :  { %5552 = vmatpush1.bf16.msra.mxu0 %v8720_v61  ;;  %6111 = vmatpush1.bf16.msra.mxu1 %v8723_v62  ;;  %v8817_v61 = vld [vmem:[#allocation8 + $0x80] sm:$0xff]   ;;  %v8818_v62 = vld [vmem:[#allocation8 + $0x48] sm:$0xff]  }
 0x343   :  { %5553 = vmatprep.subr.bf16.mxu0 %v8728_v63  ;;  %6112 = vmatprep.subr.bf16.mxu1 %v8731_v0  ;;  %v8819_v63 = vld [vmem:[#allocation8 + $0xc8] sm:$0xff]  }
 0x344   :  { %v8820_v0 = vld [vmem:[#allocation8 + $0x8] sm:$0xff]  }
 0x346   :  { %5554 = vmatpush1.bf16.msra.mxu0 %v8726_v1  ;;  %6113 = vmatpush1.bf16.msra.mxu1 %v8729_v2  ;;  %v8821_v1 = vld [vmem:[#allocation8 + $0x88] sm:$0xff]   ;;  %v8822_v2 = vld [vmem:[#allocation8 + $0x50] sm:$0xff]  }
 0x347   :  { %5555 = vmatprep.subr.bf16.mxu0 %v8734_v3  ;;  %6114 = vmatprep.subr.bf16.mxu1 %v8737_v4  ;;  %v8823_v3 = vld [vmem:[#allocation8 + $0xd0] sm:$0xff]  }
 0x348   :  { %v8824_v4 = vld [vmem:[#allocation8 + $0x10] sm:$0xff]  }
 0x34a   :  { %5556 = vmatpush1.bf16.msra.mxu0 %v8732_v5  ;;  %6115 = vmatpush1.bf16.msra.mxu1 %v8735_v6  ;;  %v8825_v5 = vld [vmem:[#allocation8 + $0x90] sm:$0xff]   ;;  %v8826_v6 = vld [vmem:[#allocation8 + $0x58] sm:$0xff]  }
 0x34b   :  { %5557 = vmatprep.subr.bf16.mxu0 %v8740_v7  ;;  %6116 = vmatprep.subr.bf16.mxu1 %v8743_v8  ;;  %v8827_v7 = vld [vmem:[#allocation8 + $0xd8] sm:$0xff]  }
 0x34c   :  { %v8828_v8 = vld [vmem:[#allocation8 + $0x18] sm:$0xff]  }
 0x34e   :  { %5558 = vmatpush1.bf16.msra.mxu0 %v8738_v9  ;;  %6117 = vmatpush1.bf16.msra.mxu1 %v8741_v10  ;;  %v8829_v9 = vld [vmem:[#allocation8 + $0x98] sm:$0xff]   ;;  %v8830_v10 = vld [vmem:[#allocation8 + $0x60] sm:$0xff]  }
 0x34f   :  { %5559 = vmatprep.subr.bf16.mxu0 %v8746_v11  ;;  %6118 = vmatprep.subr.bf16.mxu1 %v8749_v12  ;;  %v8831_v11 = vld [vmem:[#allocation8 + $0xe0] sm:$0xff]  }
 0x350   :  { %v8832_v12 = vld [vmem:[#allocation8 + $0x20] sm:$0xff]  }
 0x352   :  { %5560 = vmatpush1.bf16.msra.mxu0 %v8744_v13  ;;  %6119 = vmatpush1.bf16.msra.mxu1 %v8747_v14  ;;  %v8833_v13 = vld [vmem:[#allocation8 + $0xa0] sm:$0xff]   ;;  %v8834_v14 = vld [vmem:[#allocation8 + $0x68] sm:$0xff]  }
 0x353   :  { %5561 = vmatprep.subr.bf16.mxu0 %v8752_v15  ;;  %6120 = vmatprep.subr.bf16.mxu1 %v8755_v16  ;;  %v8835_v15 = vld [vmem:[#allocation8 + $0xe8] sm:$0xff]  }
 0x354   :  { %v8836_v16 = vld [vmem:[#allocation8 + $0x28] sm:$0xff]  }
 0x356   :  { %5562 = vmatpush1.bf16.msra.mxu0 %v8750_v17  ;;  %6121 = vmatpush1.bf16.msra.mxu1 %v8753_v18  ;;  %v8837_v17 = vld [vmem:[#allocation8 + $0xa8] sm:$0xff]   ;;  %v8838_v18 = vld [vmem:[#allocation8 + $0x70] sm:$0xff]  }
 0x357   :  { %5563 = vmatprep.subr.bf16.mxu0 %v8758_v19  ;;  %6122 = vmatprep.subr.bf16.mxu1 %v8761_v20  ;;  %v8839_v19 = vld [vmem:[#allocation8 + $0xf0] sm:$0xff]  }
 0x358   :  { %v8840_v20 = vld [vmem:[#allocation8 + $0x30] sm:$0xff]  }
 0x35a   :  { %5564 = vmatpush1.bf16.msra.mxu0 %v8756_v21  ;;  %6123 = vmatpush1.bf16.msra.mxu1 %v8759_v22  ;;  %v8841_v21 = vld [vmem:[#allocation8 + $0xb0] sm:$0xff]   ;;  %v8842_v22 = vld [vmem:[#allocation8 + $0x78] sm:$0xff]  }
 0x35b   :  { %5576 = vmatprep.subr.bf16.mxu0 %v8767_v23  ;;  %6135 = vmatprep.subr.bf16.mxu1 %v8770_v24  ;;  %v8843_v23 = vld [vmem:[#allocation8 + $0xf8] sm:$0xff]  }
 0x35c   :  { %v8844_v24 = vld [vmem:[#allocation8 + $0x38] sm:$0xff]  }
 0x35d   :  { %5566 = vmatmul.mubr.bf16.vlgmr.msra.gmra.mrb[0].mxu0 %v8762_v25  ;;  %6125 = vmatmul.mubr.bf16.vlgmr.msra.gmra.mrb[0].mxu1 %v8762_v25  ;;  %v8845_v25 = vld [vmem:[#allocation8 + $0xb8] sm:$0xff]  }
 0x35e   :  { %5577 = vmatpush1.bf16.msra.mxu0 %v8765_v26  ;;  %6136 = vmatpush1.bf16.msra.mxu1 %v8768_v27  ;;  %v914_v26 = vlaneseq }
 0x35f   :  { %5578 = vmatprep.subr.bf16.mxu0 %v8773_v28  ;;  %6137 = vmatprep.subr.bf16.mxu1 %v8776_v29 }
 0x360   :  { %5608 = vmatprep.mubr.bf16.mxu0 %v8997_v34  ;;  %6167 = vmatprep.mubr.bf16.mxu1 %v8997_v34  ;;  %v915_v27 = vshrl.u32 %v914_v26, 7 }
 0x362   :  { %5579 = vmatpush1.bf16.msra.mxu0 %v8771_v30  ;;  %6138 = vmatpush1.bf16.msra.mxu1 %v8774_v31  ;;  %v916_v28 = vsub.s32 0, %v915_v27  ;;  %v924_v29 = vsub.s32 2, %v915_v27  ;;  %v912_v30 = vld [vmem:[#allocation7] sm:$0xf]  ;;  %v920_v31 = vsub.s32 1, %v915_v27 }
 0x363   :  { %5580 = vmatprep.subr.bf16.mxu0 %v8779_v32  ;;  %6139 = vmatprep.subr.bf16.mxu1 %v8782_v33  ;;  %v928_v32 = vsub.s32 3, %v915_v27 }
 0x364   :  { %v917_v33 = vrot.slane %v912_v30, %v916_v28  ;;  %v925_v34 = vrot.slane %v912_v30, %v924_v29 }
 0x366   :  { %5581 = vmatpush1.bf16.msra.mxu0 %v8777_v35  ;;  %6140 = vmatpush1.bf16.msra.mxu1 %v8780_v36  ;;  %v921_v35 = vrot.slane %v912_v30, %v920_v31  ;;  %v929_v36 = vrot.slane %v912_v30, %v928_v32 }
 0x367   :  { %5582 = vmatprep.subr.bf16.mxu0 %v8785_v37  ;;  %6141 = vmatprep.subr.bf16.mxu1 %v8788_v38 }
 0x36a   :  { %5583 = vmatpush1.bf16.msra.mxu0 %v8783_v39  ;;  %6142 = vmatpush1.bf16.msra.mxu1 %v8786_v40 }
 0x36b   :  { %5584 = vmatprep.subr.bf16.mxu0 %v8791_v41  ;;  %6143 = vmatprep.subr.bf16.mxu1 %v8794_v42 }
 0x36e   :  { %5585 = vmatpush1.bf16.msra.mxu0 %v8789_v43  ;;  %6144 = vmatpush1.bf16.msra.mxu1 %v8792_v44 }
 0x36f   :  { %5586 = vmatprep.subr.bf16.mxu0 %v8797_v45  ;;  %6145 = vmatprep.subr.bf16.mxu1 %v8800_v46 }
 0x372   :  { %5587 = vmatpush1.bf16.msra.mxu0 %v8795_v47  ;;  %6146 = vmatpush1.bf16.msra.mxu1 %v8798_v48 }
 0x373   :  { %5588 = vmatprep.subr.bf16.mxu0 %v8803_v49  ;;  %6147 = vmatprep.subr.bf16.mxu1 %v8806_v50 }
 0x376   :  { %5589 = vmatpush1.bf16.msra.mxu0 %v8801_v51  ;;  %6148 = vmatpush1.bf16.msra.mxu1 %v8804_v52 }
 0x377   :  { %5590 = vmatprep.subr.bf16.mxu0 %v8809_v53  ;;  %6149 = vmatprep.subr.bf16.mxu1 %v8812_v54 }
 0x37a   :  { %5591 = vmatpush1.bf16.msra.mxu0 %v8807_v55  ;;  %6150 = vmatpush1.bf16.msra.mxu1 %v8810_v56 }
 0x37b   :  { %7414 = vmatprep.subr.bf16.mxu0 %v8814_v57  ;;  %7436 = vmatprep.subr.bf16.mxu1 %v8815_v58 }
 0x37d   :  { %5609 = vmatmul.mubr.bf16.vlgmr.msra.gmra.mrb[0].mxu0 %v8813_v59  ;;  %6168 = vmatmul.mubr.bf16.vlgmr.msra.gmra.mrb[0].mxu1 %v8813_v59 }
 0x37e   :  { %7415 = vmatpush3.bf16.msra.mxu0 %v8816_v60  ;;  %7437 = vmatpush3.bf16.msra.mxu1 %v8817_v61 }
 0x37f   :  { %7416 = vmatprep.subr.bf16.mxu0 %v8818_v62  ;;  %7438 = vmatprep.subr.bf16.mxu1 %v8819_v63 }
 0x382   :  { %7417 = vmatpush3.bf16.msra.mxu0 %v8820_v0  ;;  %7439 = vmatpush3.bf16.msra.mxu1 %v8821_v1 }
 0x383   :  { %7418 = vmatprep.subr.bf16.mxu0 %v8822_v2  ;;  %7440 = vmatprep.subr.bf16.mxu1 %v8823_v3  ;;  %v7381_v3 = vld [vmem:[#allocation10] ss:$0 sm:$0xff] }
 0x386   :  { %7419 = vmatpush3.bf16.msra.mxu0 %v8824_v4  ;;  %7441 = vmatpush3.bf16.msra.mxu1 %v8825_v5 }
 0x387   :  { %7420 = vmatprep.subr.bf16.mxu0 %v8826_v6  ;;  %7442 = vmatprep.subr.bf16.mxu1 %v8827_v7 }
 0x38a   :  { %7421 = vmatpush3.bf16.msra.mxu0 %v8828_v8  ;;  %7443 = vmatpush3.bf16.msra.mxu1 %v8829_v9 }
 0x38b   :  { %7422 = vmatprep.subr.bf16.mxu0 %v8830_v10  ;;  %7444 = vmatprep.subr.bf16.mxu1 %v8831_v11 }
 0x38e   :  { %7423 = vmatpush3.bf16.msra.mxu0 %v8832_v12  ;;  %7445 = vmatpush3.bf16.msra.mxu1 %v8833_v13 }
 0x38f   :  { %7424 = vmatprep.subr.bf16.mxu0 %v8834_v14  ;;  %7446 = vmatprep.subr.bf16.mxu1 %v8835_v15 }
 0x392   :  { %7425 = vmatpush3.bf16.msra.mxu0 %v8836_v16  ;;  %7447 = vmatpush3.bf16.msra.mxu1 %v8837_v17 }
 0x393   :  { %7426 = vmatprep.subr.bf16.mxu0 %v8838_v18  ;;  %7448 = vmatprep.subr.bf16.mxu1 %v8839_v19 }
 0x396   :  { %7427 = vmatpush3.bf16.msra.mxu0 %v8840_v20  ;;  %7449 = vmatpush3.bf16.msra.mxu1 %v8841_v21 }
 0x397   :  { %7428 = vmatprep.subr.bf16.mxu0 %v8842_v22  ;;  %7450 = vmatprep.subr.bf16.mxu1 %v8843_v23 }
 0x39a   :  { %7429 = vmatpush3.bf16.msra.mxu0 %v8844_v24  ;;  %7451 = vmatpush3.bf16.msra.mxu1 %v8845_v25 }
 0x450   :  { %v5610_v37 = vpop.f32.mrb[0].mxu0  ;;  %v6169_v38 = vpop.f32.mrb[0].mxu1 }
 0x451   :  { %v7458_v39 = vadd.f32 %v5610_v37, %v917_v33  ;;  %v7462_v40 = vadd.f32 %v6169_v38, %v925_v34  ;;  %v5612_v41 = vpop.f32.mrb[1].mxu0  ;;  %v6171_v42 = vpop.f32.mrb[1].mxu1 }
 0x452   :  { %v7459_v43 = vadd.f32 %v5612_v41, %v921_v35  ;;  %v7463_v44 = vadd.f32 %v6171_v42, %v929_v36  ;;  %v5614_v45 = vpop.f32.mrb[2].mxu0  ;;  %v6173_v46 = vpop.f32.mrb[2].mxu1 }
 0x453   :  { %v7460_v47 = vadd.f32 %v5614_v45, %v917_v33  ;;  %v7464_v48 = vadd.f32 %v6173_v46, %v925_v34  ;;  %v5616_v49 = vpop.f32.mrb[3].mxu0  ;;  %v6175_v50 = vpop.f32.mrb[3].mxu1  ;;  %v6178_v53 = vmax.f32 %v7458_v39, 0.0  ;;  %v6180_v54 = vmax.f32 %v7462_v40, 0.0 }
 0x454   :  { %v7461_v51 = vadd.f32 %v5616_v49, %v921_v35  ;;  %v7465_v52 = vadd.f32 %v6175_v50, %v929_v36  ;;  %v6179_v57 = vmax.f32 %v7459_v43, 0.0  ;;  %v6181_v58 = vmax.f32 %v7463_v44, 0.0 }
 0x455   :  { %v6182_v55 = vmax.f32 %v7460_v47, 0.0  ;;  %v6184_v56 = vmax.f32 %v7464_v48, 0.0 }
 0x456   :  { %v6183_v59 = vmax.f32 %v7461_v51, 0.0  ;;  %v6185_v60 = vmax.f32 %v7465_v52, 0.0 }
 0x457   :  { %v6186_v61 = vpack.c.bf16 %v6182_v55, %v6178_v53  ;;  %v6188_v62 = vpack.c.bf16 %v6184_v56, %v6180_v54 }
 0x458   :  { %v6187_v63 = vpack.c.bf16 %v6183_v59, %v6179_v57  ;;  %v6189_v0 = vpack.c.bf16 %v6185_v60, %v6181_v58 }
 0x45a   :  { %6485 = vmatprep.mubr.bf16.mxu0 %v6187_v63  ;;  %6526 = vmatprep.mubr.bf16.mxu1 %v6189_v0 }
 0x45b   :  { %6486 = vmatmul.mubr.bf16.vlgmr.msra.gmra.mrb[4].mxu0 %v6186_v61  ;;  %6527 = vmatmul.mubr.bf16.vlgmr.msra.gmra.mrb[4].mxu1 %v6188_v62 }
 0x52e   :  { %v7430_v1 = vpop.f32.mrb[4].mxu0  ;;  %v7452_v2 = vpop.f32.mrb[4].mxu1 }
 0x52f   :  { %v7431_v4 = vpop.f32.mrb[5].mxu0  ;;  %v7453_v5 = vpop.f32.mrb[5].mxu1 }
 0x530   :  { %v7432_v6 = vadd.f32 %v7431_v4, %v7430_v1  ;;  %v7454_v7 = vadd.f32 %v7453_v5, %v7452_v2  ;;  %v7433_v8 = vpop.f32.mrb[6].mxu0  ;;  %v7455_v9 = vpop.f32.mrb[6].mxu1 }
 0x531   :  { %v7434_v10 = vpop.f32.mrb[7].mxu0  ;;  %v7456_v11 = vpop.f32.mrb[7].mxu1 }
 0x532   :  { %v6488_v12 = vadd.f32 %v7432_v6, %v7381_v3  ;;  %v7435_v13 = vadd.f32 %v7434_v10, %v7433_v8  ;;  %v7457_v14 = vadd.f32 %v7456_v11, %v7455_v9 }
 0x534   :  { %v6529_v15 = vadd.f32 %v7454_v7, %v6488_v12  ;;  %v6491_v16 = vadd.f32 %v7435_v13, %v7381_v3 }
 0x536   :  { %6535 = vst [vmem:[#allocation11] sm:$0xff] %v6529_v15  ;;  %v6532_v17 = vadd.f32 %v7457_v14, %v6491_v16 }
 0x538   :  { %6536 = vst [vmem:[#allocation11 + $0x8] sm:$0xff] %v6532_v17 }
 0x539   :  { %8967 = shalt.err (!%p8964_p2)
}
 0x53a   :  { %s8968_s8 = scalar_lea.hbm %s9108_s5, 256 }
 0x53b   :  { %p8969_p3 = scmp.ne.s32.totalorder %s9108_s5, %s8968_s8  ;;  %p8972_p4 = scmp.lt.u32.totalorder %s8968_s8, %s9108_s5 }
 0x53d   :  { %p8974_p5 = pnand %p8972_p4, %p8969_p3 }
 0x53f   :  { %8977 = shalt.err (!%p8974_p5)
}
 0x540   :  { %s8999_s13 = smov 128   ;;  %s9000_s14 = smov 8  }
 0x541   :  { %6548 = dma.vmem_to_hbm [thread:$0]  %s6543_s3, 256, %s9108_s5, [#allocation4], %s8999_s13, %s8999_s13, %s9000_s14  }
 0x542   :  { %8984 = dma.done.wait [#allocation4], 256  }
 0x543   :  { %8985 = vsyncadd [#allocation4], 4294967040 }
 0x544   :  { %6552 = vsyncpa [#allocation3], 1 }
 0x545   :  { %6553 = vsyncpa [#allocation6], 1 }
 0x546   :  { %6554 = vsyncpa [#allocation9], 1 }
 0x547   :  { %6555 = vsyncpa [#allocation4], 1 }

</bundles_post_ra>
